<compile_context>
chip_gen: v5e
topology: v5e:2x2
jax: 0.10.0
libtpu: 0.0.40
codegen_flags: <defaults>
</compile_context>

<pallas_src>
import functools
import math

import jax
import jax.numpy as jnp
from jax.experimental import pallas as pl
from jax.experimental.pallas import tpu as pltpu

NEG_BIG = -1e30  # large finite negative instead of -inf (no NaN on all-masked rows)


# ------------------------------ fused kernel -------------------------------

def _encoder_stack_kernel(
    x_ref, bias_ref,
    wqkv_ref, bqkv_ref, wo_ref, bo_ref,
    w1_ref, b1_ref, w2_ref, b2_ref,
    g1_ref, be1_ref, g2_ref, be2_ref,
    o_ref,
    *, num_layers, num_heads, eps):
    """All `num_layers` post-LN TransformerEncoderLayers for ONE batch element.

    Grid is over the batch dimension ("parallel").  Per grid step:
      x_ref:    (1, S, E)       activations for this batch element
      bias_ref: (1, H*S, H*S)   additive bias: 0 inside a head block on valid
                                keys, NEG_BIG on cross-head / padded positions
      weights:  stacked on a leading layer axis, whole-array VMEM resident
    """
    S = x_ref.shape[1]
    E = x_ref.shape[2]
    H = num_heads
    D = E // H

    def layer_norm(v, g, b):
        mu = jnp.mean(v, axis=-1, keepdims=True)
        vc = v - mu
        var = jnp.mean(vc * vc, axis=-1, keepdims=True)   # biased, like torch LayerNorm
        return vc * jax.lax.rsqrt(var + eps) * g + b

    x = x_ref[0]          # (S, E)
    bias = bias_ref[0]    # (H*S, H*S)  — loaded once, reused by every layer

    for l in range(num_layers):                      # static unroll over 4 layers
        # ---- packed QKV projection: one lane-dense (S,E)@(E,3E) matmul ----
        qkv = jnp.dot(x, wqkv_ref[l],
                      preferred_element_type=jnp.float32) + bqkv_ref[l]   # (S, 3E)

        # ---- head split to the block-diagonal layout (H*S, D), in vregs ----
        def split_heads(base):
            return jnp.concatenate(
                [qkv[:, base + h * D: base + (h + 1) * D] for h in range(H)],
                axis=0)                                                   # (H*S, D)

        q_bd = split_heads(0)          # 1/sqrt(D) already folded into wqkv/bqkv
        k_bd = split_heads(E)
        v_bd = split_heads(2 * E)

        # ---- one block-diagonal attention per layer (2 MXU ops total) ----
        s = jax.lax.dot_general(                       # Q @ K^T, no explicit .T
            q_bd, k_bd, (((1,), (1,)), ((), ())),
            preferred_element_type=jnp.float32)        # (H*S, H*S)
        s = s + bias                                   # block-diag + key padding
        m = jnp.max(s, axis=-1, keepdims=True)
        p = jnp.exp(s - m)
        denom = jnp.sum(p, axis=-1, keepdims=True)
        p = p * pl.reciprocal(denom, approx=True)      # EUP divide

        o_bd = jnp.dot(p, v_bd, preferred_element_type=jnp.float32)      # (H*S, D)

        # ---- merge heads lane-dense in vregs (no scratch round-trip) ----
        attn = jnp.concatenate(
            [o_bd[h * S:(h + 1) * S, :] for h in range(H)], axis=1)       # (S, E)

        attn = jnp.dot(attn, wo_ref[l],
                       preferred_element_type=jnp.float32) + bo_ref[l]    # (S, E)
        x = layer_norm(x + attn, g1_ref[l], be1_ref[l])                   # norm1(src + sa)

        # ---- feed-forward (ReLU) ----
        ff = jnp.dot(x, w1_ref[l], preferred_element_type=jnp.float32) + b1_ref[l]
        ff = jnp.maximum(ff, 0.0)
        ff = jnp.dot(ff, w2_ref[l], preferred_element_type=jnp.float32) + b2_ref[l]
        x = layer_norm(x + ff, g2_ref[l], be2_ref[l])                     # norm2(x + ffn)

    o_ref[0] = x.astype(o_ref.dtype)


# ------------------------------ python wrapper ------------------------------

def neko_ctx_basic_fwd(params, sbatch, smask, numh=8, eps=1e-5):
    """forward(sbatch, smask) == TransformerEncoder(sbatch, src_key_padding_mask=smask)."""
    # TODO(synk): neko_TransformerEncoderLayer internals unavailable; standard
    # nn.TransformerEncoderLayer (post-LN, ReLU, dropout inactive in eval) is used.
    S, N, E = sbatch.shape
    L = params["wqkv"].shape[0]
    H = numh
    D = E // H
    scale = 1.0 / math.sqrt(D)

    # (S, N, E) -> (N, S, E): one cheap boundary transpose; each grid step owns
    # one batch element's contiguous (S, E) tile.
    x = jnp.transpose(sbatch.astype(jnp.float32), (1, 0, 2))              # (N, S, E)

    # Fold 1/sqrt(D) into the Q projection (weights AND bias) — zero numerics impact.
    qscale = jnp.concatenate(
        [jnp.full((E,), scale, jnp.float32), jnp.ones((2 * E,), jnp.float32)])
    wqkv = params["wqkv"] * qscale                                        # (L, E, 3E)
    bqkv = params["bqkv"] * qscale                                        # (L, 1, 3E)

    # Block-diagonal (over heads) + key-padding additive bias, built ONCE.
    # Row/col index = h*S + s within a batch element.
    head_id = jnp.arange(H * S) // S
    block_ok = head_id[:, None] == head_id[None, :]                       # (HS, HS)
    key_ok = ~jnp.tile(smask, (1, H))                                     # (N, HS)
    bias = jnp.where(block_ok[None, :, :] & key_ok[:, None, :],
                     0.0, NEG_BIG).astype(jnp.float32)                    # (N, HS, HS)

    weights = (wqkv, bqkv,
               params["wo"], params["bo"],
               params["w1"], params["b1"],
               params["w2"], params["b2"],
               params["g1"], params["be1"],
               params["g2"], params["be2"])

    kernel = functools.partial(
        _encoder_stack_kernel, num_layers=L, num_heads=H, eps=eps)

    in_specs = [
        pl.BlockSpec((1, S, E), lambda n: (n, 0, 0)),                 # x (per batch)
        pl.BlockSpec((1, H * S, H * S), lambda n: (n, 0, 0)),         # bias (per batch)
    ] + [
        # Stacked layer weights: full-array blocks, constant block index, so
        # they are VMEM resident and not re-fetched across grid steps.
        pl.BlockSpec(w.shape, lambda n: (0, 0, 0)) for w in weights
    ]

    out = pl.pallas_call(
        kernel,
        out_shape=jax.ShapeDtypeStruct((N, S, E), jnp.float32),
        grid=(N,),
        in_specs=in_specs,
        out_specs=pl.BlockSpec((1, S, E), lambda n: (n, 0, 0)),
        compiler_params=pltpu.CompilerParams(
            dimension_semantics=("parallel",),      # shard batches across v7x's 2 TCs
            vmem_limit_bytes=32 * 1024 * 1024),     # headroom; tiny usage today
    )(x, bias, *weights)

    return jnp.transpose(out, (1, 0, 2))            # back to (S, N, E)


# ------------------------------ parameter init ------------------------------

def init_params(key, feat_ch, numh, num_l, dim_ff):
    E, F, L = feat_ch, dim_ff, num_l

    def w(k, shape, fan_in):
        return jax.random.normal(k, shape, jnp.float32) / math.sqrt(fan_in)

    k0, k1, k2, k3 = jax.random.split(key, 4)
    return dict(
        # torch in_proj_weight (3E, E) already transposed to (E, 3E), stacked over layers
        wqkv=w(k0, (L, E, 3 * E), E),
        bqkv=jnp.zeros((L, 1, 3 * E), jnp.float32),
        wo=w(k1, (L, E, E), E),
        bo=jnp.zeros((L, 1, E), jnp.float32),
        w1=w(k2, (L, E, F), E),
        b1=jnp.zeros((L, 1, F), jnp.float32),
        w2=w(k3, (L, F, E), F),
        b2=jnp.zeros((L, 1, E), jnp.float32),
        g1=jnp.ones((L, 1, E), jnp.float32),
        be1=jnp.zeros((L, 1, E), jnp.float32),
        g2=jnp.ones((L, 1, E), jnp.float32),
        be2=jnp.zeros((L, 1, E), jnp.float32),
    )


# ----------------------------------- main -----------------------------------

if __name__ == "__main__":
    feat_ch, numh, num_l, dim_ff = 64, 8, 4, 128
    S, N = 8, 2

    key = jax.random.PRNGKey(0)
    kp, kx = jax.random.split(key)
    params = init_params(kp, feat_ch, numh, num_l, dim_ff)

    sbatch = jax.random.normal(kx, (S, N, feat_ch), jnp.float32)   # (seq, batch, feat)
    smask = jnp.zeros((N, S), dtype=bool).at[1, S - 2:].set(True)  # pad last 2 keys of batch 1

    fwd = jax.jit(functools.partial(neko_ctx_basic_fwd, numh=numh))
    out = fwd(params, sbatch, smask)
    jax.block_until_ready(out)

    assert out.shape == (S, N, feat_ch) and out.dtype == jnp.float32
    assert bool(jnp.all(jnp.isfinite(out)))
    print("KERNEL_OK")
</pallas_src>

<mosaic_0001>
module attributes {stable_mosaic.version = 11 : i64} {
  func.func @_encoder_stack_kernel(%arg0: i32, %arg1: memref<1x8x64xf32, #tpu.memory_space<vmem>>, %arg2: memref<1x64x64xf32, #tpu.memory_space<vmem>>, %arg3: memref<4x64x192xf32, #tpu.memory_space<vmem>>, %arg4: memref<4x1x192xf32, #tpu.memory_space<vmem>>, %arg5: memref<4x64x64xf32, #tpu.memory_space<vmem>>, %arg6: memref<4x1x64xf32, #tpu.memory_space<vmem>>, %arg7: memref<4x64x128xf32, #tpu.memory_space<vmem>>, %arg8: memref<4x1x128xf32, #tpu.memory_space<vmem>>, %arg9: memref<4x128x64xf32, #tpu.memory_space<vmem>>, %arg10: memref<4x1x64xf32, #tpu.memory_space<vmem>>, %arg11: memref<4x1x64xf32, #tpu.memory_space<vmem>>, %arg12: memref<4x1x64xf32, #tpu.memory_space<vmem>>, %arg13: memref<4x1x64xf32, #tpu.memory_space<vmem>>, %arg14: memref<4x1x64xf32, #tpu.memory_space<vmem>>, %arg15: memref<1x8x64xf32, #tpu.memory_space<vmem>>) attributes {dimension_semantics = [#tpu.dimension_semantics<parallel>], iteration_bounds = array<i64: 2>, scalar_prefetch = 0 : i64, scratch_operands = 0 : i64, tpu.core_type = #tpu.core_type<tc>, window_params = [{transform_indices = @transform_0, window_bounds = array<i64: 1, 8, 64>}, {transform_indices = @transform_1, window_bounds = array<i64: 1, 64, 64>}, {pipeline_mode = #tpu.pipeline_mode<synchronous>, transform_indices = @transform_2, window_bounds = array<i64: 4, 64, 192>}, {pipeline_mode = #tpu.pipeline_mode<synchronous>, transform_indices = @transform_3, window_bounds = array<i64: 4, 1, 192>}, {pipeline_mode = #tpu.pipeline_mode<synchronous>, transform_indices = @transform_4, window_bounds = array<i64: 4, 64, 64>}, {pipeline_mode = #tpu.pipeline_mode<synchronous>, transform_indices = @transform_5, window_bounds = array<i64: 4, 1, 64>}, {pipeline_mode = #tpu.pipeline_mode<synchronous>, transform_indices = @transform_6, window_bounds = array<i64: 4, 64, 128>}, {pipeline_mode = #tpu.pipeline_mode<synchronous>, transform_indices = @transform_7, window_bounds = array<i64: 4, 1, 128>}, {pipeline_mode = #tpu.pipeline_mode<synchronous>, transform_indices = @transform_8, window_bounds = array<i64: 4, 128, 64>}, {pipeline_mode = #tpu.pipeline_mode<synchronous>, transform_indices = @transform_9, window_bounds = array<i64: 4, 1, 64>}, {pipeline_mode = #tpu.pipeline_mode<synchronous>, transform_indices = @transform_10, window_bounds = array<i64: 4, 1, 64>}, {pipeline_mode = #tpu.pipeline_mode<synchronous>, transform_indices = @transform_11, window_bounds = array<i64: 4, 1, 64>}, {pipeline_mode = #tpu.pipeline_mode<synchronous>, transform_indices = @transform_12, window_bounds = array<i64: 4, 1, 64>}, {pipeline_mode = #tpu.pipeline_mode<synchronous>, transform_indices = @transform_13, window_bounds = array<i64: 4, 1, 64>}, {transform_indices = @transform_14, window_bounds = array<i64: 1, 8, 64>}]} {
    %c0 = arith.constant 0 : index
    %c0_0 = arith.constant 0 : index
    %c0_1 = arith.constant 0 : index
    %0 = vector.load %arg1[%c0, %c0_0, %c0_1] : memref<1x8x64xf32, #tpu.memory_space<vmem>>, vector<1x8x64xf32>
    %1 = vector.shape_cast %0 : vector<1x8x64xf32> to vector<8x64xf32>
    %c0_2 = arith.constant 0 : index
    %c0_3 = arith.constant 0 : index
    %c0_4 = arith.constant 0 : index
    %2 = vector.load %arg2[%c0_2, %c0_3, %c0_4] : memref<1x64x64xf32, #tpu.memory_space<vmem>>, vector<1x64x64xf32>
    %3 = vector.shape_cast %2 : vector<1x64x64xf32> to vector<64x64xf32>
    %c0_5 = arith.constant 0 : index
    %c0_6 = arith.constant 0 : index
    %c0_7 = arith.constant 0 : index
    %4 = vector.load %arg3[%c0_5, %c0_6, %c0_7] : memref<4x64x192xf32, #tpu.memory_space<vmem>>, vector<1x64x192xf32>
    %5 = vector.shape_cast %4 : vector<1x64x192xf32> to vector<64x192xf32>
    %cst = arith.constant dense<0.000000e+00> : vector<8x192xf32>
    %6 = tpu.matmul %1, %5, %cst {dimension_numbers = #tpu.dot_dimension_numbers<[1], [0], [0], [1], [0, 0, 1, 1], [], []>} : vector<8x64xf32>, vector<64x192xf32>, vector<8x192xf32> -> vector<8x192xf32>
    %c0_8 = arith.constant 0 : index
    %c0_9 = arith.constant 0 : index
    %c0_10 = arith.constant 0 : index
    %7 = vector.load %arg4[%c0_8, %c0_9, %c0_10] : memref<4x1x192xf32, #tpu.memory_space<vmem>>, vector<1x1x192xf32>
    %8 = vector.shape_cast %7 : vector<1x1x192xf32> to vector<1x192xf32>
    %9 = vector.broadcast %8 : vector<1x192xf32> to vector<8x192xf32>
    %10 = arith.addf %6, %9 : vector<8x192xf32>
    %11 = vector.extract_strided_slice %10 {offsets = [0, 0], sizes = [8, 8], strides = [1, 1]} : vector<8x192xf32> to vector<8x8xf32>
    %12 = vector.extract_strided_slice %10 {offsets = [0, 8], sizes = [8, 8], strides = [1, 1]} : vector<8x192xf32> to vector<8x8xf32>
    %13 = vector.extract_strided_slice %10 {offsets = [0, 16], sizes = [8, 8], strides = [1, 1]} : vector<8x192xf32> to vector<8x8xf32>
    %14 = vector.extract_strided_slice %10 {offsets = [0, 24], sizes = [8, 8], strides = [1, 1]} : vector<8x192xf32> to vector<8x8xf32>
    %15 = vector.extract_strided_slice %10 {offsets = [0, 32], sizes = [8, 8], strides = [1, 1]} : vector<8x192xf32> to vector<8x8xf32>
    %16 = vector.extract_strided_slice %10 {offsets = [0, 40], sizes = [8, 8], strides = [1, 1]} : vector<8x192xf32> to vector<8x8xf32>
    %17 = vector.extract_strided_slice %10 {offsets = [0, 48], sizes = [8, 8], strides = [1, 1]} : vector<8x192xf32> to vector<8x8xf32>
    %18 = vector.extract_strided_slice %10 {offsets = [0, 56], sizes = [8, 8], strides = [1, 1]} : vector<8x192xf32> to vector<8x8xf32>
    %19 = tpu.concatenate %11, %12, %13, %14, %15, %16, %17, %18 in 0 : vector<8x8xf32>, vector<8x8xf32>, vector<8x8xf32>, vector<8x8xf32>, vector<8x8xf32>, vector<8x8xf32>, vector<8x8xf32>, vector<8x8xf32> -> vector<64x8xf32>
    %20 = vector.extract_strided_slice %10 {offsets = [0, 64], sizes = [8, 8], strides = [1, 1]} : vector<8x192xf32> to vector<8x8xf32>
    %21 = vector.extract_strided_slice %10 {offsets = [0, 72], sizes = [8, 8], strides = [1, 1]} : vector<8x192xf32> to vector<8x8xf32>
    %22 = vector.extract_strided_slice %10 {offsets = [0, 80], sizes = [8, 8], strides = [1, 1]} : vector<8x192xf32> to vector<8x8xf32>
    %23 = vector.extract_strided_slice %10 {offsets = [0, 88], sizes = [8, 8], strides = [1, 1]} : vector<8x192xf32> to vector<8x8xf32>
    %24 = vector.extract_strided_slice %10 {offsets = [0, 96], sizes = [8, 8], strides = [1, 1]} : vector<8x192xf32> to vector<8x8xf32>
    %25 = vector.extract_strided_slice %10 {offsets = [0, 104], sizes = [8, 8], strides = [1, 1]} : vector<8x192xf32> to vector<8x8xf32>
    %26 = vector.extract_strided_slice %10 {offsets = [0, 112], sizes = [8, 8], strides = [1, 1]} : vector<8x192xf32> to vector<8x8xf32>
    %27 = vector.extract_strided_slice %10 {offsets = [0, 120], sizes = [8, 8], strides = [1, 1]} : vector<8x192xf32> to vector<8x8xf32>
    %28 = tpu.concatenate %20, %21, %22, %23, %24, %25, %26, %27 in 0 : vector<8x8xf32>, vector<8x8xf32>, vector<8x8xf32>, vector<8x8xf32>, vector<8x8xf32>, vector<8x8xf32>, vector<8x8xf32>, vector<8x8xf32> -> vector<64x8xf32>
    %29 = vector.extract_strided_slice %10 {offsets = [0, 128], sizes = [8, 8], strides = [1, 1]} : vector<8x192xf32> to vector<8x8xf32>
    %30 = vector.extract_strided_slice %10 {offsets = [0, 136], sizes = [8, 8], strides = [1, 1]} : vector<8x192xf32> to vector<8x8xf32>
    %31 = vector.extract_strided_slice %10 {offsets = [0, 144], sizes = [8, 8], strides = [1, 1]} : vector<8x192xf32> to vector<8x8xf32>
    %32 = vector.extract_strided_slice %10 {offsets = [0, 152], sizes = [8, 8], strides = [1, 1]} : vector<8x192xf32> to vector<8x8xf32>
    %33 = vector.extract_strided_slice %10 {offsets = [0, 160], sizes = [8, 8], strides = [1, 1]} : vector<8x192xf32> to vector<8x8xf32>
    %34 = vector.extract_strided_slice %10 {offsets = [0, 168], sizes = [8, 8], strides = [1, 1]} : vector<8x192xf32> to vector<8x8xf32>
    %35 = vector.extract_strided_slice %10 {offsets = [0, 176], sizes = [8, 8], strides = [1, 1]} : vector<8x192xf32> to vector<8x8xf32>
    %36 = vector.extract_strided_slice %10 {offsets = [0, 184], sizes = [8, 8], strides = [1, 1]} : vector<8x192xf32> to vector<8x8xf32>
    %37 = tpu.concatenate %29, %30, %31, %32, %33, %34, %35, %36 in 0 : vector<8x8xf32>, vector<8x8xf32>, vector<8x8xf32>, vector<8x8xf32>, vector<8x8xf32>, vector<8x8xf32>, vector<8x8xf32>, vector<8x8xf32> -> vector<64x8xf32>
    %cst_11 = arith.constant dense<0.000000e+00> : vector<64x64xf32>
    %38 = tpu.matmul %19, %28, %cst_11 {dimension_numbers = #tpu.dot_dimension_numbers<[1], [1], [0], [0], [0, 0, 1, 0], [], []>} : vector<64x8xf32>, vector<64x8xf32>, vector<64x64xf32> -> vector<64x64xf32>
    %39 = arith.addf %38, %3 : vector<64x64xf32>
    %cst_12 = arith.constant dense<0xFF800000> : vector<64xf32>
    %40 = vector.multi_reduction <maximumf>, %39, %cst_12 [1] : vector<64x64xf32> to vector<64xf32>
    %41 = vector.shape_cast %40 : vector<64xf32> to vector<64x1xf32>
    %42 = vector.broadcast %41 : vector<64x1xf32> to vector<64x64xf32>
    %43 = arith.subf %39, %42 : vector<64x64xf32>
    %44 = math.exp %43 : vector<64x64xf32>
    %cst_13 = arith.constant dense<0.000000e+00> : vector<64xf32>
    %45 = vector.multi_reduction <add>, %44, %cst_13 [1] : vector<64x64xf32> to vector<64xf32>
    %46 = vector.shape_cast %45 : vector<64xf32> to vector<64x1xf32>
    %47 = tpu.reciprocal %46 {approx = true} : vector<64x1xf32> -> vector<64x1xf32>
    %48 = vector.broadcast %47 : vector<64x1xf32> to vector<64x64xf32>
    %49 = arith.mulf %44, %48 : vector<64x64xf32>
    %cst_14 = arith.constant dense<0.000000e+00> : vector<64x8xf32>
    %50 = tpu.matmul %49, %37, %cst_14 {dimension_numbers = #tpu.dot_dimension_numbers<[1], [0], [0], [1], [0, 0, 1, 1], [], []>} : vector<64x64xf32>, vector<64x8xf32>, vector<64x8xf32> -> vector<64x8xf32>
    %51 = vector.extract_strided_slice %50 {offsets = [0, 0], sizes = [8, 8], strides = [1, 1]} : vector<64x8xf32> to vector<8x8xf32>
    %52 = vector.extract_strided_slice %50 {offsets = [8, 0], sizes = [8, 8], strides = [1, 1]} : vector<64x8xf32> to vector<8x8xf32>
    %53 = vector.extract_strided_slice %50 {offsets = [16, 0], sizes = [8, 8], strides = [1, 1]} : vector<64x8xf32> to vector<8x8xf32>
    %54 = vector.extract_strided_slice %50 {offsets = [24, 0], sizes = [8, 8], strides = [1, 1]} : vector<64x8xf32> to vector<8x8xf32>
    %55 = vector.extract_strided_slice %50 {offsets = [32, 0], sizes = [8, 8], strides = [1, 1]} : vector<64x8xf32> to vector<8x8xf32>
    %56 = vector.extract_strided_slice %50 {offsets = [40, 0], sizes = [8, 8], strides = [1, 1]} : vector<64x8xf32> to vector<8x8xf32>
    %57 = vector.extract_strided_slice %50 {offsets = [48, 0], sizes = [8, 8], strides = [1, 1]} : vector<64x8xf32> to vector<8x8xf32>
    %58 = vector.extract_strided_slice %50 {offsets = [56, 0], sizes = [8, 8], strides = [1, 1]} : vector<64x8xf32> to vector<8x8xf32>
    %59 = tpu.concatenate %51, %52, %53, %54, %55, %56, %57, %58 in 1 : vector<8x8xf32>, vector<8x8xf32>, vector<8x8xf32>, vector<8x8xf32>, vector<8x8xf32>, vector<8x8xf32>, vector<8x8xf32>, vector<8x8xf32> -> vector<8x64xf32>
    %c0_15 = arith.constant 0 : index
    %c0_16 = arith.constant 0 : index
    %c0_17 = arith.constant 0 : index
    %60 = vector.load %arg5[%c0_15, %c0_16, %c0_17] : memref<4x64x64xf32, #tpu.memory_space<vmem>>, vector<1x64x64xf32>
    %61 = vector.shape_cast %60 : vector<1x64x64xf32> to vector<64x64xf32>
    %cst_18 = arith.constant dense<0.000000e+00> : vector<8x64xf32>
    %62 = tpu.matmul %59, %61, %cst_18 {dimension_numbers = #tpu.dot_dimension_numbers<[1], [0], [0], [1], [0, 0, 1, 1], [], []>} : vector<8x64xf32>, vector<64x64xf32>, vector<8x64xf32> -> vector<8x64xf32>
    %c0_19 = arith.constant 0 : index
    %c0_20 = arith.constant 0 : index
    %c0_21 = arith.constant 0 : index
    %63 = vector.load %arg6[%c0_19, %c0_20, %c0_21] : memref<4x1x64xf32, #tpu.memory_space<vmem>>, vector<1x1x64xf32>
    %64 = vector.shape_cast %63 : vector<1x1x64xf32> to vector<1x64xf32>
    %65 = vector.broadcast %64 : vector<1x64xf32> to vector<8x64xf32>
    %66 = arith.addf %62, %65 : vector<8x64xf32>
    %67 = arith.addf %1, %66 : vector<8x64xf32>
    %c0_22 = arith.constant 0 : index
    %c0_23 = arith.constant 0 : index
    %c0_24 = arith.constant 0 : index
    %68 = vector.load %arg11[%c0_22, %c0_23, %c0_24] : memref<4x1x64xf32, #tpu.memory_space<vmem>>, vector<1x1x64xf32>
    %69 = vector.shape_cast %68 : vector<1x1x64xf32> to vector<1x64xf32>
    %c0_25 = arith.constant 0 : index
    %c0_26 = arith.constant 0 : index
    %c0_27 = arith.constant 0 : index
    %70 = vector.load %arg12[%c0_25, %c0_26, %c0_27] : memref<4x1x64xf32, #tpu.memory_space<vmem>>, vector<1x1x64xf32>
    %71 = vector.shape_cast %70 : vector<1x1x64xf32> to vector<1x64xf32>
    %cst_28 = arith.constant dense<0.000000e+00> : vector<8xf32>
    %72 = vector.multi_reduction <add>, %67, %cst_28 [1] : vector<8x64xf32> to vector<8xf32>
    %73 = vector.shape_cast %72 : vector<8xf32> to vector<8x1xf32>
    %cst_29 = arith.constant 6.400000e+01 : f32
    %74 = vector.broadcast %cst_29 : f32 to vector<8x1xf32>
    %75 = arith.divf %73, %74 : vector<8x1xf32>
    %76 = vector.broadcast %75 : vector<8x1xf32> to vector<8x64xf32>
    %77 = arith.subf %67, %76 : vector<8x64xf32>
    %78 = arith.mulf %77, %77 : vector<8x64xf32>
    %cst_30 = arith.constant dense<0.000000e+00> : vector<8xf32>
    %79 = vector.multi_reduction <add>, %78, %cst_30 [1] : vector<8x64xf32> to vector<8xf32>
    %80 = vector.shape_cast %79 : vector<8xf32> to vector<8x1xf32>
    %cst_31 = arith.constant 6.400000e+01 : f32
    %81 = vector.broadcast %cst_31 : f32 to vector<8x1xf32>
    %82 = arith.divf %80, %81 : vector<8x1xf32>
    %cst_32 = arith.constant 9.99999974E-6 : f32
    %83 = vector.broadcast %cst_32 : f32 to vector<8x1xf32>
    %84 = arith.addf %82, %83 : vector<8x1xf32>
    %85 = math.rsqrt %84 : vector<8x1xf32>
    %86 = vector.broadcast %85 : vector<8x1xf32> to vector<8x64xf32>
    %87 = arith.mulf %77, %86 : vector<8x64xf32>
    %88 = vector.broadcast %69 : vector<1x64xf32> to vector<8x64xf32>
    %89 = arith.mulf %87, %88 : vector<8x64xf32>
    %90 = vector.broadcast %71 : vector<1x64xf32> to vector<8x64xf32>
    %91 = arith.addf %89, %90 : vector<8x64xf32>
    %c0_33 = arith.constant 0 : index
    %c0_34 = arith.constant 0 : index
    %c0_35 = arith.constant 0 : index
    %92 = vector.load %arg7[%c0_33, %c0_34, %c0_35] : memref<4x64x128xf32, #tpu.memory_space<vmem>>, vector<1x64x128xf32>
    %93 = vector.shape_cast %92 : vector<1x64x128xf32> to vector<64x128xf32>
    %cst_36 = arith.constant dense<0.000000e+00> : vector<8x128xf32>
    %94 = tpu.matmul %91, %93, %cst_36 {dimension_numbers = #tpu.dot_dimension_numbers<[1], [0], [0], [1], [0, 0, 1, 1], [], []>} : vector<8x64xf32>, vector<64x128xf32>, vector<8x128xf32> -> vector<8x128xf32>
    %c0_37 = arith.constant 0 : index
    %c0_38 = arith.constant 0 : index
    %c0_39 = arith.constant 0 : index
    %95 = vector.load %arg8[%c0_37, %c0_38, %c0_39] : memref<4x1x128xf32, #tpu.memory_space<vmem>>, vector<1x1x128xf32>
    %96 = vector.shape_cast %95 : vector<1x1x128xf32> to vector<1x128xf32>
    %97 = vector.broadcast %96 : vector<1x128xf32> to vector<8x128xf32>
    %98 = arith.addf %94, %97 : vector<8x128xf32>
    %cst_40 = arith.constant 0.000000e+00 : f32
    %99 = vector.broadcast %cst_40 : f32 to vector<8x128xf32>
    %100 = arith.maximumf %98, %99 : vector<8x128xf32>
    %c0_41 = arith.constant 0 : index
    %c0_42 = arith.constant 0 : index
    %c0_43 = arith.constant 0 : index
    %101 = vector.load %arg9[%c0_41, %c0_42, %c0_43] : memref<4x128x64xf32, #tpu.memory_space<vmem>>, vector<1x128x64xf32>
    %102 = vector.shape_cast %101 : vector<1x128x64xf32> to vector<128x64xf32>
    %cst_44 = arith.constant dense<0.000000e+00> : vector<8x64xf32>
    %103 = tpu.matmul %100, %102, %cst_44 {dimension_numbers = #tpu.dot_dimension_numbers<[1], [0], [0], [1], [0, 0, 1, 1], [], []>} : vector<8x128xf32>, vector<128x64xf32>, vector<8x64xf32> -> vector<8x64xf32>
    %c0_45 = arith.constant 0 : index
    %c0_46 = arith.constant 0 : index
    %c0_47 = arith.constant 0 : index
    %104 = vector.load %arg10[%c0_45, %c0_46, %c0_47] : memref<4x1x64xf32, #tpu.memory_space<vmem>>, vector<1x1x64xf32>
    %105 = vector.shape_cast %104 : vector<1x1x64xf32> to vector<1x64xf32>
    %106 = vector.broadcast %105 : vector<1x64xf32> to vector<8x64xf32>
    %107 = arith.addf %103, %106 : vector<8x64xf32>
    %108 = arith.addf %91, %107 : vector<8x64xf32>
    %c0_48 = arith.constant 0 : index
    %c0_49 = arith.constant 0 : index
    %c0_50 = arith.constant 0 : index
    %109 = vector.load %arg13[%c0_48, %c0_49, %c0_50] : memref<4x1x64xf32, #tpu.memory_space<vmem>>, vector<1x1x64xf32>
    %110 = vector.shape_cast %109 : vector<1x1x64xf32> to vector<1x64xf32>
    %c0_51 = arith.constant 0 : index
    %c0_52 = arith.constant 0 : index
    %c0_53 = arith.constant 0 : index
    %111 = vector.load %arg14[%c0_51, %c0_52, %c0_53] : memref<4x1x64xf32, #tpu.memory_space<vmem>>, vector<1x1x64xf32>
    %112 = vector.shape_cast %111 : vector<1x1x64xf32> to vector<1x64xf32>
    %cst_54 = arith.constant dense<0.000000e+00> : vector<8xf32>
    %113 = vector.multi_reduction <add>, %108, %cst_54 [1] : vector<8x64xf32> to vector<8xf32>
    %114 = vector.shape_cast %113 : vector<8xf32> to vector<8x1xf32>
    %cst_55 = arith.constant 6.400000e+01 : f32
    %115 = vector.broadcast %cst_55 : f32 to vector<8x1xf32>
    %116 = arith.divf %114, %115 : vector<8x1xf32>
    %117 = vector.broadcast %116 : vector<8x1xf32> to vector<8x64xf32>
    %118 = arith.subf %108, %117 : vector<8x64xf32>
    %119 = arith.mulf %118, %118 : vector<8x64xf32>
    %cst_56 = arith.constant dense<0.000000e+00> : vector<8xf32>
    %120 = vector.multi_reduction <add>, %119, %cst_56 [1] : vector<8x64xf32> to vector<8xf32>
    %121 = vector.shape_cast %120 : vector<8xf32> to vector<8x1xf32>
    %cst_57 = arith.constant 6.400000e+01 : f32
    %122 = vector.broadcast %cst_57 : f32 to vector<8x1xf32>
    %123 = arith.divf %121, %122 : vector<8x1xf32>
    %cst_58 = arith.constant 9.99999974E-6 : f32
    %124 = vector.broadcast %cst_58 : f32 to vector<8x1xf32>
    %125 = arith.addf %123, %124 : vector<8x1xf32>
    %126 = math.rsqrt %125 : vector<8x1xf32>
    %127 = vector.broadcast %126 : vector<8x1xf32> to vector<8x64xf32>
    %128 = arith.mulf %118, %127 : vector<8x64xf32>
    %129 = vector.broadcast %110 : vector<1x64xf32> to vector<8x64xf32>
    %130 = arith.mulf %128, %129 : vector<8x64xf32>
    %131 = vector.broadcast %112 : vector<1x64xf32> to vector<8x64xf32>
    %132 = arith.addf %130, %131 : vector<8x64xf32>
    %c1 = arith.constant 1 : index
    %c0_59 = arith.constant 0 : index
    %c0_60 = arith.constant 0 : index
    %133 = vector.load %arg3[%c1, %c0_59, %c0_60] : memref<4x64x192xf32, #tpu.memory_space<vmem>>, vector<1x64x192xf32>
    %134 = vector.shape_cast %133 : vector<1x64x192xf32> to vector<64x192xf32>
    %cst_61 = arith.constant dense<0.000000e+00> : vector<8x192xf32>
    %135 = tpu.matmul %132, %134, %cst_61 {dimension_numbers = #tpu.dot_dimension_numbers<[1], [0], [0], [1], [0, 0, 1, 1], [], []>} : vector<8x64xf32>, vector<64x192xf32>, vector<8x192xf32> -> vector<8x192xf32>
    %c1_62 = arith.constant 1 : index
    %c0_63 = arith.constant 0 : index
    %c0_64 = arith.constant 0 : index
    %136 = vector.load %arg4[%c1_62, %c0_63, %c0_64] : memref<4x1x192xf32, #tpu.memory_space<vmem>>, vector<1x1x192xf32>
    %137 = vector.shape_cast %136 : vector<1x1x192xf32> to vector<1x192xf32>
    %138 = vector.broadcast %137 : vector<1x192xf32> to vector<8x192xf32>
    %139 = arith.addf %135, %138 : vector<8x192xf32>
    %140 = vector.extract_strided_slice %139 {offsets = [0, 0], sizes = [8, 8], strides = [1, 1]} : vector<8x192xf32> to vector<8x8xf32>
    %141 = vector.extract_strided_slice %139 {offsets = [0, 8], sizes = [8, 8], strides = [1, 1]} : vector<8x192xf32> to vector<8x8xf32>
    %142 = vector.extract_strided_slice %139 {offsets = [0, 16], sizes = [8, 8], strides = [1, 1]} : vector<8x192xf32> to vector<8x8xf32>
    %143 = vector.extract_strided_slice %139 {offsets = [0, 24], sizes = [8, 8], strides = [1, 1]} : vector<8x192xf32> to vector<8x8xf32>
    %144 = vector.extract_strided_slice %139 {offsets = [0, 32], sizes = [8, 8], strides = [1, 1]} : vector<8x192xf32> to vector<8x8xf32>
    %145 = vector.extract_strided_slice %139 {offsets = [0, 40], sizes = [8, 8], strides = [1, 1]} : vector<8x192xf32> to vector<8x8xf32>
    %146 = vector.extract_strided_slice %139 {offsets = [0, 48], sizes = [8, 8], strides = [1, 1]} : vector<8x192xf32> to vector<8x8xf32>
    %147 = vector.extract_strided_slice %139 {offsets = [0, 56], sizes = [8, 8], strides = [1, 1]} : vector<8x192xf32> to vector<8x8xf32>
    %148 = tpu.concatenate %140, %141, %142, %143, %144, %145, %146, %147 in 0 : vector<8x8xf32>, vector<8x8xf32>, vector<8x8xf32>, vector<8x8xf32>, vector<8x8xf32>, vector<8x8xf32>, vector<8x8xf32>, vector<8x8xf32> -> vector<64x8xf32>
    %149 = vector.extract_strided_slice %139 {offsets = [0, 64], sizes = [8, 8], strides = [1, 1]} : vector<8x192xf32> to vector<8x8xf32>
    %150 = vector.extract_strided_slice %139 {offsets = [0, 72], sizes = [8, 8], strides = [1, 1]} : vector<8x192xf32> to vector<8x8xf32>
    %151 = vector.extract_strided_slice %139 {offsets = [0, 80], sizes = [8, 8], strides = [1, 1]} : vector<8x192xf32> to vector<8x8xf32>
    %152 = vector.extract_strided_slice %139 {offsets = [0, 88], sizes = [8, 8], strides = [1, 1]} : vector<8x192xf32> to vector<8x8xf32>
    %153 = vector.extract_strided_slice %139 {offsets = [0, 96], sizes = [8, 8], strides = [1, 1]} : vector<8x192xf32> to vector<8x8xf32>
    %154 = vector.extract_strided_slice %139 {offsets = [0, 104], sizes = [8, 8], strides = [1, 1]} : vector<8x192xf32> to vector<8x8xf32>
    %155 = vector.extract_strided_slice %139 {offsets = [0, 112], sizes = [8, 8], strides = [1, 1]} : vector<8x192xf32> to vector<8x8xf32>
    %156 = vector.extract_strided_slice %139 {offsets = [0, 120], sizes = [8, 8], strides = [1, 1]} : vector<8x192xf32> to vector<8x8xf32>
    %157 = tpu.concatenate %149, %150, %151, %152, %153, %154, %155, %156 in 0 : vector<8x8xf32>, vector<8x8xf32>, vector<8x8xf32>, vector<8x8xf32>, vector<8x8xf32>, vector<8x8xf32>, vector<8x8xf32>, vector<8x8xf32> -> vector<64x8xf32>
    %158 = vector.extract_strided_slice %139 {offsets = [0, 128], sizes = [8, 8], strides = [1, 1]} : vector<8x192xf32> to vector<8x8xf32>
    %159 = vector.extract_strided_slice %139 {offsets = [0, 136], sizes = [8, 8], strides = [1, 1]} : vector<8x192xf32> to vector<8x8xf32>
    %160 = vector.extract_strided_slice %139 {offsets = [0, 144], sizes = [8, 8], strides = [1, 1]} : vector<8x192xf32> to vector<8x8xf32>
    %161 = vector.extract_strided_slice %139 {offsets = [0, 152], sizes = [8, 8], strides = [1, 1]} : vector<8x192xf32> to vector<8x8xf32>
    %162 = vector.extract_strided_slice %139 {offsets = [0, 160], sizes = [8, 8], strides = [1, 1]} : vector<8x192xf32> to vector<8x8xf32>
    %163 = vector.extract_strided_slice %139 {offsets = [0, 168], sizes = [8, 8], strides = [1, 1]} : vector<8x192xf32> to vector<8x8xf32>
    %164 = vector.extract_strided_slice %139 {offsets = [0, 176], sizes = [8, 8], strides = [1, 1]} : vector<8x192xf32> to vector<8x8xf32>
    %165 = vector.extract_strided_slice %139 {offsets = [0, 184], sizes = [8, 8], strides = [1, 1]} : vector<8x192xf32> to vector<8x8xf32>
    %166 = tpu.concatenate %158, %159, %160, %161, %162, %163, %164, %165 in 0 : vector<8x8xf32>, vector<8x8xf32>, vector<8x8xf32>, vector<8x8xf32>, vector<8x8xf32>, vector<8x8xf32>, vector<8x8xf32>, vector<8x8xf32> -> vector<64x8xf32>
    %cst_65 = arith.constant dense<0.000000e+00> : vector<64x64xf32>
    %167 = tpu.matmul %148, %157, %cst_65 {dimension_numbers = #tpu.dot_dimension_numbers<[1], [1], [0], [0], [0, 0, 1, 0], [], []>} : vector<64x8xf32>, vector<64x8xf32>, vector<64x64xf32> -> vector<64x64xf32>
    %168 = arith.addf %167, %3 : vector<64x64xf32>
    %cst_66 = arith.constant dense<0xFF800000> : vector<64xf32>
    %169 = vector.multi_reduction <maximumf>, %168, %cst_66 [1] : vector<64x64xf32> to vector<64xf32>
    %170 = vector.shape_cast %169 : vector<64xf32> to vector<64x1xf32>
    %171 = vector.broadcast %170 : vector<64x1xf32> to vector<64x64xf32>
    %172 = arith.subf %168, %171 : vector<64x64xf32>
    %173 = math.exp %172 : vector<64x64xf32>
    %cst_67 = arith.constant dense<0.000000e+00> : vector<64xf32>
    %174 = vector.multi_reduction <add>, %173, %cst_67 [1] : vector<64x64xf32> to vector<64xf32>
    %175 = vector.shape_cast %174 : vector<64xf32> to vector<64x1xf32>
    %176 = tpu.reciprocal %175 {approx = true} : vector<64x1xf32> -> vector<64x1xf32>
    %177 = vector.broadcast %176 : vector<64x1xf32> to vector<64x64xf32>
    %178 = arith.mulf %173, %177 : vector<64x64xf32>
    %cst_68 = arith.constant dense<0.000000e+00> : vector<64x8xf32>
    %179 = tpu.matmul %178, %166, %cst_68 {dimension_numbers = #tpu.dot_dimension_numbers<[1], [0], [0], [1], [0, 0, 1, 1], [], []>} : vector<64x64xf32>, vector<64x8xf32>, vector<64x8xf32> -> vector<64x8xf32>
    %180 = vector.extract_strided_slice %179 {offsets = [0, 0], sizes = [8, 8], strides = [1, 1]} : vector<64x8xf32> to vector<8x8xf32>
    %181 = vector.extract_strided_slice %179 {offsets = [8, 0], sizes = [8, 8], strides = [1, 1]} : vector<64x8xf32> to vector<8x8xf32>
    %182 = vector.extract_strided_slice %179 {offsets = [16, 0], sizes = [8, 8], strides = [1, 1]} : vector<64x8xf32> to vector<8x8xf32>
    %183 = vector.extract_strided_slice %179 {offsets = [24, 0], sizes = [8, 8], strides = [1, 1]} : vector<64x8xf32> to vector<8x8xf32>
    %184 = vector.extract_strided_slice %179 {offsets = [32, 0], sizes = [8, 8], strides = [1, 1]} : vector<64x8xf32> to vector<8x8xf32>
    %185 = vector.extract_strided_slice %179 {offsets = [40, 0], sizes = [8, 8], strides = [1, 1]} : vector<64x8xf32> to vector<8x8xf32>
    %186 = vector.extract_strided_slice %179 {offsets = [48, 0], sizes = [8, 8], strides = [1, 1]} : vector<64x8xf32> to vector<8x8xf32>
    %187 = vector.extract_strided_slice %179 {offsets = [56, 0], sizes = [8, 8], strides = [1, 1]} : vector<64x8xf32> to vector<8x8xf32>
    %188 = tpu.concatenate %180, %181, %182, %183, %184, %185, %186, %187 in 1 : vector<8x8xf32>, vector<8x8xf32>, vector<8x8xf32>, vector<8x8xf32>, vector<8x8xf32>, vector<8x8xf32>, vector<8x8xf32>, vector<8x8xf32> -> vector<8x64xf32>
    %c1_69 = arith.constant 1 : index
    %c0_70 = arith.constant 0 : index
    %c0_71 = arith.constant 0 : index
    %189 = vector.load %arg5[%c1_69, %c0_70, %c0_71] : memref<4x64x64xf32, #tpu.memory_space<vmem>>, vector<1x64x64xf32>
    %190 = vector.shape_cast %189 : vector<1x64x64xf32> to vector<64x64xf32>
    %cst_72 = arith.constant dense<0.000000e+00> : vector<8x64xf32>
    %191 = tpu.matmul %188, %190, %cst_72 {dimension_numbers = #tpu.dot_dimension_numbers<[1], [0], [0], [1], [0, 0, 1, 1], [], []>} : vector<8x64xf32>, vector<64x64xf32>, vector<8x64xf32> -> vector<8x64xf32>
    %c1_73 = arith.constant 1 : index
    %c0_74 = arith.constant 0 : index
    %c0_75 = arith.constant 0 : index
    %192 = vector.load %arg6[%c1_73, %c0_74, %c0_75] : memref<4x1x64xf32, #tpu.memory_space<vmem>>, vector<1x1x64xf32>
    %193 = vector.shape_cast %192 : vector<1x1x64xf32> to vector<1x64xf32>
    %194 = vector.broadcast %193 : vector<1x64xf32> to vector<8x64xf32>
    %195 = arith.addf %191, %194 : vector<8x64xf32>
    %196 = arith.addf %132, %195 : vector<8x64xf32>
    %c1_76 = arith.constant 1 : index
    %c0_77 = arith.constant 0 : index
    %c0_78 = arith.constant 0 : index
    %197 = vector.load %arg11[%c1_76, %c0_77, %c0_78] : memref<4x1x64xf32, #tpu.memory_space<vmem>>, vector<1x1x64xf32>
    %198 = vector.shape_cast %197 : vector<1x1x64xf32> to vector<1x64xf32>
    %c1_79 = arith.constant 1 : index
    %c0_80 = arith.constant 0 : index
    %c0_81 = arith.constant 0 : index
    %199 = vector.load %arg12[%c1_79, %c0_80, %c0_81] : memref<4x1x64xf32, #tpu.memory_space<vmem>>, vector<1x1x64xf32>
    %200 = vector.shape_cast %199 : vector<1x1x64xf32> to vector<1x64xf32>
    %cst_82 = arith.constant dense<0.000000e+00> : vector<8xf32>
    %201 = vector.multi_reduction <add>, %196, %cst_82 [1] : vector<8x64xf32> to vector<8xf32>
    %202 = vector.shape_cast %201 : vector<8xf32> to vector<8x1xf32>
    %cst_83 = arith.constant 6.400000e+01 : f32
    %203 = vector.broadcast %cst_83 : f32 to vector<8x1xf32>
    %204 = arith.divf %202, %203 : vector<8x1xf32>
    %205 = vector.broadcast %204 : vector<8x1xf32> to vector<8x64xf32>
    %206 = arith.subf %196, %205 : vector<8x64xf32>
    %207 = arith.mulf %206, %206 : vector<8x64xf32>
    %cst_84 = arith.constant dense<0.000000e+00> : vector<8xf32>
    %208 = vector.multi_reduction <add>, %207, %cst_84 [1] : vector<8x64xf32> to vector<8xf32>
    %209 = vector.shape_cast %208 : vector<8xf32> to vector<8x1xf32>
    %cst_85 = arith.constant 6.400000e+01 : f32
    %210 = vector.broadcast %cst_85 : f32 to vector<8x1xf32>
    %211 = arith.divf %209, %210 : vector<8x1xf32>
    %cst_86 = arith.constant 9.99999974E-6 : f32
    %212 = vector.broadcast %cst_86 : f32 to vector<8x1xf32>
    %213 = arith.addf %211, %212 : vector<8x1xf32>
    %214 = math.rsqrt %213 : vector<8x1xf32>
    %215 = vector.broadcast %214 : vector<8x1xf32> to vector<8x64xf32>
    %216 = arith.mulf %206, %215 : vector<8x64xf32>
    %217 = vector.broadcast %198 : vector<1x64xf32> to vector<8x64xf32>
    %218 = arith.mulf %216, %217 : vector<8x64xf32>
    %219 = vector.broadcast %200 : vector<1x64xf32> to vector<8x64xf32>
    %220 = arith.addf %218, %219 : vector<8x64xf32>
    %c1_87 = arith.constant 1 : index
    %c0_88 = arith.constant 0 : index
    %c0_89 = arith.constant 0 : index
    %221 = vector.load %arg7[%c1_87, %c0_88, %c0_89] : memref<4x64x128xf32, #tpu.memory_space<vmem>>, vector<1x64x128xf32>
    %222 = vector.shape_cast %221 : vector<1x64x128xf32> to vector<64x128xf32>
    %cst_90 = arith.constant dense<0.000000e+00> : vector<8x128xf32>
    %223 = tpu.matmul %220, %222, %cst_90 {dimension_numbers = #tpu.dot_dimension_numbers<[1], [0], [0], [1], [0, 0, 1, 1], [], []>} : vector<8x64xf32>, vector<64x128xf32>, vector<8x128xf32> -> vector<8x128xf32>
    %c1_91 = arith.constant 1 : index
    %c0_92 = arith.constant 0 : index
    %c0_93 = arith.constant 0 : index
    %224 = vector.load %arg8[%c1_91, %c0_92, %c0_93] : memref<4x1x128xf32, #tpu.memory_space<vmem>>, vector<1x1x128xf32>
    %225 = vector.shape_cast %224 : vector<1x1x128xf32> to vector<1x128xf32>
    %226 = vector.broadcast %225 : vector<1x128xf32> to vector<8x128xf32>
    %227 = arith.addf %223, %226 : vector<8x128xf32>
    %cst_94 = arith.constant 0.000000e+00 : f32
    %228 = vector.broadcast %cst_94 : f32 to vector<8x128xf32>
    %229 = arith.maximumf %227, %228 : vector<8x128xf32>
    %c1_95 = arith.constant 1 : index
    %c0_96 = arith.constant 0 : index
    %c0_97 = arith.constant 0 : index
    %230 = vector.load %arg9[%c1_95, %c0_96, %c0_97] : memref<4x128x64xf32, #tpu.memory_space<vmem>>, vector<1x128x64xf32>
    %231 = vector.shape_cast %230 : vector<1x128x64xf32> to vector<128x64xf32>
    %cst_98 = arith.constant dense<0.000000e+00> : vector<8x64xf32>
    %232 = tpu.matmul %229, %231, %cst_98 {dimension_numbers = #tpu.dot_dimension_numbers<[1], [0], [0], [1], [0, 0, 1, 1], [], []>} : vector<8x128xf32>, vector<128x64xf32>, vector<8x64xf32> -> vector<8x64xf32>
    %c1_99 = arith.constant 1 : index
    %c0_100 = arith.constant 0 : index
    %c0_101 = arith.constant 0 : index
    %233 = vector.load %arg10[%c1_99, %c0_100, %c0_101] : memref<4x1x64xf32, #tpu.memory_space<vmem>>, vector<1x1x64xf32>
    %234 = vector.shape_cast %233 : vector<1x1x64xf32> to vector<1x64xf32>
    %235 = vector.broadcast %234 : vector<1x64xf32> to vector<8x64xf32>
    %236 = arith.addf %232, %235 : vector<8x64xf32>
    %237 = arith.addf %220, %236 : vector<8x64xf32>
    %c1_102 = arith.constant 1 : index
    %c0_103 = arith.constant 0 : index
    %c0_104 = arith.constant 0 : index
    %238 = vector.load %arg13[%c1_102, %c0_103, %c0_104] : memref<4x1x64xf32, #tpu.memory_space<vmem>>, vector<1x1x64xf32>
    %239 = vector.shape_cast %238 : vector<1x1x64xf32> to vector<1x64xf32>
    %c1_105 = arith.constant 1 : index
    %c0_106 = arith.constant 0 : index
    %c0_107 = arith.constant 0 : index
    %240 = vector.load %arg14[%c1_105, %c0_106, %c0_107] : memref<4x1x64xf32, #tpu.memory_space<vmem>>, vector<1x1x64xf32>
    %241 = vector.shape_cast %240 : vector<1x1x64xf32> to vector<1x64xf32>
    %cst_108 = arith.constant dense<0.000000e+00> : vector<8xf32>
    %242 = vector.multi_reduction <add>, %237, %cst_108 [1] : vector<8x64xf32> to vector<8xf32>
    %243 = vector.shape_cast %242 : vector<8xf32> to vector<8x1xf32>
    %cst_109 = arith.constant 6.400000e+01 : f32
    %244 = vector.broadcast %cst_109 : f32 to vector<8x1xf32>
    %245 = arith.divf %243, %244 : vector<8x1xf32>
    %246 = vector.broadcast %245 : vector<8x1xf32> to vector<8x64xf32>
    %247 = arith.subf %237, %246 : vector<8x64xf32>
    %248 = arith.mulf %247, %247 : vector<8x64xf32>
    %cst_110 = arith.constant dense<0.000000e+00> : vector<8xf32>
    %249 = vector.multi_reduction <add>, %248, %cst_110 [1] : vector<8x64xf32> to vector<8xf32>
    %250 = vector.shape_cast %249 : vector<8xf32> to vector<8x1xf32>
    %cst_111 = arith.constant 6.400000e+01 : f32
    %251 = vector.broadcast %cst_111 : f32 to vector<8x1xf32>
    %252 = arith.divf %250, %251 : vector<8x1xf32>
    %cst_112 = arith.constant 9.99999974E-6 : f32
    %253 = vector.broadcast %cst_112 : f32 to vector<8x1xf32>
    %254 = arith.addf %252, %253 : vector<8x1xf32>
    %255 = math.rsqrt %254 : vector<8x1xf32>
    %256 = vector.broadcast %255 : vector<8x1xf32> to vector<8x64xf32>
    %257 = arith.mulf %247, %256 : vector<8x64xf32>
    %258 = vector.broadcast %239 : vector<1x64xf32> to vector<8x64xf32>
    %259 = arith.mulf %257, %258 : vector<8x64xf32>
    %260 = vector.broadcast %241 : vector<1x64xf32> to vector<8x64xf32>
    %261 = arith.addf %259, %260 : vector<8x64xf32>
    %c2 = arith.constant 2 : index
    %c0_113 = arith.constant 0 : index
    %c0_114 = arith.constant 0 : index
    %262 = vector.load %arg3[%c2, %c0_113, %c0_114] : memref<4x64x192xf32, #tpu.memory_space<vmem>>, vector<1x64x192xf32>
    %263 = vector.shape_cast %262 : vector<1x64x192xf32> to vector<64x192xf32>
    %cst_115 = arith.constant dense<0.000000e+00> : vector<8x192xf32>
    %264 = tpu.matmul %261, %263, %cst_115 {dimension_numbers = #tpu.dot_dimension_numbers<[1], [0], [0], [1], [0, 0, 1, 1], [], []>} : vector<8x64xf32>, vector<64x192xf32>, vector<8x192xf32> -> vector<8x192xf32>
    %c2_116 = arith.constant 2 : index
    %c0_117 = arith.constant 0 : index
    %c0_118 = arith.constant 0 : index
    %265 = vector.load %arg4[%c2_116, %c0_117, %c0_118] : memref<4x1x192xf32, #tpu.memory_space<vmem>>, vector<1x1x192xf32>
    %266 = vector.shape_cast %265 : vector<1x1x192xf32> to vector<1x192xf32>
    %267 = vector.broadcast %266 : vector<1x192xf32> to vector<8x192xf32>
    %268 = arith.addf %264, %267 : vector<8x192xf32>
    %269 = vector.extract_strided_slice %268 {offsets = [0, 0], sizes = [8, 8], strides = [1, 1]} : vector<8x192xf32> to vector<8x8xf32>
    %270 = vector.extract_strided_slice %268 {offsets = [0, 8], sizes = [8, 8], strides = [1, 1]} : vector<8x192xf32> to vector<8x8xf32>
    %271 = vector.extract_strided_slice %268 {offsets = [0, 16], sizes = [8, 8], strides = [1, 1]} : vector<8x192xf32> to vector<8x8xf32>
    %272 = vector.extract_strided_slice %268 {offsets = [0, 24], sizes = [8, 8], strides = [1, 1]} : vector<8x192xf32> to vector<8x8xf32>
    %273 = vector.extract_strided_slice %268 {offsets = [0, 32], sizes = [8, 8], strides = [1, 1]} : vector<8x192xf32> to vector<8x8xf32>
    %274 = vector.extract_strided_slice %268 {offsets = [0, 40], sizes = [8, 8], strides = [1, 1]} : vector<8x192xf32> to vector<8x8xf32>
    %275 = vector.extract_strided_slice %268 {offsets = [0, 48], sizes = [8, 8], strides = [1, 1]} : vector<8x192xf32> to vector<8x8xf32>
    %276 = vector.extract_strided_slice %268 {offsets = [0, 56], sizes = [8, 8], strides = [1, 1]} : vector<8x192xf32> to vector<8x8xf32>
    %277 = tpu.concatenate %269, %270, %271, %272, %273, %274, %275, %276 in 0 : vector<8x8xf32>, vector<8x8xf32>, vector<8x8xf32>, vector<8x8xf32>, vector<8x8xf32>, vector<8x8xf32>, vector<8x8xf32>, vector<8x8xf32> -> vector<64x8xf32>
    %278 = vector.extract_strided_slice %268 {offsets = [0, 64], sizes = [8, 8], strides = [1, 1]} : vector<8x192xf32> to vector<8x8xf32>
    %279 = vector.extract_strided_slice %268 {offsets = [0, 72], sizes = [8, 8], strides = [1, 1]} : vector<8x192xf32> to vector<8x8xf32>
    %280 = vector.extract_strided_slice %268 {offsets = [0, 80], sizes = [8, 8], strides = [1, 1]} : vector<8x192xf32> to vector<8x8xf32>
    %281 = vector.extract_strided_slice %268 {offsets = [0, 88], sizes = [8, 8], strides = [1, 1]} : vector<8x192xf32> to vector<8x8xf32>
    %282 = vector.extract_strided_slice %268 {offsets = [0, 96], sizes = [8, 8], strides = [1, 1]} : vector<8x192xf32> to vector<8x8xf32>
    %283 = vector.extract_strided_slice %268 {offsets = [0, 104], sizes = [8, 8], strides = [1, 1]} : vector<8x192xf32> to vector<8x8xf32>
    %284 = vector.extract_strided_slice %268 {offsets = [0, 112], sizes = [8, 8], strides = [1, 1]} : vector<8x192xf32> to vector<8x8xf32>
    %285 = vector.extract_strided_slice %268 {offsets = [0, 120], sizes = [8, 8], strides = [1, 1]} : vector<8x192xf32> to vector<8x8xf32>
    %286 = tpu.concatenate %278, %279, %280, %281, %282, %283, %284, %285 in 0 : vector<8x8xf32>, vector<8x8xf32>, vector<8x8xf32>, vector<8x8xf32>, vector<8x8xf32>, vector<8x8xf32>, vector<8x8xf32>, vector<8x8xf32> -> vector<64x8xf32>
    %287 = vector.extract_strided_slice %268 {offsets = [0, 128], sizes = [8, 8], strides = [1, 1]} : vector<8x192xf32> to vector<8x8xf32>
    %288 = vector.extract_strided_slice %268 {offsets = [0, 136], sizes = [8, 8], strides = [1, 1]} : vector<8x192xf32> to vector<8x8xf32>
    %289 = vector.extract_strided_slice %268 {offsets = [0, 144], sizes = [8, 8], strides = [1, 1]} : vector<8x192xf32> to vector<8x8xf32>
    %290 = vector.extract_strided_slice %268 {offsets = [0, 152], sizes = [8, 8], strides = [1, 1]} : vector<8x192xf32> to vector<8x8xf32>
    %291 = vector.extract_strided_slice %268 {offsets = [0, 160], sizes = [8, 8], strides = [1, 1]} : vector<8x192xf32> to vector<8x8xf32>
    %292 = vector.extract_strided_slice %268 {offsets = [0, 168], sizes = [8, 8], strides = [1, 1]} : vector<8x192xf32> to vector<8x8xf32>
    %293 = vector.extract_strided_slice %268 {offsets = [0, 176], sizes = [8, 8], strides = [1, 1]} : vector<8x192xf32> to vector<8x8xf32>
    %294 = vector.extract_strided_slice %268 {offsets = [0, 184], sizes = [8, 8], strides = [1, 1]} : vector<8x192xf32> to vector<8x8xf32>
    %295 = tpu.concatenate %287, %288, %289, %290, %291, %292, %293, %294 in 0 : vector<8x8xf32>, vector<8x8xf32>, vector<8x8xf32>, vector<8x8xf32>, vector<8x8xf32>, vector<8x8xf32>, vector<8x8xf32>, vector<8x8xf32> -> vector<64x8xf32>
    %cst_119 = arith.constant dense<0.000000e+00> : vector<64x64xf32>
    %296 = tpu.matmul %277, %286, %cst_119 {dimension_numbers = #tpu.dot_dimension_numbers<[1], [1], [0], [0], [0, 0, 1, 0], [], []>} : vector<64x8xf32>, vector<64x8xf32>, vector<64x64xf32> -> vector<64x64xf32>
    %297 = arith.addf %296, %3 : vector<64x64xf32>
    %cst_120 = arith.constant dense<0xFF800000> : vector<64xf32>
    %298 = vector.multi_reduction <maximumf>, %297, %cst_120 [1] : vector<64x64xf32> to vector<64xf32>
    %299 = vector.shape_cast %298 : vector<64xf32> to vector<64x1xf32>
    %300 = vector.broadcast %299 : vector<64x1xf32> to vector<64x64xf32>
    %301 = arith.subf %297, %300 : vector<64x64xf32>
    %302 = math.exp %301 : vector<64x64xf32>
    %cst_121 = arith.constant dense<0.000000e+00> : vector<64xf32>
    %303 = vector.multi_reduction <add>, %302, %cst_121 [1] : vector<64x64xf32> to vector<64xf32>
    %304 = vector.shape_cast %303 : vector<64xf32> to vector<64x1xf32>
    %305 = tpu.reciprocal %304 {approx = true} : vector<64x1xf32> -> vector<64x1xf32>
    %306 = vector.broadcast %305 : vector<64x1xf32> to vector<64x64xf32>
    %307 = arith.mulf %302, %306 : vector<64x64xf32>
    %cst_122 = arith.constant dense<0.000000e+00> : vector<64x8xf32>
    %308 = tpu.matmul %307, %295, %cst_122 {dimension_numbers = #tpu.dot_dimension_numbers<[1], [0], [0], [1], [0, 0, 1, 1], [], []>} : vector<64x64xf32>, vector<64x8xf32>, vector<64x8xf32> -> vector<64x8xf32>
    %309 = vector.extract_strided_slice %308 {offsets = [0, 0], sizes = [8, 8], strides = [1, 1]} : vector<64x8xf32> to vector<8x8xf32>
    %310 = vector.extract_strided_slice %308 {offsets = [8, 0], sizes = [8, 8], strides = [1, 1]} : vector<64x8xf32> to vector<8x8xf32>
    %311 = vector.extract_strided_slice %308 {offsets = [16, 0], sizes = [8, 8], strides = [1, 1]} : vector<64x8xf32> to vector<8x8xf32>
    %312 = vector.extract_strided_slice %308 {offsets = [24, 0], sizes = [8, 8], strides = [1, 1]} : vector<64x8xf32> to vector<8x8xf32>
    %313 = vector.extract_strided_slice %308 {offsets = [32, 0], sizes = [8, 8], strides = [1, 1]} : vector<64x8xf32> to vector<8x8xf32>
    %314 = vector.extract_strided_slice %308 {offsets = [40, 0], sizes = [8, 8], strides = [1, 1]} : vector<64x8xf32> to vector<8x8xf32>
    %315 = vector.extract_strided_slice %308 {offsets = [48, 0], sizes = [8, 8], strides = [1, 1]} : vector<64x8xf32> to vector<8x8xf32>
    %316 = vector.extract_strided_slice %308 {offsets = [56, 0], sizes = [8, 8], strides = [1, 1]} : vector<64x8xf32> to vector<8x8xf32>
    %317 = tpu.concatenate %309, %310, %311, %312, %313, %314, %315, %316 in 1 : vector<8x8xf32>, vector<8x8xf32>, vector<8x8xf32>, vector<8x8xf32>, vector<8x8xf32>, vector<8x8xf32>, vector<8x8xf32>, vector<8x8xf32> -> vector<8x64xf32>
    %c2_123 = arith.constant 2 : index
    %c0_124 = arith.constant 0 : index
    %c0_125 = arith.constant 0 : index
    %318 = vector.load %arg5[%c2_123, %c0_124, %c0_125] : memref<4x64x64xf32, #tpu.memory_space<vmem>>, vector<1x64x64xf32>
    %319 = vector.shape_cast %318 : vector<1x64x64xf32> to vector<64x64xf32>
    %cst_126 = arith.constant dense<0.000000e+00> : vector<8x64xf32>
    %320 = tpu.matmul %317, %319, %cst_126 {dimension_numbers = #tpu.dot_dimension_numbers<[1], [0], [0], [1], [0, 0, 1, 1], [], []>} : vector<8x64xf32>, vector<64x64xf32>, vector<8x64xf32> -> vector<8x64xf32>
    %c2_127 = arith.constant 2 : index
    %c0_128 = arith.constant 0 : index
    %c0_129 = arith.constant 0 : index
    %321 = vector.load %arg6[%c2_127, %c0_128, %c0_129] : memref<4x1x64xf32, #tpu.memory_space<vmem>>, vector<1x1x64xf32>
    %322 = vector.shape_cast %321 : vector<1x1x64xf32> to vector<1x64xf32>
    %323 = vector.broadcast %322 : vector<1x64xf32> to vector<8x64xf32>
    %324 = arith.addf %320, %323 : vector<8x64xf32>
    %325 = arith.addf %261, %324 : vector<8x64xf32>
    %c2_130 = arith.constant 2 : index
    %c0_131 = arith.constant 0 : index
    %c0_132 = arith.constant 0 : index
    %326 = vector.load %arg11[%c2_130, %c0_131, %c0_132] : memref<4x1x64xf32, #tpu.memory_space<vmem>>, vector<1x1x64xf32>
    %327 = vector.shape_cast %326 : vector<1x1x64xf32> to vector<1x64xf32>
    %c2_133 = arith.constant 2 : index
    %c0_134 = arith.constant 0 : index
    %c0_135 = arith.constant 0 : index
    %328 = vector.load %arg12[%c2_133, %c0_134, %c0_135] : memref<4x1x64xf32, #tpu.memory_space<vmem>>, vector<1x1x64xf32>
    %329 = vector.shape_cast %328 : vector<1x1x64xf32> to vector<1x64xf32>
    %cst_136 = arith.constant dense<0.000000e+00> : vector<8xf32>
    %330 = vector.multi_reduction <add>, %325, %cst_136 [1] : vector<8x64xf32> to vector<8xf32>
    %331 = vector.shape_cast %330 : vector<8xf32> to vector<8x1xf32>
    %cst_137 = arith.constant 6.400000e+01 : f32
    %332 = vector.broadcast %cst_137 : f32 to vector<8x1xf32>
    %333 = arith.divf %331, %332 : vector<8x1xf32>
    %334 = vector.broadcast %333 : vector<8x1xf32> to vector<8x64xf32>
    %335 = arith.subf %325, %334 : vector<8x64xf32>
    %336 = arith.mulf %335, %335 : vector<8x64xf32>
    %cst_138 = arith.constant dense<0.000000e+00> : vector<8xf32>
    %337 = vector.multi_reduction <add>, %336, %cst_138 [1] : vector<8x64xf32> to vector<8xf32>
    %338 = vector.shape_cast %337 : vector<8xf32> to vector<8x1xf32>
    %cst_139 = arith.constant 6.400000e+01 : f32
    %339 = vector.broadcast %cst_139 : f32 to vector<8x1xf32>
    %340 = arith.divf %338, %339 : vector<8x1xf32>
    %cst_140 = arith.constant 9.99999974E-6 : f32
    %341 = vector.broadcast %cst_140 : f32 to vector<8x1xf32>
    %342 = arith.addf %340, %341 : vector<8x1xf32>
    %343 = math.rsqrt %342 : vector<8x1xf32>
    %344 = vector.broadcast %343 : vector<8x1xf32> to vector<8x64xf32>
    %345 = arith.mulf %335, %344 : vector<8x64xf32>
    %346 = vector.broadcast %327 : vector<1x64xf32> to vector<8x64xf32>
    %347 = arith.mulf %345, %346 : vector<8x64xf32>
    %348 = vector.broadcast %329 : vector<1x64xf32> to vector<8x64xf32>
    %349 = arith.addf %347, %348 : vector<8x64xf32>
    %c2_141 = arith.constant 2 : index
    %c0_142 = arith.constant 0 : index
    %c0_143 = arith.constant 0 : index
    %350 = vector.load %arg7[%c2_141, %c0_142, %c0_143] : memref<4x64x128xf32, #tpu.memory_space<vmem>>, vector<1x64x128xf32>
    %351 = vector.shape_cast %350 : vector<1x64x128xf32> to vector<64x128xf32>
    %cst_144 = arith.constant dense<0.000000e+00> : vector<8x128xf32>
    %352 = tpu.matmul %349, %351, %cst_144 {dimension_numbers = #tpu.dot_dimension_numbers<[1], [0], [0], [1], [0, 0, 1, 1], [], []>} : vector<8x64xf32>, vector<64x128xf32>, vector<8x128xf32> -> vector<8x128xf32>
    %c2_145 = arith.constant 2 : index
    %c0_146 = arith.constant 0 : index
    %c0_147 = arith.constant 0 : index
    %353 = vector.load %arg8[%c2_145, %c0_146, %c0_147] : memref<4x1x128xf32, #tpu.memory_space<vmem>>, vector<1x1x128xf32>
    %354 = vector.shape_cast %353 : vector<1x1x128xf32> to vector<1x128xf32>
    %355 = vector.broadcast %354 : vector<1x128xf32> to vector<8x128xf32>
    %356 = arith.addf %352, %355 : vector<8x128xf32>
    %cst_148 = arith.constant 0.000000e+00 : f32
    %357 = vector.broadcast %cst_148 : f32 to vector<8x128xf32>
    %358 = arith.maximumf %356, %357 : vector<8x128xf32>
    %c2_149 = arith.constant 2 : index
    %c0_150 = arith.constant 0 : index
    %c0_151 = arith.constant 0 : index
    %359 = vector.load %arg9[%c2_149, %c0_150, %c0_151] : memref<4x128x64xf32, #tpu.memory_space<vmem>>, vector<1x128x64xf32>
    %360 = vector.shape_cast %359 : vector<1x128x64xf32> to vector<128x64xf32>
    %cst_152 = arith.constant dense<0.000000e+00> : vector<8x64xf32>
    %361 = tpu.matmul %358, %360, %cst_152 {dimension_numbers = #tpu.dot_dimension_numbers<[1], [0], [0], [1], [0, 0, 1, 1], [], []>} : vector<8x128xf32>, vector<128x64xf32>, vector<8x64xf32> -> vector<8x64xf32>
    %c2_153 = arith.constant 2 : index
    %c0_154 = arith.constant 0 : index
    %c0_155 = arith.constant 0 : index
    %362 = vector.load %arg10[%c2_153, %c0_154, %c0_155] : memref<4x1x64xf32, #tpu.memory_space<vmem>>, vector<1x1x64xf32>
    %363 = vector.shape_cast %362 : vector<1x1x64xf32> to vector<1x64xf32>
    %364 = vector.broadcast %363 : vector<1x64xf32> to vector<8x64xf32>
    %365 = arith.addf %361, %364 : vector<8x64xf32>
    %366 = arith.addf %349, %365 : vector<8x64xf32>
    %c2_156 = arith.constant 2 : index
    %c0_157 = arith.constant 0 : index
    %c0_158 = arith.constant 0 : index
    %367 = vector.load %arg13[%c2_156, %c0_157, %c0_158] : memref<4x1x64xf32, #tpu.memory_space<vmem>>, vector<1x1x64xf32>
    %368 = vector.shape_cast %367 : vector<1x1x64xf32> to vector<1x64xf32>
    %c2_159 = arith.constant 2 : index
    %c0_160 = arith.constant 0 : index
    %c0_161 = arith.constant 0 : index
    %369 = vector.load %arg14[%c2_159, %c0_160, %c0_161] : memref<4x1x64xf32, #tpu.memory_space<vmem>>, vector<1x1x64xf32>
    %370 = vector.shape_cast %369 : vector<1x1x64xf32> to vector<1x64xf32>
    %cst_162 = arith.constant dense<0.000000e+00> : vector<8xf32>
    %371 = vector.multi_reduction <add>, %366, %cst_162 [1] : vector<8x64xf32> to vector<8xf32>
    %372 = vector.shape_cast %371 : vector<8xf32> to vector<8x1xf32>
    %cst_163 = arith.constant 6.400000e+01 : f32
    %373 = vector.broadcast %cst_163 : f32 to vector<8x1xf32>
    %374 = arith.divf %372, %373 : vector<8x1xf32>
    %375 = vector.broadcast %374 : vector<8x1xf32> to vector<8x64xf32>
    %376 = arith.subf %366, %375 : vector<8x64xf32>
    %377 = arith.mulf %376, %376 : vector<8x64xf32>
    %cst_164 = arith.constant dense<0.000000e+00> : vector<8xf32>
    %378 = vector.multi_reduction <add>, %377, %cst_164 [1] : vector<8x64xf32> to vector<8xf32>
    %379 = vector.shape_cast %378 : vector<8xf32> to vector<8x1xf32>
    %cst_165 = arith.constant 6.400000e+01 : f32
    %380 = vector.broadcast %cst_165 : f32 to vector<8x1xf32>
    %381 = arith.divf %379, %380 : vector<8x1xf32>
    %cst_166 = arith.constant 9.99999974E-6 : f32
    %382 = vector.broadcast %cst_166 : f32 to vector<8x1xf32>
    %383 = arith.addf %381, %382 : vector<8x1xf32>
    %384 = math.rsqrt %383 : vector<8x1xf32>
    %385 = vector.broadcast %384 : vector<8x1xf32> to vector<8x64xf32>
    %386 = arith.mulf %376, %385 : vector<8x64xf32>
    %387 = vector.broadcast %368 : vector<1x64xf32> to vector<8x64xf32>
    %388 = arith.mulf %386, %387 : vector<8x64xf32>
    %389 = vector.broadcast %370 : vector<1x64xf32> to vector<8x64xf32>
    %390 = arith.addf %388, %389 : vector<8x64xf32>
    %c3 = arith.constant 3 : index
    %c0_167 = arith.constant 0 : index
    %c0_168 = arith.constant 0 : index
    %391 = vector.load %arg3[%c3, %c0_167, %c0_168] : memref<4x64x192xf32, #tpu.memory_space<vmem>>, vector<1x64x192xf32>
    %392 = vector.shape_cast %391 : vector<1x64x192xf32> to vector<64x192xf32>
    %cst_169 = arith.constant dense<0.000000e+00> : vector<8x192xf32>
    %393 = tpu.matmul %390, %392, %cst_169 {dimension_numbers = #tpu.dot_dimension_numbers<[1], [0], [0], [1], [0, 0, 1, 1], [], []>} : vector<8x64xf32>, vector<64x192xf32>, vector<8x192xf32> -> vector<8x192xf32>
    %c3_170 = arith.constant 3 : index
    %c0_171 = arith.constant 0 : index
    %c0_172 = arith.constant 0 : index
    %394 = vector.load %arg4[%c3_170, %c0_171, %c0_172] : memref<4x1x192xf32, #tpu.memory_space<vmem>>, vector<1x1x192xf32>
    %395 = vector.shape_cast %394 : vector<1x1x192xf32> to vector<1x192xf32>
    %396 = vector.broadcast %395 : vector<1x192xf32> to vector<8x192xf32>
    %397 = arith.addf %393, %396 : vector<8x192xf32>
    %398 = vector.extract_strided_slice %397 {offsets = [0, 0], sizes = [8, 8], strides = [1, 1]} : vector<8x192xf32> to vector<8x8xf32>
    %399 = vector.extract_strided_slice %397 {offsets = [0, 8], sizes = [8, 8], strides = [1, 1]} : vector<8x192xf32> to vector<8x8xf32>
    %400 = vector.extract_strided_slice %397 {offsets = [0, 16], sizes = [8, 8], strides = [1, 1]} : vector<8x192xf32> to vector<8x8xf32>
    %401 = vector.extract_strided_slice %397 {offsets = [0, 24], sizes = [8, 8], strides = [1, 1]} : vector<8x192xf32> to vector<8x8xf32>
    %402 = vector.extract_strided_slice %397 {offsets = [0, 32], sizes = [8, 8], strides = [1, 1]} : vector<8x192xf32> to vector<8x8xf32>
    %403 = vector.extract_strided_slice %397 {offsets = [0, 40], sizes = [8, 8], strides = [1, 1]} : vector<8x192xf32> to vector<8x8xf32>
    %404 = vector.extract_strided_slice %397 {offsets = [0, 48], sizes = [8, 8], strides = [1, 1]} : vector<8x192xf32> to vector<8x8xf32>
    %405 = vector.extract_strided_slice %397 {offsets = [0, 56], sizes = [8, 8], strides = [1, 1]} : vector<8x192xf32> to vector<8x8xf32>
    %406 = tpu.concatenate %398, %399, %400, %401, %402, %403, %404, %405 in 0 : vector<8x8xf32>, vector<8x8xf32>, vector<8x8xf32>, vector<8x8xf32>, vector<8x8xf32>, vector<8x8xf32>, vector<8x8xf32>, vector<8x8xf32> -> vector<64x8xf32>
    %407 = vector.extract_strided_slice %397 {offsets = [0, 64], sizes = [8, 8], strides = [1, 1]} : vector<8x192xf32> to vector<8x8xf32>
    %408 = vector.extract_strided_slice %397 {offsets = [0, 72], sizes = [8, 8], strides = [1, 1]} : vector<8x192xf32> to vector<8x8xf32>
    %409 = vector.extract_strided_slice %397 {offsets = [0, 80], sizes = [8, 8], strides = [1, 1]} : vector<8x192xf32> to vector<8x8xf32>
    %410 = vector.extract_strided_slice %397 {offsets = [0, 88], sizes = [8, 8], strides = [1, 1]} : vector<8x192xf32> to vector<8x8xf32>
    %411 = vector.extract_strided_slice %397 {offsets = [0, 96], sizes = [8, 8], strides = [1, 1]} : vector<8x192xf32> to vector<8x8xf32>
    %412 = vector.extract_strided_slice %397 {offsets = [0, 104], sizes = [8, 8], strides = [1, 1]} : vector<8x192xf32> to vector<8x8xf32>
    %413 = vector.extract_strided_slice %397 {offsets = [0, 112], sizes = [8, 8], strides = [1, 1]} : vector<8x192xf32> to vector<8x8xf32>
    %414 = vector.extract_strided_slice %397 {offsets = [0, 120], sizes = [8, 8], strides = [1, 1]} : vector<8x192xf32> to vector<8x8xf32>
    %415 = tpu.concatenate %407, %408, %409, %410, %411, %412, %413, %414 in 0 : vector<8x8xf32>, vector<8x8xf32>, vector<8x8xf32>, vector<8x8xf32>, vector<8x8xf32>, vector<8x8xf32>, vector<8x8xf32>, vector<8x8xf32> -> vector<64x8xf32>
    %416 = vector.extract_strided_slice %397 {offsets = [0, 128], sizes = [8, 8], strides = [1, 1]} : vector<8x192xf32> to vector<8x8xf32>
    %417 = vector.extract_strided_slice %397 {offsets = [0, 136], sizes = [8, 8], strides = [1, 1]} : vector<8x192xf32> to vector<8x8xf32>
    %418 = vector.extract_strided_slice %397 {offsets = [0, 144], sizes = [8, 8], strides = [1, 1]} : vector<8x192xf32> to vector<8x8xf32>
    %419 = vector.extract_strided_slice %397 {offsets = [0, 152], sizes = [8, 8], strides = [1, 1]} : vector<8x192xf32> to vector<8x8xf32>
    %420 = vector.extract_strided_slice %397 {offsets = [0, 160], sizes = [8, 8], strides = [1, 1]} : vector<8x192xf32> to vector<8x8xf32>
    %421 = vector.extract_strided_slice %397 {offsets = [0, 168], sizes = [8, 8], strides = [1, 1]} : vector<8x192xf32> to vector<8x8xf32>
    %422 = vector.extract_strided_slice %397 {offsets = [0, 176], sizes = [8, 8], strides = [1, 1]} : vector<8x192xf32> to vector<8x8xf32>
    %423 = vector.extract_strided_slice %397 {offsets = [0, 184], sizes = [8, 8], strides = [1, 1]} : vector<8x192xf32> to vector<8x8xf32>
    %424 = tpu.concatenate %416, %417, %418, %419, %420, %421, %422, %423 in 0 : vector<8x8xf32>, vector<8x8xf32>, vector<8x8xf32>, vector<8x8xf32>, vector<8x8xf32>, vector<8x8xf32>, vector<8x8xf32>, vector<8x8xf32> -> vector<64x8xf32>
    %cst_173 = arith.constant dense<0.000000e+00> : vector<64x64xf32>
    %425 = tpu.matmul %406, %415, %cst_173 {dimension_numbers = #tpu.dot_dimension_numbers<[1], [1], [0], [0], [0, 0, 1, 0], [], []>} : vector<64x8xf32>, vector<64x8xf32>, vector<64x64xf32> -> vector<64x64xf32>
    %426 = arith.addf %425, %3 : vector<64x64xf32>
    %cst_174 = arith.constant dense<0xFF800000> : vector<64xf32>
    %427 = vector.multi_reduction <maximumf>, %426, %cst_174 [1] : vector<64x64xf32> to vector<64xf32>
    %428 = vector.shape_cast %427 : vector<64xf32> to vector<64x1xf32>
    %429 = vector.broadcast %428 : vector<64x1xf32> to vector<64x64xf32>
    %430 = arith.subf %426, %429 : vector<64x64xf32>
    %431 = math.exp %430 : vector<64x64xf32>
    %cst_175 = arith.constant dense<0.000000e+00> : vector<64xf32>
    %432 = vector.multi_reduction <add>, %431, %cst_175 [1] : vector<64x64xf32> to vector<64xf32>
    %433 = vector.shape_cast %432 : vector<64xf32> to vector<64x1xf32>
    %434 = tpu.reciprocal %433 {approx = true} : vector<64x1xf32> -> vector<64x1xf32>
    %435 = vector.broadcast %434 : vector<64x1xf32> to vector<64x64xf32>
    %436 = arith.mulf %431, %435 : vector<64x64xf32>
    %cst_176 = arith.constant dense<0.000000e+00> : vector<64x8xf32>
    %437 = tpu.matmul %436, %424, %cst_176 {dimension_numbers = #tpu.dot_dimension_numbers<[1], [0], [0], [1], [0, 0, 1, 1], [], []>} : vector<64x64xf32>, vector<64x8xf32>, vector<64x8xf32> -> vector<64x8xf32>
    %438 = vector.extract_strided_slice %437 {offsets = [0, 0], sizes = [8, 8], strides = [1, 1]} : vector<64x8xf32> to vector<8x8xf32>
    %439 = vector.extract_strided_slice %437 {offsets = [8, 0], sizes = [8, 8], strides = [1, 1]} : vector<64x8xf32> to vector<8x8xf32>
    %440 = vector.extract_strided_slice %437 {offsets = [16, 0], sizes = [8, 8], strides = [1, 1]} : vector<64x8xf32> to vector<8x8xf32>
    %441 = vector.extract_strided_slice %437 {offsets = [24, 0], sizes = [8, 8], strides = [1, 1]} : vector<64x8xf32> to vector<8x8xf32>
    %442 = vector.extract_strided_slice %437 {offsets = [32, 0], sizes = [8, 8], strides = [1, 1]} : vector<64x8xf32> to vector<8x8xf32>
    %443 = vector.extract_strided_slice %437 {offsets = [40, 0], sizes = [8, 8], strides = [1, 1]} : vector<64x8xf32> to vector<8x8xf32>
    %444 = vector.extract_strided_slice %437 {offsets = [48, 0], sizes = [8, 8], strides = [1, 1]} : vector<64x8xf32> to vector<8x8xf32>
    %445 = vector.extract_strided_slice %437 {offsets = [56, 0], sizes = [8, 8], strides = [1, 1]} : vector<64x8xf32> to vector<8x8xf32>
    %446 = tpu.concatenate %438, %439, %440, %441, %442, %443, %444, %445 in 1 : vector<8x8xf32>, vector<8x8xf32>, vector<8x8xf32>, vector<8x8xf32>, vector<8x8xf32>, vector<8x8xf32>, vector<8x8xf32>, vector<8x8xf32> -> vector<8x64xf32>
    %c3_177 = arith.constant 3 : index
    %c0_178 = arith.constant 0 : index
    %c0_179 = arith.constant 0 : index
    %447 = vector.load %arg5[%c3_177, %c0_178, %c0_179] : memref<4x64x64xf32, #tpu.memory_space<vmem>>, vector<1x64x64xf32>
    %448 = vector.shape_cast %447 : vector<1x64x64xf32> to vector<64x64xf32>
    %cst_180 = arith.constant dense<0.000000e+00> : vector<8x64xf32>
    %449 = tpu.matmul %446, %448, %cst_180 {dimension_numbers = #tpu.dot_dimension_numbers<[1], [0], [0], [1], [0, 0, 1, 1], [], []>} : vector<8x64xf32>, vector<64x64xf32>, vector<8x64xf32> -> vector<8x64xf32>
    %c3_181 = arith.constant 3 : index
    %c0_182 = arith.constant 0 : index
    %c0_183 = arith.constant 0 : index
    %450 = vector.load %arg6[%c3_181, %c0_182, %c0_183] : memref<4x1x64xf32, #tpu.memory_space<vmem>>, vector<1x1x64xf32>
    %451 = vector.shape_cast %450 : vector<1x1x64xf32> to vector<1x64xf32>
    %452 = vector.broadcast %451 : vector<1x64xf32> to vector<8x64xf32>
    %453 = arith.addf %449, %452 : vector<8x64xf32>
    %454 = arith.addf %390, %453 : vector<8x64xf32>
    %c3_184 = arith.constant 3 : index
    %c0_185 = arith.constant 0 : index
    %c0_186 = arith.constant 0 : index
    %455 = vector.load %arg11[%c3_184, %c0_185, %c0_186] : memref<4x1x64xf32, #tpu.memory_space<vmem>>, vector<1x1x64xf32>
    %456 = vector.shape_cast %455 : vector<1x1x64xf32> to vector<1x64xf32>
    %c3_187 = arith.constant 3 : index
    %c0_188 = arith.constant 0 : index
    %c0_189 = arith.constant 0 : index
    %457 = vector.load %arg12[%c3_187, %c0_188, %c0_189] : memref<4x1x64xf32, #tpu.memory_space<vmem>>, vector<1x1x64xf32>
    %458 = vector.shape_cast %457 : vector<1x1x64xf32> to vector<1x64xf32>
    %cst_190 = arith.constant dense<0.000000e+00> : vector<8xf32>
    %459 = vector.multi_reduction <add>, %454, %cst_190 [1] : vector<8x64xf32> to vector<8xf32>
    %460 = vector.shape_cast %459 : vector<8xf32> to vector<8x1xf32>
    %cst_191 = arith.constant 6.400000e+01 : f32
    %461 = vector.broadcast %cst_191 : f32 to vector<8x1xf32>
    %462 = arith.divf %460, %461 : vector<8x1xf32>
    %463 = vector.broadcast %462 : vector<8x1xf32> to vector<8x64xf32>
    %464 = arith.subf %454, %463 : vector<8x64xf32>
    %465 = arith.mulf %464, %464 : vector<8x64xf32>
    %cst_192 = arith.constant dense<0.000000e+00> : vector<8xf32>
    %466 = vector.multi_reduction <add>, %465, %cst_192 [1] : vector<8x64xf32> to vector<8xf32>
    %467 = vector.shape_cast %466 : vector<8xf32> to vector<8x1xf32>
    %cst_193 = arith.constant 6.400000e+01 : f32
    %468 = vector.broadcast %cst_193 : f32 to vector<8x1xf32>
    %469 = arith.divf %467, %468 : vector<8x1xf32>
    %cst_194 = arith.constant 9.99999974E-6 : f32
    %470 = vector.broadcast %cst_194 : f32 to vector<8x1xf32>
    %471 = arith.addf %469, %470 : vector<8x1xf32>
    %472 = math.rsqrt %471 : vector<8x1xf32>
    %473 = vector.broadcast %472 : vector<8x1xf32> to vector<8x64xf32>
    %474 = arith.mulf %464, %473 : vector<8x64xf32>
    %475 = vector.broadcast %456 : vector<1x64xf32> to vector<8x64xf32>
    %476 = arith.mulf %474, %475 : vector<8x64xf32>
    %477 = vector.broadcast %458 : vector<1x64xf32> to vector<8x64xf32>
    %478 = arith.addf %476, %477 : vector<8x64xf32>
    %c3_195 = arith.constant 3 : index
    %c0_196 = arith.constant 0 : index
    %c0_197 = arith.constant 0 : index
    %479 = vector.load %arg7[%c3_195, %c0_196, %c0_197] : memref<4x64x128xf32, #tpu.memory_space<vmem>>, vector<1x64x128xf32>
    %480 = vector.shape_cast %479 : vector<1x64x128xf32> to vector<64x128xf32>
    %cst_198 = arith.constant dense<0.000000e+00> : vector<8x128xf32>
    %481 = tpu.matmul %478, %480, %cst_198 {dimension_numbers = #tpu.dot_dimension_numbers<[1], [0], [0], [1], [0, 0, 1, 1], [], []>} : vector<8x64xf32>, vector<64x128xf32>, vector<8x128xf32> -> vector<8x128xf32>
    %c3_199 = arith.constant 3 : index
    %c0_200 = arith.constant 0 : index
    %c0_201 = arith.constant 0 : index
    %482 = vector.load %arg8[%c3_199, %c0_200, %c0_201] : memref<4x1x128xf32, #tpu.memory_space<vmem>>, vector<1x1x128xf32>
    %483 = vector.shape_cast %482 : vector<1x1x128xf32> to vector<1x128xf32>
    %484 = vector.broadcast %483 : vector<1x128xf32> to vector<8x128xf32>
    %485 = arith.addf %481, %484 : vector<8x128xf32>
    %cst_202 = arith.constant 0.000000e+00 : f32
    %486 = vector.broadcast %cst_202 : f32 to vector<8x128xf32>
    %487 = arith.maximumf %485, %486 : vector<8x128xf32>
    %c3_203 = arith.constant 3 : index
    %c0_204 = arith.constant 0 : index
    %c0_205 = arith.constant 0 : index
    %488 = vector.load %arg9[%c3_203, %c0_204, %c0_205] : memref<4x128x64xf32, #tpu.memory_space<vmem>>, vector<1x128x64xf32>
    %489 = vector.shape_cast %488 : vector<1x128x64xf32> to vector<128x64xf32>
    %cst_206 = arith.constant dense<0.000000e+00> : vector<8x64xf32>
    %490 = tpu.matmul %487, %489, %cst_206 {dimension_numbers = #tpu.dot_dimension_numbers<[1], [0], [0], [1], [0, 0, 1, 1], [], []>} : vector<8x128xf32>, vector<128x64xf32>, vector<8x64xf32> -> vector<8x64xf32>
    %c3_207 = arith.constant 3 : index
    %c0_208 = arith.constant 0 : index
    %c0_209 = arith.constant 0 : index
    %491 = vector.load %arg10[%c3_207, %c0_208, %c0_209] : memref<4x1x64xf32, #tpu.memory_space<vmem>>, vector<1x1x64xf32>
    %492 = vector.shape_cast %491 : vector<1x1x64xf32> to vector<1x64xf32>
    %493 = vector.broadcast %492 : vector<1x64xf32> to vector<8x64xf32>
    %494 = arith.addf %490, %493 : vector<8x64xf32>
    %495 = arith.addf %478, %494 : vector<8x64xf32>
    %c3_210 = arith.constant 3 : index
    %c0_211 = arith.constant 0 : index
    %c0_212 = arith.constant 0 : index
    %496 = vector.load %arg13[%c3_210, %c0_211, %c0_212] : memref<4x1x64xf32, #tpu.memory_space<vmem>>, vector<1x1x64xf32>
    %497 = vector.shape_cast %496 : vector<1x1x64xf32> to vector<1x64xf32>
    %c3_213 = arith.constant 3 : index
    %c0_214 = arith.constant 0 : index
    %c0_215 = arith.constant 0 : index
    %498 = vector.load %arg14[%c3_213, %c0_214, %c0_215] : memref<4x1x64xf32, #tpu.memory_space<vmem>>, vector<1x1x64xf32>
    %499 = vector.shape_cast %498 : vector<1x1x64xf32> to vector<1x64xf32>
    %cst_216 = arith.constant dense<0.000000e+00> : vector<8xf32>
    %500 = vector.multi_reduction <add>, %495, %cst_216 [1] : vector<8x64xf32> to vector<8xf32>
    %501 = vector.shape_cast %500 : vector<8xf32> to vector<8x1xf32>
    %cst_217 = arith.constant 6.400000e+01 : f32
    %502 = vector.broadcast %cst_217 : f32 to vector<8x1xf32>
    %503 = arith.divf %501, %502 : vector<8x1xf32>
    %504 = vector.broadcast %503 : vector<8x1xf32> to vector<8x64xf32>
    %505 = arith.subf %495, %504 : vector<8x64xf32>
    %506 = arith.mulf %505, %505 : vector<8x64xf32>
    %cst_218 = arith.constant dense<0.000000e+00> : vector<8xf32>
    %507 = vector.multi_reduction <add>, %506, %cst_218 [1] : vector<8x64xf32> to vector<8xf32>
    %508 = vector.shape_cast %507 : vector<8xf32> to vector<8x1xf32>
    %cst_219 = arith.constant 6.400000e+01 : f32
    %509 = vector.broadcast %cst_219 : f32 to vector<8x1xf32>
    %510 = arith.divf %508, %509 : vector<8x1xf32>
    %cst_220 = arith.constant 9.99999974E-6 : f32
    %511 = vector.broadcast %cst_220 : f32 to vector<8x1xf32>
    %512 = arith.addf %510, %511 : vector<8x1xf32>
    %513 = math.rsqrt %512 : vector<8x1xf32>
    %514 = vector.broadcast %513 : vector<8x1xf32> to vector<8x64xf32>
    %515 = arith.mulf %505, %514 : vector<8x64xf32>
    %516 = vector.broadcast %497 : vector<1x64xf32> to vector<8x64xf32>
    %517 = arith.mulf %515, %516 : vector<8x64xf32>
    %518 = vector.broadcast %499 : vector<1x64xf32> to vector<8x64xf32>
    %519 = arith.addf %517, %518 : vector<8x64xf32>
    %c0_221 = arith.constant 0 : index
    %c0_222 = arith.constant 0 : index
    %c0_223 = arith.constant 0 : index
    %520 = vector.load %arg15[%c0_221, %c0_222, %c0_223] : memref<1x8x64xf32, #tpu.memory_space<vmem>>, vector<1x8x64xf32>
    %521 = vector.shape_cast %520 : vector<1x8x64xf32> to vector<8x64xf32>
    %522 = vector.shape_cast %519 : vector<8x64xf32> to vector<1x8x64xf32>
    tpu.vector_store %arg15[%c0_221, %c0_222, %c0_223], %522 {strides = array<i32>} : memref<1x8x64xf32, #tpu.memory_space<vmem>>, vector<1x8x64xf32>,
    return
  }
  func.func @transform_0(%arg0: i32) -> (i32, i32, i32) {
    %c0_i32 = arith.constant 0 : i32
    %c0_i32_0 = arith.constant 0 : i32
    %c0_i32_1 = arith.constant 0 : i32
    return %arg0, %c0_i32, %c0_i32_0 : i32, i32, i32
  }
  func.func @transform_1(%arg0: i32) -> (i32, i32, i32) {
    %c0_i32 = arith.constant 0 : i32
    %c0_i32_0 = arith.constant 0 : i32
    %c0_i32_1 = arith.constant 0 : i32
    return %arg0, %c0_i32, %c0_i32_0 : i32, i32, i32
  }
  func.func @transform_2(%arg0: i32) -> (i32, i32, i32) {
    %c0_i32 = arith.constant 0 : i32
    %c0_i32_0 = arith.constant 0 : i32
    %c0_i32_1 = arith.constant 0 : i32
    %c0_i32_2 = arith.constant 0 : i32
    return %c0_i32, %c0_i32_0, %c0_i32_1 : i32, i32, i32
  }
  func.func @transform_3(%arg0: i32) -> (i32, i32, i32) {
    %c0_i32 = arith.constant 0 : i32
    %c0_i32_0 = arith.constant 0 : i32
    %c0_i32_1 = arith.constant 0 : i32
    %c0_i32_2 = arith.constant 0 : i32
    return %c0_i32, %c0_i32_0, %c0_i32_1 : i32, i32, i32
  }
  func.func @transform_4(%arg0: i32) -> (i32, i32, i32) {
    %c0_i32 = arith.constant 0 : i32
    %c0_i32_0 = arith.constant 0 : i32
    %c0_i32_1 = arith.constant 0 : i32
    %c0_i32_2 = arith.constant 0 : i32
    return %c0_i32, %c0_i32_0, %c0_i32_1 : i32, i32, i32
  }
  func.func @transform_5(%arg0: i32) -> (i32, i32, i32) {
    %c0_i32 = arith.constant 0 : i32
    %c0_i32_0 = arith.constant 0 : i32
    %c0_i32_1 = arith.constant 0 : i32
    %c0_i32_2 = arith.constant 0 : i32
    return %c0_i32, %c0_i32_0, %c0_i32_1 : i32, i32, i32
  }
  func.func @transform_6(%arg0: i32) -> (i32, i32, i32) {
    %c0_i32 = arith.constant 0 : i32
    %c0_i32_0 = arith.constant 0 : i32
    %c0_i32_1 = arith.constant 0 : i32
    %c0_i32_2 = arith.constant 0 : i32
    return %c0_i32, %c0_i32_0, %c0_i32_1 : i32, i32, i32
  }
  func.func @transform_7(%arg0: i32) -> (i32, i32, i32) {
    %c0_i32 = arith.constant 0 : i32
    %c0_i32_0 = arith.constant 0 : i32
    %c0_i32_1 = arith.constant 0 : i32
    %c0_i32_2 = arith.constant 0 : i32
    return %c0_i32, %c0_i32_0, %c0_i32_1 : i32, i32, i32
  }
  func.func @transform_8(%arg0: i32) -> (i32, i32, i32) {
    %c0_i32 = arith.constant 0 : i32
    %c0_i32_0 = arith.constant 0 : i32
    %c0_i32_1 = arith.constant 0 : i32
    %c0_i32_2 = arith.constant 0 : i32
    return %c0_i32, %c0_i32_0, %c0_i32_1 : i32, i32, i32
  }
  func.func @transform_9(%arg0: i32) -> (i32, i32, i32) {
    %c0_i32 = arith.constant 0 : i32
    %c0_i32_0 = arith.constant 0 : i32
    %c0_i32_1 = arith.constant 0 : i32
    %c0_i32_2 = arith.constant 0 : i32
    return %c0_i32, %c0_i32_0, %c0_i32_1 : i32, i32, i32
  }
  func.func @transform_10(%arg0: i32) -> (i32, i32, i32) {
    %c0_i32 = arith.constant 0 : i32
    %c0_i32_0 = arith.constant 0 : i32
    %c0_i32_1 = arith.constant 0 : i32
    %c0_i32_2 = arith.constant 0 : i32
    return %c0_i32, %c0_i32_0, %c0_i32_1 : i32, i32, i32
  }
  func.func @transform_11(%arg0: i32) -> (i32, i32, i32) {
    %c0_i32 = arith.constant 0 : i32
    %c0_i32_0 = arith.constant 0 : i32
    %c0_i32_1 = arith.constant 0 : i32
    %c0_i32_2 = arith.constant 0 : i32
    return %c0_i32, %c0_i32_0, %c0_i32_1 : i32, i32, i32
  }
  func.func @transform_12(%arg0: i32) -> (i32, i32, i32) {
    %c0_i32 = arith.constant 0 : i32
    %c0_i32_0 = arith.constant 0 : i32
    %c0_i32_1 = arith.constant 0 : i32
    %c0_i32_2 = arith.constant 0 : i32
    return %c0_i32, %c0_i32_0, %c0_i32_1 : i32, i32, i32
  }
  func.func @transform_13(%arg0: i32) -> (i32, i32, i32) {
    %c0_i32 = arith.constant 0 : i32
    %c0_i32_0 = arith.constant 0 : i32
    %c0_i32_1 = arith.constant 0 : i32
    %c0_i32_2 = arith.constant 0 : i32
    return %c0_i32, %c0_i32_0, %c0_i32_1 : i32, i32, i32
  }
  func.func @transform_14(%arg0: i32) -> (i32, i32, i32) {
    %c0_i32 = arith.constant 0 : i32
    %c0_i32_0 = arith.constant 0 : i32
    %c0_i32_1 = arith.constant 0 : i32
    return %arg0, %c0_i32, %c0_i32_0 : i32, i32, i32
  }
}

</mosaic_0001>

<bundles_post_ra>
// kernel: neko_ctx_basic_fwd.1
= control target key start
LH: loop header
LB: loop body
LE: loop exit
PB: predicated region body
PF: predicated region fallthrough
CT: control target
= control target key end

     0   :  { %s3438_s29 = smov 0   ;;  %s4723_s0 = inlined_call_operand.vmem [shape: f32[2,8,64], index: 0, kind: input, shape index: {}]   ;;  %s4724_s1 = inlined_call_operand.vmem [shape: f32[2,64,64], index: 1, kind: input, shape index: {}]   ;;  %s4725_s2 = inlined_call_operand.vmem [shape: f32[4,64,192], index: 2, kind: input, shape index: {}]   ;;  %s4726_s3 = inlined_call_operand.vmem [shape: f32[4,1,192], index: 3, kind: input, shape index: {}]   ;;  %s4727_s4 = inlined_call_operand.vmem [shape: f32[4,64,64], index: 4, kind: input, shape index: {}]   ;;  %s4728_s5 = inlined_call_operand.vmem [shape: f32[4,1,64], index: 5, kind: input, shape index: {}]   ;;  %s4729_s6 = inlined_call_operand.vmem [shape: f32[4,64,128], index: 6, kind: input, shape index: {}]   ;;  %s4730_s7 = inlined_call_operand.vmem [shape: f32[4,1,128], index: 7, kind: input, shape index: {}]   ;;  %s4731_s8 = inlined_call_operand.vmem [shape: f32[4,128,64], index: 8, kind: input, shape index: {}]   ;;  %s4732_s9 = inlined_call_operand.vmem [shape: f32[4,1,64], index: 9, kind: input, shape index: {}]   ;;  %s4733_s10 = inlined_call_operand.vmem [shape: f32[4,1,64], index: 10, kind: input, shape index: {}]   ;;  %s4734_s11 = inlined_call_operand.vmem [shape: f32[4,1,64], index: 11, kind: input, shape index: {}]   ;;  %s4735_s12 = inlined_call_operand.vmem [shape: f32[4,1,64], index: 12, kind: input, shape index: {}]   ;;  %s4736_s13 = inlined_call_operand.vmem [shape: f32[4,1,64], index: 13, kind: input, shape index: {}]   ;;  %s4737_s14 = inlined_call_operand.vmem [shape: f32[2,8,64], index: 14, kind: output, shape index: {}]  }
   0x1   :  { %4772 = sst [smem:[#allocation4_spill]] %s4723_s0 }
   0x2   :  { %4773 = sst [smem:[#allocation5_spill]] %s4724_s1 }
   0x3   :  { %4774 = sst [smem:[#allocation6_spill]] %s4737_s14 }
   0x4 LB: > { %4775 = sst [smem:[#allocation2_spill]] %s3345_s29  ;;  %s2833_s30 = sadd.s32 4294967295, %s3345_s29   ;;  %s3345_s29 = sphi %s3438_s29, %s24_s29  }
   0x5   : > { %p2837_p0 = scmp.ge.s32.totalorder %s3345_s29, 1  ;;  %p421_p1 = scmp.lt.s32.totalorder %s3345_s29, 3 }
   0x7   : > { %p422_p2 = pnand %p2837_p0, %p421_p1 }
   0x9   : > { %425 = sbr.rel (%p422_p2) target bundleno = 8401 (0x20d1), region = 76 }
   0xe   : > { %v506_v0 = vld [vmem:[%s4725_s2 + $0x70] sm:$0xff]  ;;  %v504_v1 = vld [vmem:[%s4725_s2 + $0x60] sm:$0xff]  ;;  %p470_p3 = scmp.lt.s32.totalorder %s2833_s30, 1  ;;  %s4777_s0 = sld [smem:[#allocation4_spill]]  ;;  %vm514_vm0 = vcmask 523264   ;;  %vm611_vm1 = vcmask 64512  }
   0xf   : > { %526 = vmatpush.msra.mxu0 %v506_v0  ;;  %v502_v2 = vld [vmem:[%s4725_s2 + $0x50] sm:$0xff]  ;;  %v500_v3 = vld [vmem:[%s4725_s2 + $0x40] sm:$0xff]  ;;  %s4747_s23 = smov 104   ;;  %s4767_s24 = smov 88   ;;  %v507_v23 = vld [vmem:[%s4725_s2 + $0x78] sm:$0xff]  ;;  %vm867_vm2 = vcmask 130048  }
  0x10   : > { %s4810_s30 = smov (!%p470_p3, %s2833_s30), 1  ;;  %v498_v4 = vld [vmem:[%s4725_s2 + $0x30] sm:$0xff]  ;;  %v496_v5 = vld [vmem:[%s4725_s2 + $0x20] sm:$0xff]  ;;  %s4763_s25 = smov 72   ;;  %v505_v24 = vld [vmem:[%s4725_s2 + $0x68] sm:$0xff]  ;;  %546 = vmatpush.msra.mxu1 %v507_v23  ;;  %vm869_vm3 = vcmask 195584  }
  0x11   : > { %4776 = sst [smem:[#allocation3_spill]] %s4810_s30  ;;  %527 = vmatpush.msra.mxu0 %v504_v1  ;;  %s4738_s27 = sshll.u32 %s4810_s30, 3  ;;  %v494_v6 = vld [vmem:[%s4725_s2 + $0x10] sm:$0xff]  ;;  %v492_v7 = vld [vmem:[%s4725_s2] sm:$0xff]  ;;  %v503_v25 = vld [vmem:[%s4725_s2 + $0x58] sm:$0xff]  ;;  %vm871_vm4 = vcmask 261120  }
  0x12   : > { %v3485_v9 = vld [vmem:[%s4726_s3] sm:$0x3]  ;;  %s4755_s26 = smov 112   ;;  %s4751_s28 = smov 96   ;;  %547 = vmatpush.msra.mxu1 %v505_v24  ;;  %v501_v28 = vld [vmem:[%s4725_s2 + $0x48] sm:$0xff]  ;;  %v499_v29 = vld [vmem:[%s4725_s2 + $0x38] sm:$0xff] }
  0x13   : > { %528 = vmatpush.msra.mxu0 %v502_v2  ;;  %v510_v10 = vperm.slane %v3485_v9, 0  ;;  %s4765_s15 = smov 80   ;;  %s4741_s16 = smov 120   ;;  %v497_v30 = vld [vmem:[%s4725_s2 + $0x28] sm:$0xff]  ;;  %v495_v32 = vld [vmem:[%s4725_s2 + $0x18] sm:$0xff]  ;;  %v511_v46 = vperm.slane %v3485_v9, 1 }
  0x14   : > { %s473_s20 = scalar_lea.vmem %s4777_s0, %s4738_s27  ;;  %s4739_s17 = smov 64   ;;  %548 = vmatpush.msra.mxu1 %v503_v25  ;;  %v493_v34 = vld [vmem:[%s4725_s2 + $0x8] sm:$0xff]  ;;  %vm873_vm5 = vcmask 326656   ;;  %vm875_vm6 = vcmask 392192   ;;  %vm877_vm7 = vcmask 457728  }
  0x15   : > { %529 = vmatpush.msra.mxu0 %v500_v3  ;;  %v3478_v8 = vld [vmem:[%s473_s20] sm:$0xff]  ;;  %s4778_s1 = sld [smem:[#allocation5_spill]]  ;;  %s4779_s27 = smov 120  }
  0x16   : > { %549 = vmatpush.msra.mxu1 %v501_v28  ;;  %s4743_s22 = smov 8   ;;  %s4749_s18 = smov 24  }
  0x17   : > { %530 = vmatpush.msra.mxu0 %v498_v4  ;;  %s4757_s19 = smov 40   ;;  %s4759_s20 = smov 48  }
  0x18   : > { %550 = vmatpush.msra.mxu1 %v499_v29  ;;  %s4792_s14 = smov 88   ;;  %s4793_s29 = smov 80  }
  0x19   : > { %531 = vmatpush.msra.mxu0 %v496_v5 }
  0x1a   : > { %551 = vmatpush.msra.mxu1 %v497_v30 }
  0x1b   : > { %532 = vmatpush.msra.mxu0 %v494_v6 }
  0x1c   : > { %552 = vmatpush.msra.mxu1 %v495_v32 }
  0x1d   : > { %533 = vmatpush.msra.mxu0 %v492_v7 }
  0x1e   : > { %2842 = vmatmul.msk.f32.vlgmr.msra.gmra.mxu0 %vm514_vm0, %v3478_v8  ;;  %553 = vmatpush.msra.mxu1 %v493_v34 }
  0x1f   : > { %2843 = vmatmul.msk.f32.vlgmr.msra.gmra.mxu1 %vm514_vm0, %v3478_v8 }
  0x9b   : > { %v535_v11 = vpop.f32.mrf.mxu0 }
  0x9c   : > { %v3488_v12 = vadd.f32 %v535_v11, %v510_v10  ;;  %v555_v48 = vpop.f32.mrf.mxu1 }
  0x9d   : > { %v3578_v50 = vadd.f32 %v555_v48, %v511_v46 }
  0x9e   : > { %563 = vrot.lane.b32.xlu2 %v3488_v12, %s4747_s23  ;;  %567 = vrot.lane.b32.xlu1 %v3488_v12, %s4767_s24 }
  0x9f   : > { %571 = vrot.lane.b32.xlu0 %v3488_v12, %s4763_s25 }
  0xa6   : > { %561 = vrot.lane.b32.xlu2 %v3488_v12, %s4755_s26  ;;  %565 = vrot.lane.b32.xlu1 %v3488_v12, %s4751_s28 }
  0xa7   : > { %569 = vrot.lane.b32.xlu0 %v3488_v12, %s4765_s15 }
  0xaf   : > { %559 = vrot.lane.b32.xlu0 %v3488_v12, %s4741_s16  ;;  %s3124_s16 = sshll.u32 %s4810_s30, 6  ;;  %s4795_s30 = smov 24  }
  0xb0   : > { %s3560_s21 = scalar_lea.vmem %s4778_s1, %s3124_s16  ;;  %s4753_s16 = smov 32  }
  0xb1   : > { %v3563_v36 = vld [vmem:[%s3560_s21] sm:$0xff]  ;;  %v3568_v40 = vld [vmem:[%s3560_s21 + $0x8] sm:$0xff]  ;;  %v3573_v44 = vld [vmem:[%s3560_s21 + $0x10] sm:$0xff] }
  0xb2   : > { %v3581_v51 = vld [vmem:[%s3560_s21 + $0x18] sm:$0xff]  ;;  %v3592_v57 = vld [vmem:[%s3560_s21 + $0x20] sm:$0xff]  ;;  %v3597_v60 = vld [vmem:[%s3560_s21 + $0x30] sm:$0xff] }
  0xb3   : > { %v3601_v63 = vld [vmem:[%s3560_s21 + $0x28] sm:$0xff] }
  0xf8   : > { %v564_v13 = vpop.permute.xlu2 %563 }
 0x100   : > { %v562_v16 = vpop.permute.xlu2 %561 }
 0x110   : > { %v568_v14 = vpop.permute.xlu1 %567 }
 0x111   : > { %v572_v15 = vpop.permute.xlu0 %571  ;;  %605 = vrot.lane.b32.xlu0 %v568_v14, %s4739_s17 }
 0x112   : > { %609 = vrot.lane.b32.xlu1 %v572_v15, %s4739_s17 }
 0x118   : > { %v566_v17 = vpop.permute.xlu1 %565 }
 0x119   : > { %v570_v18 = vpop.permute.xlu0 %569  ;;  %599 = vrot.lane.b32.xlu0 %v562_v16, %s4739_s17 }
 0x11a   : > { %603 = vrot.lane.b32.xlu1 %v566_v17, %s4739_s17  ;;  %607 = vrot.lane.b32.xlu2 %v570_v18, %s4739_s17 }
 0x121   : > { %v560_v19 = vpop.permute.xlu0 %559 }
 0x122   : > { %601 = vrot.lane.b32.xlu2 %v564_v13, %s4739_s17  ;;  %597 = vrot.lane.b32.xlu1 %v560_v19, %s4739_s17 }
 0x12a   : > { %595 = vrot.lane.b32.xlu2 %v3488_v12, %s4739_s17  ;;  %s4745_s17 = smov 16  }
 0x174   : > { %v608_v21 = vpop.permute.xlu2 %607 }
 0x17c   : > { %v602_v27 = vpop.permute.xlu2 %601 }
 0x183   : > { %v606_v22 = vpop.permute.xlu0 %605 }
 0x184   : > { %v610_v20 = vpop.permute.xlu1 %609  ;;  %v596_v35 = vpop.permute.xlu2 %595 }
 0x185   : > { %2844 = vmatpush.xpose.msk.msra.mxu2 %vm611_vm1, %v610_v20 }
 0x189   : > { %2845 = vmatpush.xpose.msk.msra.mxu2 %vm611_vm1, %v608_v21 }
 0x18b   : > { %v600_v31 = vpop.permute.xlu0 %599 }
 0x18c   : > { %v604_v26 = vpop.permute.xlu1 %603 }
 0x18d   : > { %2846 = vmatpush.xpose.msk.msra.mxu2 %vm611_vm1, %v606_v22 }
 0x191   : > { %2847 = vmatpush.xpose.msk.msra.mxu2 %vm611_vm1, %v604_v26 }
 0x194   : > { %v598_v33 = vpop.permute.xlu1 %597 }
 0x195   : > { %2848 = vmatpush.xpose.msk.msra.mxu2 %vm611_vm1, %v602_v27 }
 0x199   : > { %2849 = vmatpush.xpose.msk.msra.mxu2 %vm611_vm1, %v600_v31 }
 0x19d   : > { %2850 = vmatpush.xpose.msk.msra.mxu2 %vm611_vm1, %v598_v33 }
 0x1a1   : > { %2851 = vmatpush.xpose.msk.msra.mxu2 %vm611_vm1, %v596_v35 }
 0x1a4   : > { %2852 = vmatmul.msk.f32.vlgmr.msra.gmra.mxu2 %vm611_vm1, %v3488_v12 }
 0x1ac   : > { %2853 = vmatmul.msk.f32.gmra.mxu2 %vm611_vm1, %v560_v19 }
 0x1b4   : > { %2854 = vmatmul.msk.f32.gmra.mxu2 %vm611_vm1, %v562_v16 }
 0x1bc   : > { %2855 = vmatmul.msk.f32.gmra.mxu2 %vm611_vm1, %v564_v13  ;;  %v3619_v13 = vld [vmem:[%s3560_s21 + $0x38] sm:$0xff] }
 0x1c4   : > { %2856 = vmatmul.msk.f32.gmra.mxu2 %vm611_vm1, %v566_v17 }
 0x1cc   : > { %2857 = vmatmul.msk.f32.gmra.mxu2 %vm611_vm1, %v568_v14 }
 0x1d4   : > { %2858 = vmatmul.msk.f32.gmra.mxu2 %vm611_vm1, %v570_v18 }
 0x1dc   : > { %2859 = vmatmul.msk.f32.gmra.mxu2 %vm611_vm1, %v572_v15 }
 0x227   : > { %v661_v37 = vpop.f32.mrf.mxu2 }
 0x228   : > { %v662_v38 = vadd.f32 %v661_v37, %v3563_v36 }
 0x22a   : > { %v685_v39 = vsel %vm514_vm0, %v662_v38, -inf }
 0x22b   : > { %686 = vmax.xlane.f32.xlu0 %v685_v39 }
 0x22f   : > { %v664_v41 = vpop.f32.mrf.mxu2 }
 0x230   : > { %v665_v42 = vadd.f32 %v664_v41, %v3568_v40 }
 0x232   : > { %v688_v43 = vsel %vm514_vm0, %v665_v42, -inf }
 0x233   : > { %689 = vmax.xlane.f32.xlu1 %v688_v43 }
 0x237   : > { %v667_v45 = vpop.f32.mrf.mxu2 }
 0x238   : > { %v668_v47 = vadd.f32 %v667_v45, %v3573_v44 }
 0x23a   : > { %v691_v49 = vsel %vm514_vm0, %v668_v47, -inf }
 0x23b   : > { %692 = vmax.xlane.f32.xlu2 %v691_v49 }
 0x23f   : > { %v670_v52 = vpop.f32.mrf.mxu2  ;;  %586 = vrot.lane.b32.xlu0 %v3578_v50, %s4767_s24 }
 0x240   : > { %v671_v53 = vadd.f32 %v670_v52, %v3581_v51 }
 0x242   : > { %v694_v54 = vsel %vm514_vm0, %v671_v53, -inf }
 0x243   : > { %695 = vmax.xlane.f32.xlu2 %v694_v54 }
 0x247   : > { %v673_v55 = vpop.f32.mrf.mxu2 }
 0x248   : > { %v674_v58 = vadd.f32 %v673_v55, %v3592_v57 }
 0x24a   : > { %v697_v59 = vsel %vm514_vm0, %v674_v58, -inf }
 0x24c   : > { %589 = vrot.lane.b32.xlu1 %v3578_v50, %s4765_s15 }
 0x24f   : > { %v676_v56 = vpop.f32.mrf.mxu2 }
 0x250   : > { %v677_v1 = vadd.f32 %v676_v56, %v3601_v63 }
 0x252   : > { %v700_v2 = vsel %vm514_vm0, %v677_v1, -inf }
 0x257   : > { %v679_v61 = vpop.f32.mrf.mxu2 }
 0x258   : > { %v680_v62 = vadd.f32 %v679_v61, %v3597_v60 }
 0x25a   : > { %v703_v0 = vsel %vm514_vm0, %v680_v62, -inf }
 0x25b   : > { %592 = vrot.lane.b32.xlu2 %v3578_v50, %s4763_s25  ;;  %s4784_s25 = smov 64  }
 0x25f   : > { %v682_v14 = vpop.f32.mrf.mxu2 }
 0x260   : > { %v683_v17 = vadd.f32 %v682_v14, %v3619_v13 }
 0x262   : > { %v706_v20 = vsel %vm514_vm0, %v683_v17, -inf }
 0x269   : > { %698 = vmax.xlane.f32.xlu0 %v697_v59 }
 0x271   : > { %704 = vmax.xlane.f32.xlu0 %v703_v0 }
 0x276   : > { %701 = vmax.xlane.f32.xlu1 %v700_v2 }
 0x285   : > { %580 = vrot.lane.b32.xlu0 %v3578_v50, %s4747_s23  ;;  %s4788_s23 = smov 32  }
 0x28d   : > { %577 = vrot.lane.b32.xlu0 %v3578_v50, %s4755_s26  ;;  %s4782_s26 = smov 96  }
 0x28f   : > { %583 = vrot.lane.b32.xlu1 %v3578_v50, %s4751_s28  ;;  %s4780_s28 = smov 72  }
 0x295   : > { %574 = vrot.lane.b32.xlu0 %v3578_v50, %s4779_s27 }
 0x29e   : > { %v687_v3 = vpop.xlane.xlu0 %686 }
 0x29f   : > { %v709_v4 = vsub.f32 %v662_v38, %v687_v3 }
 0x2a1   : > { %v717_v5 = vmul.f32 1.442695, %v709_v4 }
 0x2a3   : > { %3185 = vpow2.f32 %v717_v5 }
 0x2a6   : > { %v690_v7 = vpop.xlane.xlu1 %689 }
 0x2a7   : > { %v710_v10 = vsub.f32 %v665_v42, %v690_v7 }
 0x2a9   : > { %v3614_v6 = vpop.eup %3185  ;;  %v719_v15 = vmul.f32 1.442695, %v710_v10 }
 0x2aa   : > { %v733_v9 = vsel %vm514_vm0, %v3614_v6, 0.0 }
 0x2ab   : > { %734 = vadd.xlane.f32.xlu2 %v733_v9 }
 0x2ae   : > { %v693_v11 = vpop.xlane.xlu2 %692 }
 0x2af   : > { %v711_v12 = vsub.f32 %v668_v47, %v693_v11 }
 0x2b1   : > { %v721_v16 = vmul.f32 1.442695, %v711_v12  ;;  %v587_v29 = vpop.permute.xlu0 %586 }
 0x2b3   : > { %3187 = vpow2.f32 %v721_v16 }
 0x2b4   : > { %3189 = vpow2.f32 %v719_v15 }
 0x2b6   : > { %v696_v18 = vpop.xlane.xlu2 %695 }
 0x2b7   : > { %v712_v19 = vsub.f32 %v671_v53, %v696_v18 }
 0x2b9   : > { %v3623_v21 = vpop.eup %3187  ;;  %v723_v22 = vmul.f32 1.442695, %v712_v19  ;;  %707 = vmax.xlane.f32.xlu1 %v706_v20 }
 0x2ba   : > { %v739_v23 = vsel %vm514_vm0, %v3623_v21, 0.0  ;;  %v3190_v24 = vpop.eup %3189 }
 0x2bb   : > { %3191 = vpow2.f32 %v723_v22  ;;  %740 = vadd.xlane.f32.xlu2 %v739_v23  ;;  %v736_v26 = vsel %vm514_vm0, %v3190_v24, 0.0 }
 0x2be   : > { %v593_v25 = vpop.permute.xlu2 %592  ;;  %v590_v27 = vpop.permute.xlu1 %589 }
 0x2bf   : > { %805 = vmatpush.msra.mxu3 %v593_v25  ;;  %737 = vadd.xlane.f32.xlu0 %v736_v26 }
 0x2c1   : > { %v3192_v28 = vpop.eup %3191  ;;  %806 = vmatpush.msra.mxu3 %v590_v27 }
 0x2c2   : > { %v742_v30 = vsel %vm514_vm0, %v3192_v28, 0.0 }
 0x2c3   : > { %743 = vadd.xlane.f32.xlu2 %v742_v30  ;;  %807 = vmatpush.msra.mxu3 %v587_v29 }
 0x2dc   : > { %v699_v31 = vpop.xlane.xlu0 %698 }
 0x2dd   : > { %v713_v32 = vsub.f32 %v674_v58, %v699_v31 }
 0x2df   : > { %v725_v33 = vmul.f32 1.442695, %v713_v32  ;;  %v886_v32 = vld [vmem:[%s4727_s4 + $0x38] sm:$0xff] }
 0x2e0   : > { %902 = vmatpush.msrb.mxu0 %v886_v32  ;;  %v999_v32 = vld [vmem:[%s4731_s8 + $0x48] sm:$0xff] }
 0x2e1   : > { %3193 = vpow2.f32 %v725_v33  ;;  %v885_v33 = vld [vmem:[%s4727_s4 + $0x30] sm:$0xff] }
 0x2e2   : > { %903 = vmatpush.msrb.mxu0 %v885_v33  ;;  %v998_v33 = vld [vmem:[%s4731_s8 + $0x40] sm:$0xff] }
 0x2e4   : > { %v705_v34 = vpop.xlane.xlu0 %704 }
 0x2e5   : > { %v715_v35 = vsub.f32 %v680_v62, %v705_v34  ;;  %v884_v34 = vld [vmem:[%s4727_s4 + $0x28] sm:$0xff] }
 0x2e6   : > { %904 = vmatpush.msrb.mxu0 %v884_v34 }
 0x2e7   : > { %v3194_v37 = vpop.eup %3193  ;;  %v729_v38 = vmul.f32 1.442695, %v715_v35  ;;  %v883_v35 = vld [vmem:[%s4727_s4 + $0x20] sm:$0xff] }
 0x2e8   : > { %v745_v39 = vsel %vm514_vm0, %v3194_v37, 0.0  ;;  %905 = vmatpush.msrb.mxu0 %v883_v35  ;;  %v997_v35 = vld [vmem:[%s4731_s8 + $0x38] sm:$0xff] }
 0x2e9   : > { %3195 = vpow2.f32 %v729_v38  ;;  %v702_v41 = vpop.xlane.xlu1 %701  ;;  %746 = vadd.xlane.f32.xlu1 %v745_v39  ;;  %v881_v38 = vld [vmem:[%s4727_s4 + $0x10] sm:$0xff]  ;;  %v880_v39 = vld [vmem:[%s4727_s4 + $0x8] sm:$0xff] }
 0x2ea   : > { %v714_v42 = vsub.f32 %v677_v1, %v702_v41  ;;  %v879_v41 = vld [vmem:[%s4727_s4] sm:$0xff] }
 0x2ec   : > { %v727_v43 = vmul.f32 1.442695, %v714_v42 }
 0x2ee   : > { %3197 = vpow2.f32 %v727_v43 }
 0x2ef   : > { %v3196_v45 = vpop.eup %3195 }
 0x2f0   : > { %v751_v46 = vsel %vm514_vm0, %v3196_v45, 0.0 }
 0x2f1   : > { %752 = vadd.xlane.f32.xlu1 %v751_v46 }
 0x2f4   : > { %v3198_v47 = vpop.eup %3197 }
 0x2f5   : > { %v748_v48 = vsel %vm514_vm0, %v3198_v47, 0.0 }
 0x2f6   : > { %749 = vadd.xlane.f32.xlu2 %v748_v48 }
 0x2f7   : > { %v581_v49 = vpop.permute.xlu0 %580 }
 0x2ff   : > { %v578_v52 = vpop.permute.xlu0 %577 }
 0x301   : > { %v584_v53 = vpop.permute.xlu1 %583 }
 0x302   : > { %808 = vmatpush.msra.mxu3 %v584_v53 }
 0x304   : > { %809 = vmatpush.msra.mxu3 %v581_v49 }
 0x306   : > { %810 = vmatpush.msra.mxu3 %v578_v52 }
 0x307   : > { %v575_v54 = vpop.permute.xlu0 %574 }
 0x308   : > { %811 = vmatpush.msra.mxu3 %v575_v54 }
 0x30a   : > { %812 = vmatpush.msra.mxu3 %v3578_v50 }
 0x31e   : > { %v735_v55 = vpop.xlane.xlu2 %734 }
 0x31f   : > { %3199 = vrcp.f32 %v735_v55 }
 0x325   : > { %v3200_v56 = vpop.eup %3199 }
 0x326   : > { %v765_v58 = vmul.f32 %v3200_v56, %v3614_v6 }
 0x328   : > { %2860 = vmatmul.msk.f32.vlgmr.msra.gmra.mxu3 %vm514_vm0, %v765_v58 }
 0x32c   : > { %v708_v59 = vpop.xlane.xlu1 %707 }
 0x32d   : > { %v716_v61 = vsub.f32 %v683_v17, %v708_v59 }
 0x32e   : > { %v741_v1 = vpop.xlane.xlu2 %740 }
 0x32f   : > { %v731_v62 = vmul.f32 1.442695, %v716_v61  ;;  %v3157_v61 = vld [vmem:[%s4728_s5] ss:$0 sm:$0xff] }
 0x331   : > { %3201 = vpow2.f32 %v731_v62 }
 0x332   : > { %v738_v0 = vpop.xlane.xlu0 %737 }
 0x333   : > { %3203 = vrcp.f32 %v738_v0 }
 0x334   : > { %3205 = vrcp.f32 %v741_v1 }
 0x336   : > { %v744_v5 = vpop.xlane.xlu2 %743 }
 0x337   : > { %v3202_v2 = vpop.eup %3201  ;;  %3207 = vrcp.f32 %v744_v5 }
 0x338   : > { %v754_v3 = vsel %vm514_vm0, %v3202_v2, 0.0 }
 0x339   : > { %v3204_v4 = vpop.eup %3203  ;;  %755 = vadd.xlane.f32.xlu2 %v754_v3  ;;  %v3362_v3 = vmov 64.0  }
 0x33a   : > { %v766_v50 = vmul.f32 %v3204_v4, %v3190_v24  ;;  %v3206_v6 = vpop.eup %3205 }
 0x33b   : > { %v767_v7 = vmul.f32 %v3206_v6, %v3623_v21 }
 0x33c   : > { %2861 = vmatmul.msk.f32.gmra.mxu3 %vm514_vm0, %v766_v50 }
 0x33d   : > { %v3208_v9 = vpop.eup %3207 }
 0x33e   : > { %v768_v10 = vmul.f32 %v3208_v9, %v3192_v28 }
 0x344   : > { %2862 = vmatmul.msk.f32.gmra.mxu3 %vm514_vm0, %v767_v7 }
 0x34c   : > { %2863 = vmatmul.msk.f32.gmra.mxu3 %vm514_vm0, %v768_v10 }
 0x35c   : > { %v747_v11 = vpop.xlane.xlu1 %746 }
 0x35d   : > { %3209 = vrcp.f32 %v747_v11 }
 0x363   : > { %v3210_v12 = vpop.eup %3209 }
 0x364   : > { %v769_v14 = vmul.f32 %v3210_v12, %v3194_v37  ;;  %v753_v16 = vpop.xlane.xlu1 %752  ;;  %v882_v37 = vld [vmem:[%s4727_s4 + $0x18] sm:$0xff] }
 0x365   : > { %906 = vmatpush.msrb.mxu0 %v882_v37 }
 0x366   : > { %2864 = vmatmul.msk.f32.gmra.mxu3 %vm514_vm0, %v769_v14 }
 0x367   : > { %907 = vmatpush.msrb.mxu0 %v881_v38  ;;  %v996_v38 = vld [vmem:[%s4731_s8 + $0x30] sm:$0xff] }
 0x369   : > { %v750_v15 = vpop.xlane.xlu2 %749  ;;  %908 = vmatpush.msrb.mxu0 %v880_v39 }
 0x36a   : > { %3211 = vrcp.f32 %v750_v15  ;;  %v961_v15 = vld [vmem:[%s4729_s6 + $0x38] sm:$0xff] }
 0x36b   : > { %3213 = vrcp.f32 %v753_v16  ;;  %909 = vmatpush.msrb.mxu0 %v879_v41  ;;  %977 = vmatpush.msrb.mxu1 %v961_v15  ;;  %v960_v16 = vld [vmem:[%s4729_s6 + $0x30] sm:$0xff]  ;;  %v995_v41 = vld [vmem:[%s4731_s8 + $0x28] sm:$0xff] }
 0x36c   : > { %v2880_v15 = vld [vmem:[%s4725_s2 + $0xd0] sm:$0xff] }
 0x36d   : > { %978 = vmatpush.msrb.mxu1 %v960_v16  ;;  %v2878_v16 = vld [vmem:[%s4725_s2 + $0xc0] sm:$0xff] }
 0x370   : > { %v3212_v17 = vpop.eup %3211 }
 0x371   : > { %v770_v18 = vmul.f32 %v3212_v17, %v3198_v47  ;;  %v3214_v19 = vpop.eup %3213  ;;  %v959_v17 = vld [vmem:[%s4729_s6 + $0x28] sm:$0xff] }
 0x372   : > { %v771_v20 = vmul.f32 %v3214_v19, %v3196_v45  ;;  %979 = vmatpush.msrb.mxu1 %v959_v17  ;;  %v957_v19 = vld [vmem:[%s4729_s6 + $0x18] sm:$0xff]  ;;  %v2876_v17 = vld [vmem:[%s4725_s2 + $0xb0] sm:$0xff] }
 0x373   : > { %2865 = vmatmul.msk.f32.gmra.mxu3 %vm514_vm0, %v770_v18  ;;  %v958_v18 = vld [vmem:[%s4729_s6 + $0x20] sm:$0xff] }
 0x374   : > { %980 = vmatpush.msrb.mxu1 %v958_v18  ;;  %v2874_v18 = vld [vmem:[%s4725_s2 + $0xa0] sm:$0xff] }
 0x376   : > { %981 = vmatpush.msrb.mxu1 %v957_v19  ;;  %v2872_v19 = vld [vmem:[%s4725_s2 + $0x90] sm:$0xff] }
 0x37b   : > { %2866 = vmatmul.msk.f32.gmra.mxu3 %vm514_vm0, %v771_v20  ;;  %v956_v20 = vld [vmem:[%s4729_s6 + $0x10] sm:$0xff] }
 0x37c   : > { %982 = vmatpush.msrb.mxu1 %v956_v20  ;;  %v2870_v20 = vld [vmem:[%s4725_s2 + $0x80] sm:$0xff] }
 0x3ab   : > { %v814_v24 = vpop.f32.mrf.mxu3 }
 0x3ac   : > { %v756_v21 = vpop.xlane.xlu2 %755 }
 0x3ad   : > { %3215 = vrcp.f32 %v756_v21  ;;  %v955_v21 = vld [vmem:[%s4729_s6 + $0x8] sm:$0xff] }
 0x3ae   : > { %3217 = vrcp.f32 %v3362_v3  ;;  %983 = vmatpush.msrb.mxu1 %v955_v21  ;;  %v2885_v21 = vld [vmem:[%s4725_s2 + $0xf8] sm:$0xff] }
 0x3b3   : > { %v3216_v22 = vpop.eup %3215 }
 0x3b4   : > { %v772_v23 = vmul.f32 %v3216_v22, %v3202_v2  ;;  %v3218_v4 = vpop.eup %3217  ;;  %v954_v22 = vld [vmem:[%s4729_s6] sm:$0xff] }
 0x3b5   : > { %v921_v50 = vmul.f32 64.0, %v3218_v4  ;;  %vm925_vm8 = vweird.f32 %v3218_v4  ;;  %984 = vmatpush.msrb.mxu1 %v954_v22  ;;  %v2883_v22 = vld [vmem:[%s4725_s2 + $0xe8] sm:$0xff] }
 0x3b6   : > { %2867 = vmatmul.msk.f32.gmra.mxu3 %vm514_vm0, %v772_v23  ;;  %v1005_v23 = vld [vmem:[%s4731_s8 + $0x78] sm:$0xff] }
 0x3b7   : > { %v922_v5 = vsub.f32 1.0, %v921_v50  ;;  %1010 = vmatpush.msra.mxu0 %v1005_v23  ;;  %v2881_v23 = vld [vmem:[%s4725_s2 + $0xd8] sm:$0xff] }
 0x3b9   : > { %v923_v6 = vmul.f32 %v3218_v4, %v922_v5 }
 0x3bb   : > { %v924_v7 = vadd.f32 %v3218_v4, %v923_v6 }
 0x3bd   : > { %v3688_v9 = vsel %vm925_vm8, %v3218_v4, %v924_v7 }
 0x3bf   : > { %v817_v25 = vpop.f32.mrf.mxu3 }
 0x3c0   : > { %839 = vrot.lane.b32.xlu1 %v817_v25, %s4743_s22  ;;  %s4761_s22 = smov 56   ;;  %v1003_v25 = vld [vmem:[%s4731_s8 + $0x68] sm:$0xff] }
 0x3c7   : > { %v820_v26 = vpop.f32.mrf.mxu3 }
 0x3c8   : > { %843 = vrot.lane.b32.xlu0 %v820_v26, %s4745_s17  ;;  %s4789_s17 = smov 40  }
 0x3cf   : > { %v823_v27 = vpop.f32.mrf.mxu3 }
 0x3d0   : > { %847 = vrot.lane.b32.xlu2 %v823_v27, %s4749_s18  ;;  %s4781_s18 = smov 112  }
 0x3e9   : > { %v826_v28 = vpop.f32.mrf.mxu3 }
 0x3ea   : > { %851 = vrot.lane.b32.xlu0 %v826_v28, %s4753_s16  ;;  %v1002_v28 = vld [vmem:[%s4731_s8 + $0x60] sm:$0xff]  ;;  %s4783_s16 = smov 104  }
 0x3f6   : > { %v829_v29 = vpop.f32.mrf.mxu3 }
 0x3f7   : > { %855 = vrot.lane.b32.xlu1 %v829_v29, %s4757_s19  ;;  %s4786_s19 = smov 16  }
 0x3fe   : > { %v832_v30 = vpop.f32.mrf.mxu3 }
 0x3ff   : > { %859 = vrot.lane.b32.xlu2 %v832_v30, %s4759_s20  ;;  %v1001_v30 = vld [vmem:[%s4731_s8 + $0x58] sm:$0xff]  ;;  %s4787_s20 = smov 24  }
 0x42a   : > { %v848_v45 = vpop.permute.xlu2 %847 }
 0x432   : > { %v840_v43 = vpop.permute.xlu1 %839 }
 0x433   : > { %v866_v46 = vsel %vm611_vm1, %v814_v24, %v840_v43  ;;  %v1004_v24 = vld [vmem:[%s4731_s8 + $0x70] sm:$0xff]  ;;  %v994_v43 = vld [vmem:[%s4731_s8 + $0x20] sm:$0xff] }
 0x434   : > { %1011 = vmatpush.msra.mxu0 %v1004_v24  ;;  %v2879_v24 = vld [vmem:[%s4725_s2 + $0xc8] sm:$0xff] }
 0x436   : > { %1012 = vmatpush.msra.mxu0 %v1003_v25  ;;  %v2877_v25 = vld [vmem:[%s4725_s2 + $0xb8] sm:$0xff] }
 0x438   : > { %1013 = vmatpush.msra.mxu0 %v1002_v28 }
 0x439   : > { %v835_v31 = vpop.f32.mrf.mxu3 }
 0x43a   : > { %863 = vrot.lane.b32.xlu0 %v835_v31, %s4761_s22  ;;  %v844_v42 = vpop.permute.xlu0 %843  ;;  %v1000_v31 = vld [vmem:[%s4731_s8 + $0x50] sm:$0xff]  ;;  %1014 = vmatpush.msra.mxu0 %v1001_v30  ;;  %v2871_v30 = vld [vmem:[%s4725_s2 + $0x88] sm:$0xff]  ;;  %s4785_s22 = smov 8  }
 0x43b   : > { %v868_v47 = vsel %vm867_vm2, %v866_v46, %v844_v42  ;;  %v993_v46 = vld [vmem:[%s4731_s8 + $0x18] sm:$0xff] }
 0x43c   : > { %v870_v52 = vsel %vm869_vm3, %v868_v47, %v848_v45  ;;  %1015 = vmatpush.msra.mxu0 %v1000_v31 }
 0x43e   : > { %1016 = vmatpush.msra.mxu0 %v999_v32 }
 0x440   : > { %1017 = vmatpush.msra.mxu0 %v998_v33 }
 0x442   : > { %1018 = vmatpush.msra.mxu0 %v997_v35 }
 0x444   : > { %1019 = vmatpush.msra.mxu0 %v996_v38 }
 0x446   : > { %1020 = vmatpush.msra.mxu0 %v995_v41 }
 0x448   : > { %1021 = vmatpush.msra.mxu0 %v994_v43  ;;  %v3163_v43 = vld [vmem:[%s4736_s13] ss:$0 sm:$0xff] }
 0x44a   : > { %1022 = vmatpush.msra.mxu0 %v993_v46 }
 0x459   : > { %v860_v55 = vpop.permute.xlu2 %859 }
 0x45c   : > { %v852_v48 = vpop.permute.xlu0 %851 }
 0x45d   : > { %v872_v53 = vsel %vm871_vm4, %v870_v52, %v852_v48  ;;  %v3158_v48 = vld [vmem:[%s4733_s10] ss:$0 sm:$0xff] }
 0x469   : > { %v856_v49 = vpop.permute.xlu1 %855 }
 0x46a   : > { %v874_v54 = vsel %vm873_vm5, %v872_v53, %v856_v49  ;;  %v3159_v53 = vld [vmem:[%s4734_s11] ss:$0 sm:$0xff] }
 0x46b   : > { %v876_v56 = vsel %vm875_vm6, %v874_v54, %v860_v55 }
 0x4ac   : > { %v864_v58 = vpop.permute.xlu0 %863 }
 0x4ad   : > { %v878_v59 = vsel %vm877_vm7, %v876_v56, %v864_v58  ;;  %v992_v56 = vld [vmem:[%s4731_s8 + $0x10] sm:$0xff]  ;;  %v991_v58 = vld [vmem:[%s4731_s8 + $0x8] sm:$0xff] }
 0x4ae   : > { %2868 = vmatmul.msk.f32.vlgmr.msrb.gmra.mxu0 %vm514_vm0, %v878_v59  ;;  %v990_v59 = vld [vmem:[%s4731_s8] sm:$0xff] }
 0x4af   : > { %1023 = vmatpush.msra.mxu0 %v992_v56 }
 0x4b1   : > { %1024 = vmatpush.msra.mxu0 %v991_v58 }
 0x4b3   : > { %1025 = vmatpush.msra.mxu0 %v990_v59 }
 0x52b   : > { %v911_v62 = vpop.f32.mrf.mxu0 }
 0x52c   : > { %v912_v0 = vadd.f32 %v3157_v61, %v911_v62  ;;  %v3160_v61 = vld [vmem:[%s4730_s7] ss:$0 sm:$0xff] }
 0x52e   : > { %v914_v1 = vadd.f32 %v912_v0, %v3478_v8 }
 0x530   : > { %v917_v2 = vsel %vm514_vm0, %v914_v1, 0.0 }
 0x531   : > { %918 = vadd.xlane.f32.xlu1 %v917_v2  ;;  %v3161_v2 = vld [vmem:[%s4732_s9] ss:$0 sm:$0xff] }
 0x5a4   : > { %v919_v10 = vpop.xlane.xlu1 %918 }
 0x5a5   : > { %v927_v11 = vmul.f32 %v3688_v9, %v919_v10 }
 0x5a7   : > { %v928_v12 = vsub.f32 %v914_v1, %v927_v11 }
 0x5a9   : > { %v929_v14 = vmul.f32 %v928_v12, %v928_v12 }
 0x5ab   : > { %v930_v8 = vsel %vm514_vm0, %v929_v14, 0.0  ;;  %v2884_v14 = vld [vmem:[%s4725_s2 + $0xf0] sm:$0xff] }
 0x5ac   : > { %931 = vadd.xlane.f32.xlu2 %v930_v8  ;;  %1098 = vmatpush.msra.mxu1 %v2884_v14  ;;  %v2882_v8 = vld [vmem:[%s4725_s2 + $0xe0] sm:$0xff] }
 0x5ae   : > { %1099 = vmatpush.msra.mxu1 %v2882_v8 }
 0x5b0   : > { %1100 = vmatpush.msra.mxu1 %v2880_v15 }
 0x5b2   : > { %1101 = vmatpush.msra.mxu1 %v2878_v16 }
 0x5b4   : > { %1102 = vmatpush.msra.mxu1 %v2876_v17 }
 0x5b6   : > { %1103 = vmatpush.msra.mxu1 %v2874_v18 }
 0x5b8   : > { %1104 = vmatpush.msra.mxu1 %v2872_v19 }
 0x5ba   : > { %1105 = vmatpush.msra.mxu1 %v2870_v20 }
 0x61f   : > { %v932_v26 = vpop.xlane.xlu2 %931 }
 0x620   : > { %v933_v27 = vmul.f32 %v932_v26, %v3688_v9  ;;  %v2875_v26 = vld [vmem:[%s4725_s2 + $0xa8] sm:$0xff] }
 0x622   : > { %v934_v29 = vadd.f32 1e-05, %v933_v27  ;;  %v2873_v27 = vld [vmem:[%s4725_s2 + $0x98] sm:$0xff] }
 0x624   : > { %3219 = vrsqrt.f32 %v934_v29  ;;  %vm941_vm10 = vweird.f32 %v934_v29 }
 0x62a   : > { %v3220_v34 = vpop.eup %3219 }
 0x62b   : > { %v936_v37 = vmul.f32 %v3220_v34, %v934_v29  ;;  %vm942_vm9 = vweird.f32 %v3220_v34 }
 0x62c   : > { %vm943_vm11 = vmor %vm941_vm10, %vm942_vm9 }
 0x62d   : > { %v937_v39 = vmul.f32 %v3220_v34, %v936_v37 }
 0x62f   : > { %v938_v42 = vmul.f32 0.5, %v937_v39  ;;  %v3162_v39 = vld [vmem:[%s4735_s12] ss:$0 sm:$0xff] }
 0x631   : > { %v939_v45 = vsub.f32 1.5, %v938_v42 }
 0x633   : > { %v940_v47 = vmul.f32 %v3220_v34, %v939_v45 }
 0x635   : > { %v944_v49 = vsel %vm943_vm11, %v3220_v34, %v940_v47  ;;  %v3845_v47 = vld [vmem:[%s4726_s3 + $0x2] sm:$0x3] }
 0x636   : > { %v945_v52 = vmul.f32 %v944_v49, %v928_v12  ;;  %v1084_v19 = vperm.slane %v3845_v47, 1 }
 0x638   : > { %v949_v54 = vmul.f32 %v3158_v48, %v945_v52  ;;  %v1083_v48 = vperm.slane %v3845_v47, 0 }
 0x63a   : > { %v953_v55 = vadd.f32 %v3159_v53, %v949_v54 }
 0x63c   : > { %2869 = vmatmul.msk.f32.vlgmr.msrb.gmra.mxu1 %vm514_vm0, %v953_v55 }
 0x63d   : > { %1118 = vmatpush.msrb.mxu1 %v2885_v21 }
 0x63f   : > { %1119 = vmatpush.msrb.mxu1 %v2883_v22 }
 0x641   : > { %1120 = vmatpush.msrb.mxu1 %v2881_v23 }
 0x643   : > { %1121 = vmatpush.msrb.mxu1 %v2879_v24 }
 0x645   : > { %1122 = vmatpush.msrb.mxu1 %v2877_v25 }
 0x647   : > { %1123 = vmatpush.msrb.mxu1 %v2875_v26 }
 0x649   : > { %1124 = vmatpush.msrb.mxu1 %v2873_v27 }
 0x64b   : > { %1125 = vmatpush.msrb.mxu1 %v2871_v30 }
 0x6b9   : > { %v986_v62 = vpop.f32.mrf.mxu1 }
 0x6ba   : > { %v987_v0 = vadd.f32 %v3160_v61, %v986_v62 }
 0x6bc   : > { %v989_v1 = vmax.f32 %v987_v0, 0.0 }
 0x6be   : > { %1026 = vmatmul.f32.vlgmr.msra.gmra.mxu0 %v989_v1 }
 0x73b   : > { %v1027_v3 = vpop.f32.mrf.mxu0 }
 0x73c   : > { %v1028_v4 = vadd.f32 %v3161_v2, %v1027_v3 }
 0x73e   : > { %v1030_v50 = vadd.f32 %v1028_v4, %v953_v55 }
 0x740   : > { %v1033_v5 = vsel %vm514_vm0, %v1030_v50, 0.0 }
 0x741   : > { %1034 = vadd.xlane.f32.xlu0 %v1033_v5 }
 0x7b4   : > { %v1035_v6 = vpop.xlane.xlu0 %1034 }
 0x7b5   : > { %v1036_v7 = vmul.f32 %v1035_v6, %v3688_v9 }
 0x7b7   : > { %v1037_v10 = vsub.f32 %v1030_v50, %v1036_v7 }
 0x7b9   : > { %v1038_v11 = vmul.f32 %v1037_v10, %v1037_v10 }
 0x7bb   : > { %v1039_v12 = vsel %vm514_vm0, %v1038_v11, 0.0 }
 0x7bc   : > { %1040 = vadd.xlane.f32.xlu1 %v1039_v12 }
 0x82f   : > { %v1041_v28 = vpop.xlane.xlu1 %1040 }
 0x830   : > { %v1042_v29 = vmul.f32 %v1041_v28, %v3688_v9 }
 0x832   : > { %v1043_v31 = vadd.f32 1e-05, %v1042_v29 }
 0x834   : > { %3221 = vrsqrt.f32 %v1043_v31  ;;  %vm1050_vm13 = vweird.f32 %v1043_v31 }
 0x83a   : > { %v3222_v32 = vpop.eup %3221 }
 0x83b   : > { %v1045_v33 = vmul.f32 %v3222_v32, %v1043_v31  ;;  %vm1051_vm12 = vweird.f32 %v3222_v32 }
 0x83c   : > { %vm1052_vm14 = vmor %vm1050_vm13, %vm1051_vm12 }
 0x83d   : > { %v1046_v34 = vmul.f32 %v3222_v32, %v1045_v33 }
 0x83f   : > { %v1047_v35 = vmul.f32 0.5, %v1046_v34 }
 0x841   : > { %v1048_v37 = vsub.f32 1.5, %v1047_v35 }
 0x843   : > { %v1049_v38 = vmul.f32 %v3222_v32, %v1048_v37 }
 0x845   : > { %v1053_v41 = vsel %vm1052_vm14, %v3222_v32, %v1049_v38 }
 0x846   : > { %v1054_v42 = vmul.f32 %v1053_v41, %v1037_v10 }
 0x848   : > { %v1058_v45 = vmul.f32 %v3162_v39, %v1054_v42 }
 0x84a   : > { %v3836_v46 = vadd.f32 %v3163_v43, %v1058_v45 }
 0x84c   : > { %2887 = vmatmul.msk.f32.vlgmr.msra.gmra.mxu1 %vm514_vm0, %v3836_v46 }
 0x854   : > { %2888 = vmatmul.msk.f32.vlgmr.msrb.gmra.mxu1 %vm514_vm0, %v3836_v46 }
 0x8c9   : > { %v1107_v49 = vpop.f32.mrf.mxu1 }
 0x8ca   : > { %v1108_v52 = vadd.f32 %v1107_v49, %v1083_v48 }
 0x8cc   : > { %1139 = vrot.lane.b32.xlu1 %v1108_v52, %s4767_s24  ;;  %1141 = vrot.lane.b32.xlu0 %v1108_v52, %s4765_s15 }
 0x8cd   : > { %1143 = vrot.lane.b32.xlu2 %v1108_v52, %s4780_s28 }
 0x8d1   : > { %v1127_v20 = vpop.f32.mrf.mxu1 }
 0x8d2   : > { %v3888_v21 = vadd.f32 %v1127_v20, %v1084_v19 }
 0x8d4   : > { %1133 = vrot.lane.b32.xlu1 %v1108_v52, %s4781_s18  ;;  %1137 = vrot.lane.b32.xlu0 %v1108_v52, %s4782_s26 }
 0x8d5   : > { %1135 = vrot.lane.b32.xlu2 %v1108_v52, %s4783_s16 }
 0x8dc   : > { %1131 = vrot.lane.b32.xlu0 %v1108_v52, %s4779_s27 }
 0x927   : > { %v1144_v53 = vpop.permute.xlu2 %1143 }
 0x928   : > { %1181 = vrot.lane.b32.xlu2 %v1144_v53, %s4784_s25 }
 0x92f   : > { %v1136_v59 = vpop.permute.xlu2 %1135 }
 0x93e   : > { %v1140_v54 = vpop.permute.xlu1 %1139  ;;  %v1142_v55 = vpop.permute.xlu0 %1141 }
 0x93f   : > { %1177 = vrot.lane.b32.xlu0 %v1140_v54, %s4784_s25  ;;  %1179 = vrot.lane.b32.xlu1 %v1142_v55, %s4784_s25 }
 0x946   : > { %v1134_v56 = vpop.permute.xlu1 %1133  ;;  %v1138_v58 = vpop.permute.xlu0 %1137 }
 0x947   : > { %1171 = vrot.lane.b32.xlu0 %v1134_v56, %s4784_s25  ;;  %1175 = vrot.lane.b32.xlu2 %v1138_v58, %s4784_s25 }
 0x948   : > { %1173 = vrot.lane.b32.xlu1 %v1136_v59, %s4784_s25 }
 0x94e   : > { %v1132_v61 = vpop.permute.xlu0 %1131 }
 0x94f   : > { %1169 = vrot.lane.b32.xlu2 %v1132_v61, %s4784_s25 }
 0x950   : > { %1167 = vrot.lane.b32.xlu1 %v1108_v52, %s4784_s25 }
 0x982   : > { %v1182_v62 = vpop.permute.xlu2 %1181 }
 0x983   : > { %2889 = vmatpush.xpose.msk.msrb.mxu3 %vm611_vm1, %v1182_v62 }
 0x9a1   : > { %v1176_v2 = vpop.permute.xlu2 %1175 }
 0x9a9   : > { %v1170_v50 = vpop.permute.xlu2 %1169 }
 0x9b1   : > { %v1180_v0 = vpop.permute.xlu1 %1179  ;;  %v1178_v1 = vpop.permute.xlu0 %1177 }
 0x9b2   : > { %2890 = vmatpush.xpose.msk.msrb.mxu3 %vm611_vm1, %v1180_v0 }
 0x9b6   : > { %2891 = vmatpush.xpose.msk.msrb.mxu3 %vm611_vm1, %v1178_v1 }
 0x9b9   : > { %v1172_v4 = vpop.permute.xlu0 %1171 }
 0x9ba   : > { %2892 = vmatpush.xpose.msk.msrb.mxu3 %vm611_vm1, %v1176_v2  ;;  %v1174_v3 = vpop.permute.xlu1 %1173 }
 0x9be   : > { %2893 = vmatpush.xpose.msk.msrb.mxu3 %vm611_vm1, %v1174_v3 }
 0x9c2   : > { %2894 = vmatpush.xpose.msk.msrb.mxu3 %vm611_vm1, %v1172_v4  ;;  %v1168_v5 = vpop.permute.xlu1 %1167 }
 0x9c6   : > { %2895 = vmatpush.xpose.msk.msrb.mxu3 %vm611_vm1, %v1170_v50 }
 0x9ca   : > { %2896 = vmatpush.xpose.msk.msrb.mxu3 %vm611_vm1, %v1168_v5 }
 0x9cd   : > { %2897 = vmatmul.msk.f32.vlgmr.msrb.gmra.mxu3 %vm611_vm1, %v1108_v52 }
 0x9d5   : > { %2898 = vmatmul.msk.f32.gmra.mxu3 %vm611_vm1, %v1132_v61 }
 0x9dd   : > { %2899 = vmatmul.msk.f32.gmra.mxu3 %vm611_vm1, %v1134_v56 }
 0x9e5   : > { %2900 = vmatmul.msk.f32.gmra.mxu3 %vm611_vm1, %v1136_v59 }
 0x9ed   : > { %2901 = vmatmul.msk.f32.gmra.mxu3 %vm611_vm1, %v1138_v58 }
 0x9f5   : > { %2902 = vmatmul.msk.f32.gmra.mxu3 %vm611_vm1, %v1140_v54 }
 0x9fd   : > { %2903 = vmatmul.msk.f32.gmra.mxu3 %vm611_vm1, %v1142_v55 }
 0xa05   : > { %2904 = vmatmul.msk.f32.gmra.mxu3 %vm611_vm1, %v1144_v53 }
 0xa50   : > { %v1232_v6 = vpop.f32.mrf.mxu3 }
 0xa51   : > { %v1233_v7 = vadd.f32 %v1232_v6, %v3563_v36 }
 0xa53   : > { %v1256_v10 = vsel %vm514_vm0, %v1233_v7, -inf }
 0xa54   : > { %1257 = vmax.xlane.f32.xlu0 %v1256_v10 }
 0xa58   : > { %v1235_v11 = vpop.f32.mrf.mxu3 }
 0xa59   : > { %v1236_v12 = vadd.f32 %v1235_v11, %v3568_v40 }
 0xa5b   : > { %v1259_v14 = vsel %vm514_vm0, %v1236_v12, -inf }
 0xa5c   : > { %1260 = vmax.xlane.f32.xlu2 %v1259_v14 }
 0xa60   : > { %v1238_v8 = vpop.f32.mrf.mxu3 }
 0xa61   : > { %v1239_v15 = vadd.f32 %v1238_v8, %v3573_v44 }
 0xa63   : > { %v1262_v16 = vsel %vm514_vm0, %v1239_v15, -inf }
 0xa64   : > { %1263 = vmax.xlane.f32.xlu1 %v1262_v16 }
 0xa68   : > { %v1241_v17 = vpop.f32.mrf.mxu3 }
 0xa69   : > { %v1242_v18 = vadd.f32 %v1241_v17, %v3581_v51 }
 0xa6b   : > { %v1265_v36 = vsel %vm514_vm0, %v1242_v18, -inf }
 0xa6c   : > { %1266 = vmax.xlane.f32.xlu0 %v1265_v36 }
 0xa70   : > { %v1244_v40 = vpop.f32.mrf.mxu3 }
 0xa71   : > { %v1245_v51 = vadd.f32 %v1244_v40, %v3592_v57 }
 0xa73   : > { %v1268_v22 = vsel %vm514_vm0, %v1245_v51, -inf }
 0xa74   : > { %1158 = vrot.lane.b32.xlu2 %v3888_v21, %s4767_s24  ;;  %s4791_s24 = smov 56  }
 0xa78   : > { %v1247_v44 = vpop.f32.mrf.mxu3 }
 0xa79   : > { %v1248_v25 = vadd.f32 %v1247_v44, %v3601_v63 }
 0xa7b   : > { %v1271_v27 = vsel %vm514_vm0, %v1248_v25, -inf }
 0xa7d   : > { %1161 = vrot.lane.b32.xlu1 %v3888_v21, %s4765_s15  ;;  %s4790_s15 = smov 48  }
 0xa80   : > { %1164 = vrot.lane.b32.xlu0 %v3888_v21, %s4780_s28  ;;  %v1250_v23 = vpop.f32.mrf.mxu3 }
 0xa81   : > { %v1251_v24 = vadd.f32 %v1250_v23, %v3597_v60 }
 0xa83   : > { %v1274_v26 = vsel %vm514_vm0, %v1251_v24, -inf }
 0xa88   : > { %v1253_v38 = vpop.f32.mrf.mxu3 }
 0xa89   : > { %v1254_v43 = vadd.f32 %v1253_v38, %v3619_v13 }
 0xa8b   : > { %v1277_v47 = vsel %vm514_vm0, %v1254_v43, -inf }
 0xa9d   : > { %1269 = vmax.xlane.f32.xlu2 %v1268_v22 }
 0xaa5   : > { %1275 = vmax.xlane.f32.xlu2 %v1274_v26 }
 0xaa7   : > { %1272 = vmax.xlane.f32.xlu1 %v1271_v27 }
 0xabd   : > { %1152 = vrot.lane.b32.xlu2 %v3888_v21, %s4783_s16 }
 0xac0   : > { %1155 = vrot.lane.b32.xlu1 %v3888_v21, %s4782_s26 }
 0xac5   : > { %1149 = vrot.lane.b32.xlu2 %v3888_v21, %s4781_s18 }
 0xac7   : > { %v1258_v57 = vpop.xlane.xlu0 %1257 }
 0xac8   : > { %v1280_v28 = vsub.f32 %v1233_v7, %v1258_v57 }
 0xaca   : > { %v1288_v60 = vmul.f32 1.442695, %v1280_v28 }
 0xacc   : > { %3223 = vpow2.f32 %v1288_v60 }
 0xacd   : > { %1146 = vrot.lane.b32.xlu2 %v3888_v21, %s4779_s27 }
 0xacf   : > { %v1261_v35 = vpop.xlane.xlu2 %1260 }
 0xad0   : > { %v1281_v42 = vsub.f32 %v1236_v12, %v1261_v35 }
 0xad2   : > { %v3910_v63 = vpop.eup %3223  ;;  %v1290_v45 = vmul.f32 1.442695, %v1281_v42 }
 0xad3   : > { %v1304_v29 = vsel %vm514_vm0, %v3910_v63, 0.0 }
 0xad4   : > { %1305 = vadd.xlane.f32.xlu0 %v1304_v29 }
 0xad7   : > { %v1264_v30 = vpop.xlane.xlu1 %1263  ;;  %v1159_v56 = vpop.permute.xlu2 %1158 }
 0xad8   : > { %v1282_v31 = vsub.f32 %v1239_v15, %v1264_v30 }
 0xada   : > { %v1292_v32 = vmul.f32 1.442695, %v1282_v31 }
 0xadc   : > { %3225 = vpow2.f32 %v1292_v32 }
 0xadf   : > { %v1267_v33 = vpop.xlane.xlu0 %1266 }
 0xae0   : > { %v1283_v34 = vsub.f32 %v1242_v18, %v1267_v33 }
 0xae2   : > { %v3914_v37 = vpop.eup %3225  ;;  %v1294_v39 = vmul.f32 1.442695, %v1283_v34 }
 0xae3   : > { %v1310_v41 = vsel %vm514_vm0, %v3914_v37, 0.0 }
 0xae4   : > { %3227 = vpow2.f32 %v1294_v39  ;;  %1311 = vadd.xlane.f32.xlu0 %v1310_v41 }
 0xae5   : > { %3229 = vpow2.f32 %v1290_v45 }
 0xaea   : > { %v3920_v48 = vpop.eup %3227  ;;  %1278 = vmax.xlane.f32.xlu1 %v1277_v47 }
 0xaeb   : > { %v1313_v49 = vsel %vm514_vm0, %v3920_v48, 0.0  ;;  %v3230_v52 = vpop.eup %3229 }
 0xaec   : > { %1314 = vadd.xlane.f32.xlu0 %v1313_v49  ;;  %v1307_v55 = vsel %vm514_vm0, %v3230_v52, 0.0  ;;  %v2920_v49 = vld [vmem:[%s4727_s4 + $0x78] sm:$0xff] }
 0xaed   : > { %1469 = vmatpush.msra.mxu1 %v2920_v49 }
 0xaef   : > { %v1162_v54 = vpop.permute.xlu1 %1161 }
 0xaf2   : > { %v1165_v53 = vpop.permute.xlu0 %1164 }
 0xaf3   : > { %1376 = vmatpush.msrb.mxu0 %v1165_v53  ;;  %v2918_v53 = vld [vmem:[%s4727_s4 + $0x68] sm:$0xff] }
 0xaf5   : > { %1377 = vmatpush.msrb.mxu0 %v1162_v54  ;;  %v2917_v54 = vld [vmem:[%s4727_s4 + $0x60] sm:$0xff] }
 0xaf6   : > { %1308 = vadd.xlane.f32.xlu2 %v1307_v55  ;;  %v2916_v55 = vld [vmem:[%s4727_s4 + $0x58] sm:$0xff] }
 0xaf7   : > { %1378 = vmatpush.msrb.mxu0 %v1159_v56  ;;  %v2915_v56 = vld [vmem:[%s4727_s4 + $0x50] sm:$0xff] }
 0xb10   : > { %v1270_v13 = vpop.xlane.xlu2 %1269 }
 0xb11   : > { %v1284_v58 = vsub.f32 %v1245_v51, %v1270_v13  ;;  %v2914_v13 = vld [vmem:[%s4727_s4 + $0x48] sm:$0xff] }
 0xb13   : > { %v1296_v59 = vmul.f32 1.442695, %v1284_v58  ;;  %v2913_v58 = vld [vmem:[%s4727_s4 + $0x40] sm:$0xff] }
 0xb15   : > { %3231 = vpow2.f32 %v1296_v59 }
 0xb18   : > { %v1276_v61 = vpop.xlane.xlu2 %1275 }
 0xb19   : > { %v1286_v62 = vsub.f32 %v1251_v24, %v1276_v61 }
 0xb1a   : > { %v1273_v0 = vpop.xlane.xlu1 %1272 }
 0xb1b   : > { %v3232_v1 = vpop.eup %3231  ;;  %v1300_v2 = vmul.f32 1.442695, %v1286_v62  ;;  %v1285_v3 = vsub.f32 %v1248_v25, %v1273_v0 }
 0xb1c   : > { %v1316_v4 = vsel %vm514_vm0, %v3232_v1, 0.0 }
 0xb1d   : > { %3233 = vpow2.f32 %v1300_v2  ;;  %v1298_v50 = vmul.f32 1.442695, %v1285_v3  ;;  %1317 = vadd.xlane.f32.xlu0 %v1316_v4 }
 0xb1f   : > { %3235 = vpow2.f32 %v1298_v50 }
 0xb20   : > { %v1153_v6 = vpop.permute.xlu2 %1152 }
 0xb23   : > { %v3234_v5 = vpop.eup %3233 }
 0xb24   : > { %v1322_v7 = vsel %vm514_vm0, %v3234_v5, 0.0 }
 0xb25   : > { %v3236_v10 = vpop.eup %3235  ;;  %1323 = vadd.xlane.f32.xlu0 %v1322_v7 }
 0xb26   : > { %v1319_v11 = vsel %vm514_vm0, %v3236_v10, 0.0 }
 0xb27   : > { %1320 = vadd.xlane.f32.xlu1 %v1319_v11 }
 0xb28   : > { %v1150_v12 = vpop.permute.xlu2 %1149 }
 0xb30   : > { %v1147_v8 = vpop.permute.xlu2 %1146 }
 0xb32   : > { %v1156_v14 = vpop.permute.xlu1 %1155 }
 0xb33   : > { %1379 = vmatpush.msrb.mxu0 %v1156_v14 }
 0xb35   : > { %1380 = vmatpush.msrb.mxu0 %v1153_v6 }
 0xb37   : > { %1381 = vmatpush.msrb.mxu0 %v1150_v12  ;;  %v3164_v12 = vld [vmem:[%s4728_s5 + $0x1] ss:$0 sm:$0xff] }
 0xb39   : > { %1382 = vmatpush.msrb.mxu0 %v1147_v8 }
 0xb3b   : > { %1383 = vmatpush.msrb.mxu0 %v3888_v21 }
 0xb47   : > { %v1306_v15 = vpop.xlane.xlu0 %1305 }
 0xb48   : > { %3237 = vrcp.f32 %v1306_v15 }
 0xb4e   : > { %v3238_v16 = vpop.eup %3237 }
 0xb4f   : > { %v1336_v17 = vmul.f32 %v3238_v16, %v3910_v63 }
 0xb51   : > { %2905 = vmatmul.msk.f32.vlgmr.msrb.gmra.mxu0 %vm514_vm0, %v1336_v17 }
 0xb57   : > { %v1312_v51 = vpop.xlane.xlu0 %1311 }
 0xb5d   : > { %v1279_v18 = vpop.xlane.xlu1 %1278 }
 0xb5e   : > { %v1287_v36 = vsub.f32 %v1254_v43, %v1279_v18 }
 0xb5f   : > { %v1315_v23 = vpop.xlane.xlu0 %1314 }
 0xb60   : > { %v1302_v19 = vmul.f32 1.442695, %v1287_v36 }
 0xb62   : > { %3239 = vpow2.f32 %v1302_v19 }
 0xb68   : > { %v3240_v20 = vpop.eup %3239 }
 0xb69   : > { %v1309_v40 = vpop.xlane.xlu2 %1308  ;;  %v1325_v44 = vsel %vm514_vm0, %v3240_v20, 0.0 }
 0xb6a   : > { %3241 = vrcp.f32 %v1309_v40  ;;  %1326 = vadd.xlane.f32.xlu1 %v1325_v44  ;;  %v2932_v40 = vld [vmem:[%s4729_s6 + $0x78] sm:$0xff]  ;;  %v2930_v44 = vld [vmem:[%s4729_s6 + $0x68] sm:$0xff] }
 0xb6b   : > { %3243 = vrcp.f32 %v1312_v51  ;;  %v2929_v51 = vld [vmem:[%s4729_s6 + $0x60] sm:$0xff] }
 0xb6c   : > { %3245 = vrcp.f32 %v1315_v23  ;;  %v2926_v23 = vld [vmem:[%s4729_s6 + $0x48] sm:$0xff] }
 0xb70   : > { %v3242_v22 = vpop.eup %3241 }
 0xb71   : > { %v1337_v21 = vmul.f32 %v3242_v22, %v3230_v52  ;;  %v3244_v24 = vpop.eup %3243  ;;  %v2919_v52 = vld [vmem:[%s4727_s4 + $0x70] sm:$0xff]  ;;  %v2928_v22 = vld [vmem:[%s4729_s6 + $0x58] sm:$0xff] }
 0xb72   : > { %v1338_v25 = vmul.f32 %v3244_v24, %v3914_v37  ;;  %v3246_v26 = vpop.eup %3245  ;;  %1470 = vmatpush.msra.mxu1 %v2919_v52  ;;  %v2925_v24 = vld [vmem:[%s4729_s6 + $0x40] sm:$0xff] }
 0xb73   : > { %2906 = vmatmul.msk.f32.gmra.mxu0 %vm514_vm0, %v1337_v21  ;;  %v1339_v27 = vmul.f32 %v3246_v26, %v3920_v48  ;;  %v2927_v21 = vld [vmem:[%s4729_s6 + $0x50] sm:$0xff] }
 0xb74   : > { %1471 = vmatpush.msra.mxu1 %v2918_v53  ;;  %v2949_v26 = vld [vmem:[%s4731_s8 + $0xf0] sm:$0xff]  ;;  %v3166_v53 = vld [vmem:[%s4734_s11 + $0x1] ss:$0 sm:$0xff] }
 0xb76   : > { %1472 = vmatpush.msra.mxu1 %v2917_v54 }
 0xb78   : > { %1473 = vmatpush.msra.mxu1 %v2916_v55 }
 0xb7a   : > { %1474 = vmatpush.msra.mxu1 %v2915_v56  ;;  %v2937_v56 = vld [vmem:[%s4731_s8 + $0x90] sm:$0xff] }
 0xb7b   : > { %2907 = vmatmul.msk.f32.gmra.mxu0 %vm514_vm0, %v1338_v25  ;;  %v2950_v25 = vld [vmem:[%s4731_s8 + $0xf8] sm:$0xff] }
 0xb7c   : > { %1475 = vmatpush.msra.mxu1 %v2914_v13  ;;  %1576 = vmatpush.msrb.mxu2 %v2950_v25  ;;  %v2936_v13 = vld [vmem:[%s4731_s8 + $0x88] sm:$0xff] }
 0xb7e   : > { %1476 = vmatpush.msra.mxu1 %v2913_v58  ;;  %1577 = vmatpush.msrb.mxu2 %v2949_v26  ;;  %v2935_v58 = vld [vmem:[%s4731_s8 + $0x80] sm:$0xff] }
 0xb80   : > { %1541 = vmatpush.msrb.mxu1 %v2932_v40  ;;  %v2958_v40 = vld [vmem:[%s4725_s2 + $0x120] sm:$0xff] }
 0xb83   : > { %2908 = vmatmul.msk.f32.gmra.mxu0 %vm514_vm0, %v1339_v27  ;;  %v2948_v27 = vld [vmem:[%s4731_s8 + $0xe8] sm:$0xff] }
 0xb84   : > { %1578 = vmatpush.msrb.mxu2 %v2948_v27 }
 0xb90   : > { %v1318_v57 = vpop.xlane.xlu0 %1317 }
 0xb91   : > { %3247 = vrcp.f32 %v1318_v57 }
 0xb97   : > { %v3248_v28 = vpop.eup %3247 }
 0xb98   : > { %v1340_v60 = vmul.f32 %v3248_v28, %v3232_v1  ;;  %v1324_v29 = vpop.xlane.xlu0 %1323 }
 0xb9a   : > { %v1321_v63 = vpop.xlane.xlu1 %1320  ;;  %2909 = vmatmul.msk.f32.gmra.mxu0 %vm514_vm0, %v1340_v60  ;;  %v2947_v60 = vld [vmem:[%s4731_s8 + $0xe0] sm:$0xff] }
 0xb9b   : > { %3249 = vrcp.f32 %v1321_v63  ;;  %1579 = vmatpush.msrb.mxu2 %v2947_v60 }
 0xb9c   : > { %3251 = vrcp.f32 %v1324_v29  ;;  %v2946_v29 = vld [vmem:[%s4731_s8 + $0xd8] sm:$0xff] }
 0xb9d   : > { %1580 = vmatpush.msrb.mxu2 %v2946_v29  ;;  %v3169_v29 = vld [vmem:[%s4735_s12 + $0x1] ss:$0 sm:$0xff] }
 0xba1   : > { %v3250_v30 = vpop.eup %3249 }
 0xba2   : > { %v1341_v31 = vmul.f32 %v3250_v30, %v3236_v10  ;;  %v3252_v32 = vpop.eup %3251  ;;  %v2945_v30 = vld [vmem:[%s4731_s8 + $0xd0] sm:$0xff] }
 0xba3   : > { %v1342_v33 = vmul.f32 %v3252_v32, %v3234_v5  ;;  %1581 = vmatpush.msrb.mxu2 %v2945_v30  ;;  %v2943_v32 = vld [vmem:[%s4731_s8 + $0xc0] sm:$0xff] }
 0xba4   : > { %2910 = vmatmul.msk.f32.gmra.mxu0 %vm514_vm0, %v1341_v31  ;;  %v2944_v31 = vld [vmem:[%s4731_s8 + $0xc8] sm:$0xff] }
 0xba5   : > { %1582 = vmatpush.msrb.mxu2 %v2944_v31 }
 0xba7   : > { %1583 = vmatpush.msrb.mxu2 %v2943_v32  ;;  %v3170_v32 = vld [vmem:[%s4736_s13 + $0x1] ss:$0 sm:$0xff] }
 0xbac   : > { %2911 = vmatmul.msk.f32.gmra.mxu0 %vm514_vm0, %v1342_v33 }
 0xbce   : > { %v1385_v38 = vpop.f32.mrf.mxu0 }
 0xbdd   : > { %v1327_v34 = vpop.xlane.xlu1 %1326 }
 0xbde   : > { %3253 = vrcp.f32 %v1327_v34  ;;  %v2942_v34 = vld [vmem:[%s4731_s8 + $0xb8] sm:$0xff] }
 0xbdf   : > { %1584 = vmatpush.msrb.mxu2 %v2942_v34 }
 0xbe4   : > { %v3254_v35 = vpop.eup %3253 }
 0xbe5   : > { %v1343_v37 = vmul.f32 %v3254_v35, %v3240_v20 }
 0xbe7   : > { %2912 = vmatmul.msk.f32.gmra.mxu0 %vm514_vm0, %v1343_v37  ;;  %v2941_v37 = vld [vmem:[%s4731_s8 + $0xb0] sm:$0xff] }
 0xbe8   : > { %1585 = vmatpush.msrb.mxu2 %v2941_v37 }
 0xbf0   : > { %v1388_v39 = vpop.f32.mrf.mxu0 }
 0xbf1   : > { %1410 = vrot.lane.b32.xlu0 %v1388_v39, %s4785_s22  ;;  %v2940_v39 = vld [vmem:[%s4731_s8 + $0xa8] sm:$0xff] }
 0xbf2   : > { %1586 = vmatpush.msrb.mxu2 %v2940_v39 }
 0xbf8   : > { %v1391_v41 = vpop.f32.mrf.mxu0 }
 0xbf9   : > { %1414 = vrot.lane.b32.xlu2 %v1391_v41, %s4786_s19  ;;  %s4796_s19 = smov 40  }
 0xc00   : > { %v1394_v42 = vpop.f32.mrf.mxu0 }
 0xc01   : > { %1418 = vrot.lane.b32.xlu1 %v1394_v42, %s4787_s20  ;;  %v2939_v42 = vld [vmem:[%s4731_s8 + $0xa0] sm:$0xff] }
 0xc02   : > { %1587 = vmatpush.msrb.mxu2 %v2939_v42 }
 0xc17   : > { %v1397_v43 = vpop.f32.mrf.mxu0 }
 0xc18   : > { %1422 = vrot.lane.b32.xlu0 %v1397_v43, %s4788_s23 }
 0xc21   : > { %v1400_v45 = vpop.f32.mrf.mxu0 }
 0xc22   : > { %1426 = vrot.lane.b32.xlu2 %v1400_v45, %s4789_s17  ;;  %v2938_v45 = vld [vmem:[%s4731_s8 + $0x98] sm:$0xff] }
 0xc23   : > { %1588 = vmatpush.msrb.mxu2 %v2938_v45 }
 0xc25   : > { %1589 = vmatpush.msrb.mxu2 %v2937_v56 }
 0xc27   : > { %1590 = vmatpush.msrb.mxu2 %v2936_v13 }
 0xc29   : > { %v1403_v47 = vpop.f32.mrf.mxu0  ;;  %1591 = vmatpush.msrb.mxu2 %v2935_v58 }
 0xc2a   : > { %1430 = vrot.lane.b32.xlu0 %v1403_v47, %s4790_s15  ;;  %s4798_s15 = smov 56  }
 0xc53   : > { %v1415_v62 = vpop.permute.xlu2 %1414 }
 0xc63   : > { %v1411_v59 = vpop.permute.xlu0 %1410 }
 0xc64   : > { %v1406_v48 = vpop.f32.mrf.mxu0  ;;  %v1437_v0 = vsel %vm611_vm1, %v1385_v38, %v1411_v59  ;;  %v3167_v59 = vld [vmem:[%s4730_s7 + $0x1] ss:$0 sm:$0xff] }
 0xc65   : > { %1434 = vrot.lane.b32.xlu1 %v1406_v48, %s4791_s24  ;;  %v1438_v2 = vsel %vm867_vm2, %v1437_v0, %v1415_v62  ;;  %v3165_v48 = vld [vmem:[%s4733_s10 + $0x1] ss:$0 sm:$0xff]  ;;  %s4797_s24 = smov 48  }
 0xc73   : > { %v1419_v1 = vpop.permute.xlu1 %1418 }
 0xc74   : > { %v1439_v3 = vsel %vm869_vm3, %v1438_v2, %v1419_v1  ;;  %v3168_v1 = vld [vmem:[%s4732_s9 + $0x1] ss:$0 sm:$0xff] }
 0xc7c   : > { %v1427_v5 = vpop.permute.xlu2 %1426 }
 0xc8a   : > { %v1423_v61 = vpop.permute.xlu0 %1422 }
 0xc8b   : > { %v1440_v4 = vsel %vm871_vm4, %v1439_v3, %v1423_v61 }
 0xc8c   : > { %v1441_v6 = vsel %vm873_vm5, %v1440_v4, %v1427_v5 }
 0xc9c   : > { %v1431_v50 = vpop.permute.xlu0 %1430 }
 0xc9d   : > { %v1442_v7 = vsel %vm875_vm6, %v1441_v6, %v1431_v50 }
 0xcd7   : > { %v1435_v10 = vpop.permute.xlu1 %1434 }
 0xcd8   : > { %v1443_v11 = vsel %vm877_vm7, %v1442_v7, %v1435_v10 }
 0xcd9   : > { %2922 = vmatmul.msk.f32.vlgmr.msra.gmra.mxu1 %vm514_vm0, %v1443_v11 }
 0xd56   : > { %v1478_v14 = vpop.f32.mrf.mxu1 }
 0xd57   : > { %v1479_v8 = vadd.f32 %v3164_v12, %v1478_v14  ;;  %v2968_v12 = vld [vmem:[%s4725_s2 + $0x170] sm:$0xff]  ;;  %v2969_v14 = vld [vmem:[%s4725_s2 + $0x178] sm:$0xff] }
 0xd58   : > { %1686 = vmatpush.msra.mxu2 %v2969_v14 }
 0xd59   : > { %v1481_v15 = vadd.f32 %v1479_v8, %v3836_v46  ;;  %v2931_v46 = vld [vmem:[%s4729_s6 + $0x70] sm:$0xff]  ;;  %v2966_v8 = vld [vmem:[%s4725_s2 + $0x160] sm:$0xff] }
 0xd5a   : > { %1542 = vmatpush.msrb.mxu1 %v2931_v46  ;;  %v2959_v46 = vld [vmem:[%s4725_s2 + $0x128] sm:$0xff] }
 0xd5b   : > { %v1486_v16 = vsel %vm514_vm0, %v1481_v15, 0.0 }
 0xd5c   : > { %1487 = vadd.xlane.f32.xlu2 %v1486_v16  ;;  %1543 = vmatpush.msrb.mxu1 %v2930_v44  ;;  %v2964_v16 = vld [vmem:[%s4725_s2 + $0x150] sm:$0xff] }
 0xd5d   : > { %v2956_v44 = vld [vmem:[%s4725_s2 + $0x110] sm:$0xff] }
 0xd5e   : > { %1544 = vmatpush.msrb.mxu1 %v2929_v51  ;;  %v2957_v51 = vld [vmem:[%s4725_s2 + $0x118] sm:$0xff] }
 0xd60   : > { %1545 = vmatpush.msrb.mxu1 %v2928_v22  ;;  %v2954_v22 = vld [vmem:[%s4725_s2 + $0x100] sm:$0xff] }
 0xd62   : > { %1546 = vmatpush.msrb.mxu1 %v2927_v21  ;;  %v2955_v21 = vld [vmem:[%s4725_s2 + $0x108] sm:$0xff] }
 0xd64   : > { %1547 = vmatpush.msrb.mxu1 %v2926_v23 }
 0xd66   : > { %1548 = vmatpush.msrb.mxu1 %v2925_v24 }
 0xd68   : > { %1666 = vmatpush.msra.mxu1 %v2968_v12  ;;  %v4193_v12 = vld [vmem:[%s3560_s21 + $0x18] sm:$0xff] }
 0xd6a   : > { %1667 = vmatpush.msra.mxu1 %v2966_v8 }
 0xd6c   : > { %1668 = vmatpush.msra.mxu1 %v2964_v16  ;;  %v4198_v16 = vld [vmem:[%s3560_s21 + $0x20] sm:$0xff] }
 0xdcf   : > { %v1488_v17 = vpop.xlane.xlu2 %1487 }
 0xdd0   : > { %v1489_v18 = vmul.f32 %v1488_v17, %v3688_v9  ;;  %v2965_v17 = vld [vmem:[%s4725_s2 + $0x158] sm:$0xff] }
 0xdd2   : > { %v1490_v36 = vsub.f32 %v1481_v15, %v1489_v18  ;;  %v2967_v15 = vld [vmem:[%s4725_s2 + $0x168] sm:$0xff]  ;;  %v2962_v18 = vld [vmem:[%s4725_s2 + $0x140] sm:$0xff] }
 0xdd3   : > { %1687 = vmatpush.msra.mxu2 %v2967_v15  ;;  %1669 = vmatpush.msra.mxu1 %v2962_v18 }
 0xdd4   : > { %v1491_v19 = vmul.f32 %v1490_v36, %v1490_v36 }
 0xdd5   : > { %1688 = vmatpush.msra.mxu2 %v2965_v17 }
 0xdd6   : > { %v1492_v20 = vsel %vm514_vm0, %v1491_v19, 0.0  ;;  %v2960_v19 = vld [vmem:[%s4725_s2 + $0x130] sm:$0xff] }
 0xdd7   : > { %1493 = vadd.xlane.f32.xlu0 %v1492_v20  ;;  %v2961_v20 = vld [vmem:[%s4725_s2 + $0x138] sm:$0xff]  ;;  %1670 = vmatpush.msra.mxu1 %v2960_v19  ;;  %v4203_v19 = vld [vmem:[%s3560_s21 + $0x28] sm:$0xff] }
 0xdd9   : > { %1671 = vmatpush.msra.mxu1 %v2958_v40 }
 0xddb   : > { %1672 = vmatpush.msra.mxu1 %v2956_v44  ;;  %v4211_v44 = vld [vmem:[%s3560_s21 + $0x30] sm:$0xff] }
 0xddd   : > { %1673 = vmatpush.msra.mxu1 %v2954_v22 }
 0xe4a   : > { %v1494_v57 = vpop.xlane.xlu0 %1493 }
 0xe4b   : > { %v1495_v28 = vmul.f32 %v1494_v57, %v3688_v9 }
 0xe4d   : > { %v1496_v63 = vadd.f32 1e-05, %v1495_v28 }
 0xe4f   : > { %3255 = vrsqrt.f32 %v1496_v63  ;;  %vm1503_vm8 = vweird.f32 %v1496_v63 }
 0xe55   : > { %v3256_v33 = vpop.eup %3255 }
 0xe56   : > { %v1498_v35 = vmul.f32 %v3256_v33, %v1496_v63  ;;  %vm1504_vm15 = vweird.f32 %v3256_v33 }
 0xe57   : > { %vm1505_vm9 = vmor %vm1503_vm8, %vm1504_vm15 }
 0xe58   : > { %v1499_v38 = vmul.f32 %v3256_v33, %v1498_v35  ;;  %v4140_v35 = vld [vmem:[%s4726_s3 + $0x4] sm:$0x3] }
 0xe59   : > { %v1651_v37 = vperm.slane %v4140_v35, 0 }
 0xe5a   : > { %v1500_v41 = vmul.f32 0.5, %v1499_v38 }
 0xe5c   : > { %v1501_v43 = vsub.f32 1.5, %v1500_v41 }
 0xe5e   : > { %v1502_v47 = vmul.f32 %v3256_v33, %v1501_v43 }
 0xe60   : > { %v1506_v49 = vsel %vm1505_vm9, %v3256_v33, %v1502_v47 }
 0xe61   : > { %v1507_v52 = vmul.f32 %v1506_v49, %v1490_v36  ;;  %v2963_v36 = vld [vmem:[%s4725_s2 + $0x148] sm:$0xff] }
 0xe62   : > { %1689 = vmatpush.msra.mxu2 %v2963_v36 }
 0xe63   : > { %v1511_v54 = vmul.f32 %v3165_v48, %v1507_v52 }
 0xe64   : > { %1690 = vmatpush.msra.mxu2 %v2961_v20 }
 0xe65   : > { %v1515_v55 = vadd.f32 %v3166_v53, %v1511_v54 }
 0xe66   : > { %1691 = vmatpush.msra.mxu2 %v2959_v46 }
 0xe67   : > { %2934 = vmatmul.msk.f32.vlgmr.msrb.gmra.mxu1 %vm514_vm0, %v1515_v55 }
 0xe68   : > { %1692 = vmatpush.msra.mxu2 %v2957_v51 }
 0xe6a   : > { %1693 = vmatpush.msra.mxu2 %v2955_v21  ;;  %v1652_v21 = vperm.slane %v4140_v35, 1 }
 0xee4   : > { %v1550_v61 = vpop.f32.mrf.mxu1 }
 0xee5   : > { %v1551_v62 = vadd.f32 %v3167_v59, %v1550_v61 }
 0xee7   : > { %v1553_v0 = vmax.f32 %v1551_v62, 0.0  ;;  %v4175_v62 = vld [vmem:[%s3560_s21] sm:$0xff] }
 0xee9   : > { %1592 = vmatmul.f32.vlgmr.msrb.gmra.mxu2 %v1553_v0 }
 0xf6c   : > { %v1593_v2 = vpop.f32.mrf.mxu2 }
 0xf6d   : > { %v1594_v3 = vadd.f32 %v3168_v1, %v1593_v2 }
 0xf6f   : > { %v1596_v4 = vadd.f32 %v1594_v3, %v1515_v55  ;;  %v4180_v3 = vld [vmem:[%s3560_s21 + $0x8] sm:$0xff] }
 0xf71   : > { %v1601_v50 = vsel %vm514_vm0, %v1596_v4, 0.0 }
 0xf72   : > { %1602 = vadd.xlane.f32.xlu1 %v1601_v50 }
 0xfe5   : > { %v1603_v5 = vpop.xlane.xlu1 %1602 }
 0xfe6   : > { %v1604_v6 = vmul.f32 %v1603_v5, %v3688_v9 }
 0xfe8   : > { %v1605_v7 = vsub.f32 %v1596_v4, %v1604_v6  ;;  %v4188_v6 = vld [vmem:[%s3560_s21 + $0x10] sm:$0xff] }
 0xfea   : > { %v1606_v10 = vmul.f32 %v1605_v7, %v1605_v7 }
 0xfec   : > { %v1607_v11 = vsel %vm514_vm0, %v1606_v10, 0.0 }
 0xfed   : > { %1608 = vadd.xlane.f32.xlu2 %v1607_v11 }
0x1060   : > { %v1609_v23 = vpop.xlane.xlu2 %1608 }
0x1061   : > { %v1610_v24 = vmul.f32 %v1609_v23, %v3688_v9 }
0x1063   : > { %v1611_v25 = vadd.f32 1e-05, %v1610_v24 }
0x1065   : > { %3257 = vrsqrt.f32 %v1611_v25  ;;  %vm1618_vm11 = vweird.f32 %v1611_v25 }
0x106b   : > { %v3258_v26 = vpop.eup %3257 }
0x106c   : > { %v1613_v27 = vmul.f32 %v3258_v26, %v1611_v25  ;;  %vm1619_vm10 = vweird.f32 %v3258_v26 }
0x106d   : > { %vm1620_vm12 = vmor %vm1618_vm11, %vm1619_vm10 }
0x106e   : > { %v1614_v57 = vmul.f32 %v3258_v26, %v1613_v27 }
0x1070   : > { %v1615_v28 = vmul.f32 0.5, %v1614_v57 }
0x1072   : > { %v1616_v60 = vsub.f32 1.5, %v1615_v28 }
0x1074   : > { %v1617_v63 = vmul.f32 %v3258_v26, %v1616_v60 }
0x1076   : > { %v1621_v30 = vsel %vm1620_vm12, %v3258_v26, %v1617_v63  ;;  %v4227_v26 = vld [vmem:[%s3560_s21 + $0x38] sm:$0xff]  ;;  %s4794_s21 = smov 16  }
0x1077   : > { %v1622_v31 = vmul.f32 %v1621_v30, %v1605_v7 }
0x1079   : > { %v1626_v33 = vmul.f32 %v3169_v29, %v1622_v31 }
0x107b   : > { %v4131_v34 = vadd.f32 %v3170_v32, %v1626_v33 }
0x107d   : > { %2971 = vmatmul.msk.f32.vlgmr.msra.gmra.mxu1 %vm514_vm0, %v4131_v34  ;;  %2972 = vmatmul.msk.f32.vlgmr.msra.gmra.mxu2 %vm514_vm0, %v4131_v34 }
0x10fa   : > { %v1675_v38 = vpop.f32.mrf.mxu1 }
0x10fb   : > { %v1676_v39 = vadd.f32 %v1675_v38, %v1651_v37 }
0x10fd   : > { %1707 = vrot.lane.b32.xlu2 %v1676_v39, %s4792_s14  ;;  %1709 = vrot.lane.b32.xlu1 %v1676_v39, %s4793_s29 }
0x10fe   : > { %1711 = vrot.lane.b32.xlu0 %v1676_v39, %s4780_s28 }
0x1100   : > { %v1695_v23 = vpop.f32.mrf.mxu2 }
0x1101   : > { %v4216_v24 = vadd.f32 %v1695_v23, %v1652_v21 }
0x1105   : > { %1699 = vrot.lane.b32.xlu2 %v1676_v39, %s4779_s27  ;;  %1703 = vrot.lane.b32.xlu1 %v1676_v39, %s4783_s16 }
0x1106   : > { %1705 = vrot.lane.b32.xlu0 %v1676_v39, %s4782_s26 }
0x110e   : > { %1701 = vrot.lane.b32.xlu0 %v1676_v39, %s4781_s18 }
0x1157   : > { %v1708_v41 = vpop.permute.xlu2 %1707 }
0x1158   : > { %1745 = vrot.lane.b32.xlu2 %v1708_v41, %s4784_s25 }
0x115f   : > { %v1700_v48 = vpop.permute.xlu2 %1699 }
0x116f   : > { %v1710_v42 = vpop.permute.xlu1 %1709 }
0x1170   : > { %v1712_v43 = vpop.permute.xlu0 %1711  ;;  %1747 = vrot.lane.b32.xlu0 %v1710_v42, %s4784_s25 }
0x1171   : > { %1749 = vrot.lane.b32.xlu1 %v1712_v43, %s4784_s25 }
0x1177   : > { %v1704_v45 = vpop.permute.xlu1 %1703 }
0x1178   : > { %v1706_v47 = vpop.permute.xlu0 %1705  ;;  %1741 = vrot.lane.b32.xlu0 %v1704_v45, %s4784_s25 }
0x1179   : > { %1743 = vrot.lane.b32.xlu1 %v1706_v47, %s4784_s25 }
0x1180   : > { %v1702_v49 = vpop.permute.xlu0 %1701  ;;  %1735 = vrot.lane.b32.xlu0 %v1676_v39, %s4784_s25 }
0x1181   : > { %1737 = vrot.lane.b32.xlu1 %v1700_v48, %s4784_s25  ;;  %1739 = vrot.lane.b32.xlu2 %v1702_v49, %s4784_s25 }
0x11b2   : > { %v1746_v54 = vpop.permute.xlu2 %1745 }
0x11db   : > { %v1740_v13 = vpop.permute.xlu2 %1739 }
0x11e2   : > { %v1748_v53 = vpop.permute.xlu0 %1747 }
0x11e3   : > { %v1750_v52 = vpop.permute.xlu1 %1749 }
0x11e4   : > { %2973 = vmatpush.xpose.msk.msra.mxu0 %vm611_vm1, %v1750_v52 }
0x11e8   : > { %2974 = vmatpush.xpose.msk.msra.mxu0 %vm611_vm1, %v1748_v53 }
0x11ea   : > { %v1742_v56 = vpop.permute.xlu0 %1741 }
0x11eb   : > { %v1744_v55 = vpop.permute.xlu1 %1743 }
0x11ec   : > { %2975 = vmatpush.xpose.msk.msra.mxu0 %vm611_vm1, %v1746_v54 }
0x11f0   : > { %2976 = vmatpush.xpose.msk.msra.mxu0 %vm611_vm1, %v1744_v55 }
0x11f2   : > { %v1736_v59 = vpop.permute.xlu0 %1735 }
0x11f3   : > { %v1738_v58 = vpop.permute.xlu1 %1737 }
0x11f4   : > { %2977 = vmatpush.xpose.msk.msra.mxu0 %vm611_vm1, %v1742_v56 }
0x11f8   : > { %2978 = vmatpush.xpose.msk.msra.mxu0 %vm611_vm1, %v1740_v13 }
0x11fc   : > { %2979 = vmatpush.xpose.msk.msra.mxu0 %vm611_vm1, %v1738_v58 }
0x1200   : > { %2980 = vmatpush.xpose.msk.msra.mxu0 %vm611_vm1, %v1736_v59 }
0x1203   : > { %2981 = vmatmul.msk.f32.vlgmr.msra.gmra.mxu0 %vm611_vm1, %v1676_v39 }
0x120b   : > { %2982 = vmatmul.msk.f32.gmra.mxu0 %vm611_vm1, %v1700_v48 }
0x1213   : > { %2983 = vmatmul.msk.f32.gmra.mxu0 %vm611_vm1, %v1702_v49 }
0x121b   : > { %2984 = vmatmul.msk.f32.gmra.mxu0 %vm611_vm1, %v1704_v45 }
0x1223   : > { %2985 = vmatmul.msk.f32.gmra.mxu0 %vm611_vm1, %v1706_v47 }
0x122b   : > { %2986 = vmatmul.msk.f32.gmra.mxu0 %vm611_vm1, %v1708_v41 }
0x1233   : > { %2987 = vmatmul.msk.f32.gmra.mxu0 %vm611_vm1, %v1710_v42 }
0x123b   : > { %2988 = vmatmul.msk.f32.gmra.mxu0 %vm611_vm1, %v1712_v43 }
0x1280   : > { %v1800_v61 = vpop.f32.mrf.mxu0 }
0x1281   : > { %v1801_v0 = vadd.f32 %v4175_v62, %v1800_v61 }
0x1283   : > { %v1824_v1 = vsel %vm514_vm0, %v1801_v0, -inf }
0x1284   : > { %1825 = vmax.xlane.f32.xlu1 %v1824_v1 }
0x1288   : > { %v1803_v2 = vpop.f32.mrf.mxu0 }
0x1289   : > { %v4183_v4 = vadd.f32 %v4180_v3, %v1803_v2 }
0x128b   : > { %v1827_v50 = vsel %vm514_vm0, %v4183_v4, -inf }
0x128c   : > { %1828 = vmax.xlane.f32.xlu2 %v1827_v50 }
0x1290   : > { %v1806_v5 = vpop.f32.mrf.mxu0 }
0x1291   : > { %v1807_v7 = vadd.f32 %v4188_v6, %v1806_v5 }
0x1293   : > { %v1830_v10 = vsel %vm514_vm0, %v1807_v7, -inf }
0x1294   : > { %1831 = vmax.xlane.f32.xlu0 %v1830_v10 }
0x1298   : > { %v1809_v11 = vpop.f32.mrf.mxu0 }
0x1299   : > { %v1810_v14 = vadd.f32 %v4193_v12, %v1809_v11 }
0x129b   : > { %v1833_v8 = vsel %vm514_vm0, %v1810_v14, -inf }
0x129c   : > { %1834 = vmax.xlane.f32.xlu1 %v1833_v8 }
0x12a0   : > { %v1812_v15 = vpop.f32.mrf.mxu0 }
0x12a1   : > { %v1813_v17 = vadd.f32 %v4198_v16, %v1812_v15 }
0x12a3   : > { %v1836_v18 = vsel %vm514_vm0, %v1813_v17, -inf }
0x12a4   : > { %1837 = vmax.xlane.f32.xlu2 %v1836_v18 }
0x12a8   : > { %v1815_v36 = vpop.f32.mrf.mxu0 }
0x12a9   : > { %v4206_v20 = vadd.f32 %v4203_v19, %v1815_v36 }
0x12ab   : > { %v1839_v40 = vsel %vm514_vm0, %v4206_v20, -inf }
0x12ac   : > { %1840 = vmax.xlane.f32.xlu0 %v1839_v40 }
0x12b0   : > { %v1818_v46 = vpop.f32.mrf.mxu0 }
0x12b1   : > { %v1819_v51 = vadd.f32 %v4211_v44, %v1818_v46 }
0x12b3   : > { %v1842_v22 = vsel %vm514_vm0, %v1819_v51, -inf }
0x12b4   : > { %1843 = vmax.xlane.f32.xlu1 %v1842_v22 }
0x12b8   : > { %v1821_v25 = vpop.f32.mrf.mxu0 }
0x12b9   : > { %v4230_v27 = vadd.f32 %v4227_v26, %v1821_v25 }
0x12bb   : > { %v1845_v57 = vsel %vm514_vm0, %v4230_v27, -inf }
0x12bc   : > { %1729 = vrot.lane.b32.xlu2 %v4216_v24, %s4793_s29 }
0x12c0   : > { %1732 = vrot.lane.b32.xlu0 %v4216_v24, %s4780_s28 }
0x12c4   : > { %1723 = vrot.lane.b32.xlu2 %v4216_v24, %s4782_s26 }
0x12cd   : > { %1726 = vrot.lane.b32.xlu1 %v4216_v24, %s4792_s14 }
0x12ed   : > { %1846 = vmax.xlane.f32.xlu2 %v1845_v57 }
0x12f7   : > { %v1826_v28 = vpop.xlane.xlu1 %1825 }
0x12f8   : > { %v1848_v60 = vsub.f32 %v1801_v0, %v1826_v28 }
0x12fa   : > { %v1856_v63 = vmul.f32 1.442695, %v1848_v60 }
0x12fc   : > { %3259 = vpow2.f32 %v1856_v63 }
0x12ff   : > { %v1829_v35 = vpop.xlane.xlu2 %1828 }
0x1300   : > { %v1849_v48 = vsub.f32 %v4183_v4, %v1829_v35 }
0x1302   : > { %v4234_v29 = vpop.eup %3259  ;;  %v1858_v53 = vmul.f32 1.442695, %v1849_v48 }
0x1303   : > { %v1872_v30 = vsel %vm514_vm0, %v4234_v29, 0.0 }
0x1304   : > { %1873 = vadd.xlane.f32.xlu1 %v1872_v30 }
0x1305   : > { %1720 = vrot.lane.b32.xlu2 %v4216_v24, %s4783_s16 }
0x1307   : > { %v1832_v31 = vpop.xlane.xlu0 %1831 }
0x1308   : > { %v1850_v32 = vsub.f32 %v1807_v7, %v1832_v31 }
0x130a   : > { %v1860_v33 = vmul.f32 1.442695, %v1850_v32 }
0x130c   : > { %3261 = vpow2.f32 %v1860_v33 }
0x130d   : > { %1717 = vrot.lane.b32.xlu2 %v4216_v24, %s4781_s18 }
0x130f   : > { %v1835_v37 = vpop.xlane.xlu1 %1834 }
0x1310   : > { %v1851_v38 = vsub.f32 %v1810_v14, %v1835_v37 }
0x1312   : > { %v4242_v39 = vpop.eup %3261  ;;  %v1862_v41 = vmul.f32 1.442695, %v1851_v38 }
0x1313   : > { %v1878_v42 = vsel %vm514_vm0, %v4242_v39, 0.0 }
0x1314   : > { %3263 = vpow2.f32 %v1862_v41  ;;  %1879 = vadd.xlane.f32.xlu1 %v1878_v42 }
0x1315   : > { %1714 = vrot.lane.b32.xlu2 %v4216_v24, %s4779_s27 }
0x1317   : > { %v1838_v43 = vpop.xlane.xlu2 %1837 }
0x1318   : > { %v1852_v45 = vsub.f32 %v1813_v17, %v1838_v43 }
0x131a   : > { %v4248_v47 = vpop.eup %3263  ;;  %v1864_v49 = vmul.f32 1.442695, %v1852_v45 }
0x131b   : > { %v1881_v52 = vsel %vm514_vm0, %v4248_v47, 0.0 }
0x131c   : > { %3265 = vpow2.f32 %v1864_v49  ;;  %1882 = vadd.xlane.f32.xlu1 %v1881_v52 }
0x131d   : > { %3267 = vpow2.f32 %v1858_v53 }
0x131f   : > { %v1841_v59 = vpop.xlane.xlu0 %1840  ;;  %v1730_v7 = vpop.permute.xlu2 %1729 }
0x1320   : > { %v1853_v1 = vsub.f32 %v4206_v20, %v1841_v59  ;;  %v3003_v59 = vld [vmem:[%s4727_s4 + $0xb0] sm:$0xff] }
0x1322   : > { %v3266_v54 = vpop.eup %3265  ;;  %v1866_v2 = vmul.f32 1.442695, %v1853_v1  ;;  %v3000_v1 = vld [vmem:[%s4727_s4 + $0x98] sm:$0xff] }
0x1323   : > { %v1884_v55 = vsel %vm514_vm0, %v3266_v54, 0.0  ;;  %v3268_v13 = vpop.eup %3267 }
0x1324   : > { %1885 = vadd.xlane.f32.xlu0 %v1884_v55  ;;  %v1875_v0 = vsel %vm514_vm0, %v3268_v13, 0.0 }
0x1327   : > { %v1844_v56 = vpop.xlane.xlu1 %1843  ;;  %v1724_v8 = vpop.permute.xlu2 %1723 }
0x1328   : > { %v1854_v58 = vsub.f32 %v1819_v51, %v1844_v56 }
0x132a   : > { %v1868_v61 = vmul.f32 1.442695, %v1854_v58  ;;  %v3004_v58 = vld [vmem:[%s4727_s4 + $0xb8] sm:$0xff] }
0x132b   : > { %2037 = vmatpush.msrb.mxu2 %v3004_v58 }
0x132c   : > { %3269 = vpow2.f32 %v1868_v61  ;;  %1876 = vadd.xlane.f32.xlu0 %v1875_v0  ;;  %v3002_v61 = vld [vmem:[%s4727_s4 + $0xa8] sm:$0xff]  ;;  %v3001_v0 = vld [vmem:[%s4727_s4 + $0xa0] sm:$0xff] }
0x132d   : > { %3271 = vpow2.f32 %v1866_v2  ;;  %2038 = vmatpush.msrb.mxu2 %v3003_v59  ;;  %v2999_v2 = vld [vmem:[%s4727_s4 + $0x90] sm:$0xff]  ;;  %v3024_v59 = vld [vmem:[%s4731_s8 + $0x128] sm:$0xff] }
0x132f   : > { %2039 = vmatpush.msrb.mxu2 %v3002_v61 }
0x1331   : > { %2040 = vmatpush.msrb.mxu2 %v3001_v0  ;;  %v3023_v0 = vld [vmem:[%s4731_s8 + $0x120] sm:$0xff] }
0x1332   : > { %v4256_v4 = vpop.eup %3269  ;;  %v1733_v50 = vpop.permute.xlu0 %1732 }
0x1333   : > { %1944 = vmatpush.msrb.mxu1 %v1733_v50  ;;  %3125 = vmatpush.msra.mxu3 %v1733_v50  ;;  %v1890_v5 = vsel %vm514_vm0, %v4256_v4, 0.0  ;;  %v3272_v10 = vpop.eup %3271  ;;  %v2997_v50 = vld [vmem:[%s4727_s4 + $0x80] sm:$0xff] }
0x1334   : > { %1891 = vadd.xlane.f32.xlu0 %v1890_v5  ;;  %v1887_v11 = vsel %vm514_vm0, %v3272_v10, 0.0  ;;  %2041 = vmatpush.msrb.mxu2 %v3000_v1 }
0x1335   : > { %1945 = vmatpush.msrb.mxu1 %v1730_v7  ;;  %3126 = vmatpush.msra.mxu3 %v1730_v7 }
0x1336   : > { %2042 = vmatpush.msrb.mxu2 %v2999_v2  ;;  %v3022_v2 = vld [vmem:[%s4731_s8 + $0x118] sm:$0xff] }
0x133e   : > { %1888 = vadd.xlane.f32.xlu2 %v1887_v11 }
0x133f   : > { %v1727_v14 = vpop.permute.xlu1 %1726 }
0x1340   : > { %1946 = vmatpush.msrb.mxu1 %v1727_v14  ;;  %3127 = vmatpush.msra.mxu3 %v1727_v14 }
0x1342   : > { %1947 = vmatpush.msrb.mxu1 %v1724_v8  ;;  %3128 = vmatpush.msra.mxu3 %v1724_v8 }
0x1360   : > { %v1847_v15 = vpop.xlane.xlu2 %1846 }
0x1361   : > { %v1855_v17 = vsub.f32 %v4230_v27, %v1847_v15 }
0x1363   : > { %v1870_v18 = vmul.f32 1.442695, %v1855_v17 }
0x1365   : > { %3273 = vpow2.f32 %v1870_v18 }
0x1368   : > { %v1721_v36 = vpop.permute.xlu2 %1720 }
0x1369   : > { %1948 = vmatpush.msrb.mxu1 %v1721_v36  ;;  %3129 = vmatpush.msra.mxu3 %v1721_v36 }
0x136b   : > { %v3274_v20 = vpop.eup %3273 }
0x136c   : > { %v1893_v40 = vsel %vm514_vm0, %v3274_v20, 0.0 }
0x136d   : > { %1894 = vadd.xlane.f32.xlu0 %v1893_v40 }
0x1370   : > { %v1718_v46 = vpop.permute.xlu2 %1717 }
0x1371   : > { %1949 = vmatpush.msrb.mxu1 %v1718_v46  ;;  %3130 = vmatpush.msra.mxu3 %v1718_v46 }
0x1377   : > { %v1874_v51 = vpop.xlane.xlu1 %1873 }
0x1378   : > { %3275 = vrcp.f32 %v1874_v51  ;;  %v1715_v22 = vpop.permute.xlu2 %1714 }
0x1379   : > { %1950 = vmatpush.msrb.mxu1 %v1715_v22  ;;  %3131 = vmatpush.msra.mxu3 %v1715_v22  ;;  %v3171_v22 = vld [vmem:[%s4728_s5 + $0x2] ss:$0 sm:$0xff] }
0x137b   : > { %1951 = vmatpush.msrb.mxu1 %v4216_v24  ;;  %3132 = vmatpush.msra.mxu3 %v4216_v24 }
0x137e   : > { %v3276_v21 = vpop.eup %3275 }
0x137f   : > { %v1904_v23 = vmul.f32 %v3276_v21, %v4234_v29 }
0x1381   : > { %2989 = vmatmul.msk.f32.vlgmr.msrb.gmra.mxu1 %vm514_vm0, %v1904_v23 }
0x1387   : > { %v1880_v60 = vpop.xlane.xlu1 %1879 }
0x138f   : > { %v1883_v24 = vpop.xlane.xlu1 %1882 }
0x1397   : > { %v1886_v25 = vpop.xlane.xlu0 %1885 }
0x1398   : > { %3277 = vrcp.f32 %v1886_v25 }
0x139e   : > { %v3278_v27 = vpop.eup %3277 }
0x139f   : > { %v1908_v57 = vmul.f32 %v3278_v27, %v3266_v54  ;;  %v1877_v28 = vpop.xlane.xlu0 %1876 }
0x13a0   : > { %3279 = vrcp.f32 %v1877_v28 }
0x13a1   : > { %2993 = vmatmul.msk.f32.vlgmr.msra.gmra.mxu3 %vm514_vm0, %v1908_v57  ;;  %3281 = vrcp.f32 %v1880_v60 }
0x13a2   : > { %3283 = vrcp.f32 %v1883_v24  ;;  %v3016_v24 = vld [vmem:[%s4729_s6 + $0xb8] sm:$0xff] }
0x13a6   : > { %v3280_v63 = vpop.eup %3279 }
0x13a7   : > { %v1905_v30 = vmul.f32 %v3280_v63, %v3268_v13  ;;  %v3282_v31 = vpop.eup %3281  ;;  %v1892_v35 = vpop.xlane.xlu0 %1891 }
0x13a8   : > { %v1906_v29 = vmul.f32 %v3282_v31, %v4242_v39  ;;  %v3284_v33 = vpop.eup %3283  ;;  %v3014_v31 = vld [vmem:[%s4729_s6 + $0xa8] sm:$0xff] }
0x13a9   : > { %2990 = vmatmul.msk.f32.gmra.mxu1 %vm514_vm0, %v1905_v30  ;;  %v1907_v37 = vmul.f32 %v3284_v33, %v4248_v47  ;;  %v3011_v33 = vld [vmem:[%s4729_s6 + $0x90] sm:$0xff] }
0x13b1   : > { %v1889_v32 = vpop.xlane.xlu2 %1888  ;;  %2991 = vmatmul.msk.f32.gmra.mxu1 %vm514_vm0, %v1906_v29  ;;  %v3013_v29 = vld [vmem:[%s4729_s6 + $0xa0] sm:$0xff] }
0x13b2   : > { %3285 = vrcp.f32 %v1889_v32  ;;  %v3012_v32 = vld [vmem:[%s4729_s6 + $0x98] sm:$0xff] }
0x13b3   : > { %3287 = vrcp.f32 %v1892_v35  ;;  %v3010_v35 = vld [vmem:[%s4729_s6 + $0x88] sm:$0xff] }
0x13b8   : > { %v3286_v38 = vpop.eup %3285 }
0x13b9   : > { %2992 = vmatmul.msk.f32.gmra.mxu1 %vm514_vm0, %v1907_v37  ;;  %v1909_v41 = vmul.f32 %v3286_v38, %v3272_v10  ;;  %v3288_v42 = vpop.eup %3287  ;;  %v3009_v37 = vld [vmem:[%s4729_s6 + $0x80] sm:$0xff]  ;;  %v3034_v38 = vld [vmem:[%s4731_s8 + $0x178] sm:$0xff] }
0x13ba   : > { %v1910_v43 = vmul.f32 %v3288_v42, %v4256_v4  ;;  %v2998_v4 = vld [vmem:[%s4727_s4 + $0x88] sm:$0xff]  ;;  %2144 = vmatpush.msrb.mxu3 %v3034_v38  ;;  %v3042_v38 = vld [vmem:[%s4725_s2 + $0x1a0] sm:$0xff] }
0x13bb   : > { %2994 = vmatmul.msk.f32.gmra.mxu3 %vm514_vm0, %v1909_v41  ;;  %2043 = vmatpush.msrb.mxu2 %v2998_v4  ;;  %v3033_v41 = vld [vmem:[%s4731_s8 + $0x170] sm:$0xff]  ;;  %v3032_v42 = vld [vmem:[%s4731_s8 + $0x168] sm:$0xff] }
0x13bc   : > { %2145 = vmatpush.msrb.mxu3 %v3033_v41  ;;  %v3043_v41 = vld [vmem:[%s4725_s2 + $0x1a8] sm:$0xff] }
0x13bd   : > { %2044 = vmatpush.msrb.mxu2 %v2997_v50  ;;  %v3172_v50 = vld [vmem:[%s4733_s10 + $0x2] ss:$0 sm:$0xff] }
0x13be   : > { %2146 = vmatpush.msrb.mxu3 %v3032_v42  ;;  %v3040_v42 = vld [vmem:[%s4725_s2 + $0x190] sm:$0xff] }
0x13bf   : > { %2109 = vmatpush.msra.mxu2 %v3016_v24  ;;  %v3050_v24 = vld [vmem:[%s4725_s2 + $0x1e0] sm:$0xff] }
0x13c3   : > { %2995 = vmatmul.msk.f32.gmra.mxu3 %vm514_vm0, %v1910_v43 }
0x13e0   : > { %v1895_v39 = vpop.xlane.xlu0 %1894 }
0x13e1   : > { %3289 = vrcp.f32 %v1895_v39 }
0x13e7   : > { %v3290_v45 = vpop.eup %3289 }
0x13e8   : > { %v1911_v48 = vmul.f32 %v3290_v45, %v3274_v20  ;;  %v3031_v45 = vld [vmem:[%s4731_s8 + $0x160] sm:$0xff] }
0x13e9   : > { %2147 = vmatpush.msrb.mxu3 %v3031_v45  ;;  %v3039_v45 = vld [vmem:[%s4725_s2 + $0x188] sm:$0xff] }
0x13ea   : > { %2996 = vmatmul.msk.f32.gmra.mxu3 %vm514_vm0, %v1911_v48 }
0x13fe   : > { %v1953_v49 = vpop.f32.mrf.mxu1 }
0x1424   : > { %v1965_v52 = vpop.f32.mrf.mxu3 }
0x1426   : > { %v1956_v47 = vpop.f32.mrf.mxu1 }
0x1427   : > { %1978 = vrot.lane.b32.xlu0 %v1956_v47, %s4785_s22  ;;  %v3029_v47 = vld [vmem:[%s4731_s8 + $0x150] sm:$0xff] }
0x142e   : > { %v1959_v53 = vpop.f32.mrf.mxu1 }
0x142f   : > { %1990 = vrot.lane.b32.xlu0 %v1965_v52, %s4788_s23  ;;  %1982 = vrot.lane.b32.xlu1 %v1959_v53, %s4794_s21  ;;  %v3028_v52 = vld [vmem:[%s4731_s8 + $0x148] sm:$0xff]  ;;  %v3027_v53 = vld [vmem:[%s4731_s8 + $0x140] sm:$0xff]  ;;  %s4807_s21 = sld [smem:[#allocation6_spill]] }
0x1436   : > { %v1962_v54 = vpop.f32.mrf.mxu1 }
0x1437   : > { %1986 = vrot.lane.b32.xlu2 %v1962_v54, %s4795_s30 }
0x143e   : > { %v1968_v55 = vpop.f32.mrf.mxu3 }
0x143f   : > { %1994 = vrot.lane.b32.xlu0 %v1968_v55, %s4796_s19  ;;  %v3026_v55 = vld [vmem:[%s4731_s8 + $0x138] sm:$0xff] }
0x1446   : > { %v1971_v56 = vpop.f32.mrf.mxu3 }
0x1447   : > { %1998 = vrot.lane.b32.xlu1 %v1971_v56, %s4797_s24 }
0x146d   : > { %v1974_v13 = vpop.f32.mrf.mxu3 }
0x146e   : > { %2002 = vrot.lane.b32.xlu0 %v1974_v13, %s4798_s15  ;;  %v3025_v13 = vld [vmem:[%s4731_s8 + $0x130] sm:$0xff] }
0x1491   : > { %v1987_v15 = vpop.permute.xlu2 %1986 }
0x1499   : > { %v1979_v5 = vpop.permute.xlu0 %1978 }
0x149a   : > { %v2005_v11 = vsel %vm611_vm1, %v1953_v49, %v1979_v5  ;;  %v3030_v49 = vld [vmem:[%s4731_s8 + $0x158] sm:$0xff] }
0x149b   : > { %2148 = vmatpush.msrb.mxu3 %v3030_v49 }
0x149d   : > { %2149 = vmatpush.msrb.mxu3 %v3029_v47 }
0x149f   : > { %2150 = vmatpush.msrb.mxu3 %v3028_v52 }
0x14a1   : > { %v1991_v7 = vpop.permute.xlu0 %1990  ;;  %v1983_v10 = vpop.permute.xlu1 %1982  ;;  %2151 = vmatpush.msrb.mxu3 %v3027_v53 }
0x14a2   : > { %v2006_v14 = vsel %vm867_vm2, %v2005_v11, %v1983_v10  ;;  %v3173_v10 = vld [vmem:[%s4734_s11 + $0x2] ss:$0 sm:$0xff] }
0x14a3   : > { %v2007_v17 = vsel %vm869_vm3, %v2006_v14, %v1987_v15  ;;  %2152 = vmatpush.msrb.mxu3 %v3026_v55  ;;  %v3020_v15 = vld [vmem:[%s4731_s8 + $0x108] sm:$0xff] }
0x14a4   : > { %v2008_v36 = vsel %vm871_vm4, %v2007_v17, %v1991_v7  ;;  %v3019_v17 = vld [vmem:[%s4731_s8 + $0x100] sm:$0xff] }
0x14a5   : > { %2153 = vmatpush.msrb.mxu3 %v3025_v13 }
0x14a7   : > { %2154 = vmatpush.msrb.mxu3 %v3024_v59 }
0x14a9   : > { %2155 = vmatpush.msrb.mxu3 %v3023_v0  ;;  %v3177_v0 = vld [vmem:[%s4736_s13 + $0x2] ss:$0 sm:$0xff] }
0x14ab   : > { %2156 = vmatpush.msrb.mxu3 %v3022_v2 }
0x14b1   : > { %v1995_v8 = vpop.permute.xlu0 %1994 }
0x14b2   : > { %v2009_v20 = vsel %vm873_vm5, %v2008_v36, %v1995_v8  ;;  %v3021_v8 = vld [vmem:[%s4731_s8 + $0x110] sm:$0xff] }
0x14b3   : > { %2157 = vmatpush.msrb.mxu3 %v3021_v8 }
0x14b5   : > { %2158 = vmatpush.msrb.mxu3 %v3020_v15 }
0x14b7   : > { %2159 = vmatpush.msrb.mxu3 %v3019_v17 }
0x14b9   : > { %v1999_v18 = vpop.permute.xlu1 %1998 }
0x14ba   : > { %v2010_v40 = vsel %vm875_vm6, %v2009_v20, %v1999_v18  ;;  %v3174_v18 = vld [vmem:[%s4730_s7 + $0x2] ss:$0 sm:$0xff] }
0x14e0   : > { %v2003_v46 = vpop.permute.xlu0 %2002 }
0x14e1   : > { %v2011_v51 = vsel %vm877_vm7, %v2010_v40, %v2003_v46  ;;  %v3175_v46 = vld [vmem:[%s4732_s9 + $0x2] ss:$0 sm:$0xff] }
0x14e2   : > { %3006 = vmatmul.msk.f32.vlgmr.msrb.gmra.mxu2 %vm514_vm0, %v2011_v51 }
0x1565   : > { %v2046_v21 = vpop.f32.mrf.mxu2 }
0x1566   : > { %v2047_v23 = vadd.f32 %v3171_v22, %v2046_v21 }
0x1568   : > { %v2049_v25 = vadd.f32 %v2047_v23, %v4131_v34  ;;  %v3015_v34 = vld [vmem:[%s4729_s6 + $0xb0] sm:$0xff] }
0x1569   : > { %2110 = vmatpush.msra.mxu2 %v3015_v34  ;;  %v3051_v34 = vld [vmem:[%s4725_s2 + $0x1e8] sm:$0xff] }
0x156a   : > { %v2054_v27 = vsel %vm514_vm0, %v2049_v25, 0.0 }
0x156b   : > { %2055 = vadd.xlane.f32.xlu1 %v2054_v27  ;;  %2111 = vmatpush.msra.mxu2 %v3014_v31  ;;  %v3048_v31 = vld [vmem:[%s4725_s2 + $0x1d0] sm:$0xff] }
0x156d   : > { %2112 = vmatpush.msra.mxu2 %v3013_v29  ;;  %v3049_v29 = vld [vmem:[%s4725_s2 + $0x1d8] sm:$0xff] }
0x156f   : > { %2113 = vmatpush.msra.mxu2 %v3012_v32  ;;  %v3046_v32 = vld [vmem:[%s4725_s2 + $0x1c0] sm:$0xff] }
0x1571   : > { %2114 = vmatpush.msra.mxu2 %v3011_v33  ;;  %v3047_v33 = vld [vmem:[%s4725_s2 + $0x1c8] sm:$0xff] }
0x1573   : > { %2115 = vmatpush.msra.mxu2 %v3010_v35  ;;  %v3044_v35 = vld [vmem:[%s4725_s2 + $0x1b0] sm:$0xff] }
0x1575   : > { %2116 = vmatpush.msra.mxu2 %v3009_v37  ;;  %v3045_v37 = vld [vmem:[%s4725_s2 + $0x1b8] sm:$0xff] }
0x15de   : > { %v2056_v57 = vpop.xlane.xlu1 %2055 }
0x15df   : > { %v2057_v28 = vmul.f32 %v2056_v57, %v3688_v9 }
0x15e1   : > { %v2058_v60 = vsub.f32 %v2049_v25, %v2057_v28 }
0x15e3   : > { %v2059_v63 = vmul.f32 %v2058_v60, %v2058_v60 }
0x15e5   : > { %v2060_v30 = vsel %vm514_vm0, %v2059_v63, 0.0  ;;  %v3052_v63 = vld [vmem:[%s4725_s2 + $0x1f0] sm:$0xff] }
0x15e6   : > { %2061 = vadd.xlane.f32.xlu2 %v2060_v30  ;;  %v3053_v30 = vld [vmem:[%s4725_s2 + $0x1f8] sm:$0xff]  ;;  %2234 = vmatpush.msrb.mxu2 %v3052_v63 }
0x15e7   : > { %2254 = vmatpush.msra.mxu3 %v3053_v30 }
0x15e8   : > { %2235 = vmatpush.msrb.mxu2 %v3050_v24 }
0x15e9   : > { %2255 = vmatpush.msra.mxu3 %v3051_v34 }
0x15ea   : > { %2236 = vmatpush.msrb.mxu2 %v3048_v31 }
0x15eb   : > { %2256 = vmatpush.msra.mxu3 %v3049_v29 }
0x15ec   : > { %2237 = vmatpush.msrb.mxu2 %v3046_v32 }
0x15ed   : > { %2257 = vmatpush.msra.mxu3 %v3047_v33 }
0x15ee   : > { %2238 = vmatpush.msrb.mxu2 %v3044_v35 }
0x15ef   : > { %2258 = vmatpush.msra.mxu3 %v3045_v37 }
0x15f0   : > { %2239 = vmatpush.msrb.mxu2 %v3042_v38 }
0x15f1   : > { %2259 = vmatpush.msra.mxu3 %v3043_v41 }
0x15f2   : > { %2240 = vmatpush.msrb.mxu2 %v3040_v42 }
0x1659   : > { %v2062_v43 = vpop.xlane.xlu2 %2061 }
0x165a   : > { %v2063_v39 = vmul.f32 %v2062_v43, %v3688_v9  ;;  %v3041_v43 = vld [vmem:[%s4725_s2 + $0x198] sm:$0xff] }
0x165b   : > { %2260 = vmatpush.msra.mxu3 %v3041_v43 }
0x165c   : > { %v2064_v48 = vadd.f32 1e-05, %v2063_v39  ;;  %v3038_v39 = vld [vmem:[%s4725_s2 + $0x180] sm:$0xff] }
0x165d   : > { %2241 = vmatpush.msrb.mxu2 %v3038_v39  ;;  %2261 = vmatpush.msra.mxu3 %v3039_v45 }
0x165e   : > { %3291 = vrsqrt.f32 %v2064_v48  ;;  %vm2071_vm14 = vweird.f32 %v2064_v48 }
0x1664   : > { %v3292_v54 = vpop.eup %3291 }
0x1665   : > { %v2066_v56 = vmul.f32 %v3292_v54, %v2064_v48  ;;  %vm2072_vm13 = vweird.f32 %v3292_v54 }
0x1666   : > { %vm2073_vm15 = vmor %vm2071_vm14, %vm2072_vm13 }
0x1667   : > { %v2067_v58 = vmul.f32 %v3292_v54, %v2066_v56 }
0x1669   : > { %v2068_v61 = vmul.f32 0.5, %v2067_v58  ;;  %v3176_v58 = vld [vmem:[%s4735_s12 + $0x2] ss:$0 sm:$0xff] }
0x166b   : > { %v2069_v1 = vsub.f32 1.5, %v2068_v61 }
0x166d   : > { %v2070_v4 = vmul.f32 %v3292_v54, %v2069_v1 }
0x166f   : > { %v2074_v5 = vsel %vm2073_vm15, %v3292_v54, %v2070_v4  ;;  %v4476_v4 = vld [vmem:[%s4726_s3 + $0x6] sm:$0x3] }
0x1670   : > { %v2075_v7 = vmul.f32 %v2074_v5, %v2058_v60 }
0x1672   : > { %v2079_v11 = vmul.f32 %v3172_v50, %v2075_v7  ;;  %v2219_v50 = vperm.slane %v4476_v4, 0 }
0x1674   : > { %v2083_v14 = vadd.f32 %v3173_v10, %v2079_v11 }
0x1676   : > { %3018 = vmatmul.msk.f32.vlgmr.msra.gmra.mxu2 %vm514_vm0, %v2083_v14 }
0x16f9   : > { %v2118_v36 = vpop.f32.mrf.mxu2 }
0x16fa   : > { %v2119_v20 = vadd.f32 %v3174_v18, %v2118_v36 }
0x16fc   : > { %v2121_v40 = vmax.f32 %v2119_v20, 0.0 }
0x16fe   : > { %2160 = vmatmul.f32.vlgmr.msrb.gmra.mxu3 %v2121_v40 }
0x1781   : > { %v2161_v51 = vpop.f32.mrf.mxu3 }
0x1782   : > { %v2162_v22 = vadd.f32 %v3175_v46, %v2161_v51 }
0x1784   : > { %v2164_v21 = vadd.f32 %v2162_v22, %v2083_v14 }
0x1786   : > { %v2169_v23 = vsel %vm514_vm0, %v2164_v21, 0.0 }
0x1787   : > { %2170 = vadd.xlane.f32.xlu0 %v2169_v23 }
0x17fa   : > { %v2171_v25 = vpop.xlane.xlu0 %2170 }
0x17fb   : > { %v2172_v27 = vmul.f32 %v2171_v25, %v3688_v9 }
0x17fd   : > { %v2173_v57 = vsub.f32 %v2164_v21, %v2172_v27 }
0x17ff   : > { %v2174_v28 = vmul.f32 %v2173_v57, %v2173_v57 }
0x1801   : > { %v2175_v60 = vsel %vm514_vm0, %v2174_v28, 0.0 }
0x1802   : > { %2176 = vadd.xlane.f32.xlu2 %v2175_v60 }
0x1875   : > { %v2177_v48 = vpop.xlane.xlu2 %2176 }
0x1876   : > { %v2178_v49 = vmul.f32 %v2177_v48, %v3688_v9 }
0x1878   : > { %v2179_v47 = vadd.f32 1e-05, %v2178_v49 }
0x187a   : > { %3293 = vrsqrt.f32 %v2179_v47  ;;  %vm2186_vm9 = vweird.f32 %v2179_v47 }
0x1880   : > { %v3294_v52 = vpop.eup %3293 }
0x1881   : > { %v2181_v53 = vmul.f32 %v3294_v52, %v2179_v47  ;;  %vm2187_vm8 = vweird.f32 %v3294_v52 }
0x1882   : > { %vm2188_vm10 = vmor %vm2186_vm9, %vm2187_vm8 }
0x1883   : > { %v2182_v54 = vmul.f32 %v3294_v52, %v2181_v53 }
0x1885   : > { %v2183_v55 = vmul.f32 0.5, %v2182_v54 }
0x1887   : > { %v2184_v56 = vsub.f32 1.5, %v2183_v55 }
0x1889   : > { %v2185_v13 = vmul.f32 %v3294_v52, %v2184_v56 }
0x188b   : > { %v2189_v59 = vsel %vm2188_vm10, %v3294_v52, %v2185_v13 }
0x188c   : > { %v2190_v61 = vmul.f32 %v2189_v59, %v2173_v57 }
0x188e   : > { %v2194_v1 = vmul.f32 %v3176_v58, %v2190_v61 }
0x1890   : > { %v4467_v2 = vadd.f32 %v3177_v0, %v2194_v1 }
0x1892   : > { %3055 = vmatmul.msk.f32.vlgmr.msrb.gmra.mxu2 %vm514_vm0, %v4467_v2  ;;  %3056 = vmatmul.msk.f32.vlgmr.msra.gmra.mxu3 %vm514_vm0, %v4467_v2 }
0x1915   : > { %v2243_v5 = vpop.f32.mrf.mxu2  ;;  %v2263_v32 = vpop.f32.mrf.mxu3 }
0x1916   : > { %v2244_v7 = vadd.f32 %v2243_v5, %v2219_v50 }
0x1918   : > { %2275 = vrot.lane.b32.xlu0 %v2244_v7, %s4792_s14  ;;  %2277 = vrot.lane.b32.xlu2 %v2244_v7, %s4793_s29 }
0x1919   : > { %2279 = vrot.lane.b32.xlu1 %v2244_v7, %s4780_s28 }
0x1920   : > { %2271 = vrot.lane.b32.xlu0 %v2244_v7, %s4783_s16  ;;  %2269 = vrot.lane.b32.xlu2 %v2244_v7, %s4781_s18 }
0x1921   : > { %2273 = vrot.lane.b32.xlu1 %v2244_v7, %s4782_s26 }
0x1929   : > { %2267 = vrot.lane.b32.xlu1 %v2244_v7, %s4779_s27 }
0x1972   : > { %v2278_v10 = vpop.permute.xlu2 %2277 }
0x1973   : > { %2315 = vrot.lane.b32.xlu2 %v2278_v10, %s4784_s25 }
0x197a   : > { %v2270_v8 = vpop.permute.xlu2 %2269 }
0x198a   : > { %v2276_v11 = vpop.permute.xlu0 %2275 }
0x198b   : > { %v2280_v14 = vpop.permute.xlu1 %2279  ;;  %2313 = vrot.lane.b32.xlu1 %v2276_v11, %s4784_s25 }
0x198c   : > { %2317 = vrot.lane.b32.xlu0 %v2280_v14, %s4784_s25 }
0x1992   : > { %v2272_v15 = vpop.permute.xlu0 %2271 }
0x1993   : > { %v2274_v17 = vpop.permute.xlu1 %2273  ;;  %2309 = vrot.lane.b32.xlu2 %v2272_v15, %s4784_s25  ;;  %2307 = vrot.lane.b32.xlu1 %v2270_v8, %s4784_s25 }
0x1994   : > { %2311 = vrot.lane.b32.xlu0 %v2274_v17, %s4784_s25 }
0x199b   : > { %v2268_v18 = vpop.permute.xlu1 %2267  ;;  %2303 = vrot.lane.b32.xlu2 %v2244_v7, %s4784_s25 }
0x199c   : > { %2305 = vrot.lane.b32.xlu0 %v2268_v18, %s4784_s25  ;;  %s4804_s25 = smov 56  }
0x19cd   : > { %v2316_v20 = vpop.permute.xlu2 %2315 }
0x19ed   : > { %v2310_v51 = vpop.permute.xlu2 %2309 }
0x19f5   : > { %v2304_v23 = vpop.permute.xlu2 %2303 }
0x19fd   : > { %v2314_v40 = vpop.permute.xlu1 %2313 }
0x19fe   : > { %v2318_v36 = vpop.permute.xlu0 %2317 }
0x19ff   : > { %3057 = vmatpush.xpose.msk.msra.mxu1 %vm611_vm1, %v2318_v36 }
0x1a03   : > { %3058 = vmatpush.xpose.msk.msra.mxu1 %vm611_vm1, %v2316_v20 }
0x1a05   : > { %v2308_v22 = vpop.permute.xlu1 %2307 }
0x1a06   : > { %v2312_v46 = vpop.permute.xlu0 %2311 }
0x1a07   : > { %3059 = vmatpush.xpose.msk.msra.mxu1 %vm611_vm1, %v2314_v40 }
0x1a0b   : > { %3060 = vmatpush.xpose.msk.msra.mxu1 %vm611_vm1, %v2312_v46 }
0x1a0e   : > { %v2306_v21 = vpop.permute.xlu0 %2305 }
0x1a0f   : > { %3061 = vmatpush.xpose.msk.msra.mxu1 %vm611_vm1, %v2310_v51 }
0x1a13   : > { %3062 = vmatpush.xpose.msk.msra.mxu1 %vm611_vm1, %v2308_v22 }
0x1a17   : > { %3063 = vmatpush.xpose.msk.msra.mxu1 %vm611_vm1, %v2306_v21 }
0x1a1b   : > { %3064 = vmatpush.xpose.msk.msra.mxu1 %vm611_vm1, %v2304_v23 }
0x1a1e   : > { %3065 = vmatmul.msk.f32.vlgmr.msra.gmra.mxu1 %vm611_vm1, %v2244_v7 }
0x1a26   : > { %3066 = vmatmul.msk.f32.gmra.mxu1 %vm611_vm1, %v2268_v18 }
0x1a2e   : > { %3067 = vmatmul.msk.f32.gmra.mxu1 %vm611_vm1, %v2270_v8 }
0x1a36   : > { %3068 = vmatmul.msk.f32.gmra.mxu1 %vm611_vm1, %v2272_v15 }
0x1a3e   : > { %3069 = vmatmul.msk.f32.gmra.mxu1 %vm611_vm1, %v2274_v17 }
0x1a46   : > { %3070 = vmatmul.msk.f32.gmra.mxu1 %vm611_vm1, %v2276_v11 }
0x1a4e   : > { %3071 = vmatmul.msk.f32.gmra.mxu1 %vm611_vm1, %v2278_v10 }
0x1a56   : > { %3072 = vmatmul.msk.f32.gmra.mxu1 %vm611_vm1, %v2280_v14 }
0x1a9b   : > { %v2368_v25 = vpop.f32.mrf.mxu1 }
0x1a9c   : > { %v2369_v27 = vadd.f32 %v4175_v62, %v2368_v25  ;;  %v2220_v62 = vperm.slane %v4476_v4, 1 }
0x1a9e   : > { %v2392_v57 = vsel %vm514_vm0, %v2369_v27, -inf  ;;  %v4519_v35 = vadd.f32 %v2263_v32, %v2220_v62 }
0x1a9f   : > { %2393 = vmax.xlane.f32.xlu1 %v2392_v57 }
0x1aa3   : > { %v2371_v28 = vpop.f32.mrf.mxu1 }
0x1aa4   : > { %v2372_v60 = vadd.f32 %v4180_v3, %v2371_v28 }
0x1aa6   : > { %v2395_v63 = vsel %vm514_vm0, %v2372_v60, -inf }
0x1aa7   : > { %2396 = vmax.xlane.f32.xlu0 %v2395_v63 }
0x1aab   : > { %v2374_v30 = vpop.f32.mrf.mxu1 }
0x1aac   : > { %v2375_v24 = vadd.f32 %v4188_v6, %v2374_v30 }
0x1aae   : > { %v2398_v34 = vsel %vm514_vm0, %v2375_v24, -inf }
0x1aaf   : > { %2399 = vmax.xlane.f32.xlu2 %v2398_v34 }
0x1ab3   : > { %v2377_v31 = vpop.f32.mrf.mxu1 }
0x1ab4   : > { %v2378_v29 = vadd.f32 %v4193_v12, %v2377_v31 }
0x1ab6   : > { %v2401_v33 = vsel %vm514_vm0, %v2378_v29, -inf }
0x1ab7   : > { %2402 = vmax.xlane.f32.xlu1 %v2401_v33 }
0x1abb   : > { %2294 = vrot.lane.b32.xlu0 %v4519_v35, %s4792_s14  ;;  %v2380_v3 = vpop.f32.mrf.mxu1 }
0x1abc   : > { %v2381_v12 = vadd.f32 %v4198_v16, %v2380_v3 }
0x1abe   : > { %v2404_v37 = vsel %vm514_vm0, %v2381_v12, -inf }
0x1ac3   : > { %v2383_v6 = vpop.f32.mrf.mxu1 }
0x1ac4   : > { %v2384_v42 = vadd.f32 %v4203_v19, %v2383_v6 }
0x1ac6   : > { %v2407_v39 = vsel %vm514_vm0, %v2384_v42, -inf }
0x1ac7   : > { %2297 = vrot.lane.b32.xlu2 %v4519_v35, %s4793_s29 }
0x1acb   : > { %v2386_v38 = vpop.f32.mrf.mxu1 }
0x1acc   : > { %v2387_v41 = vadd.f32 %v4211_v44, %v2386_v38 }
0x1ace   : > { %v2410_v43 = vsel %vm514_vm0, %v2387_v41, -inf }
0x1ad0   : > { %2300 = vrot.lane.b32.xlu1 %v4519_v35, %s4780_s28  ;;  %s4800_s28 = smov 24  }
0x1ad3   : > { %v2389_v54 = vpop.f32.mrf.mxu1 }
0x1ad4   : > { %v2390_v58 = vadd.f32 %v4227_v26, %v2389_v54 }
0x1ad6   : > { %v2413_v4 = vsel %vm514_vm0, %v2390_v58, -inf }
0x1ae5   : > { %2405 = vmax.xlane.f32.xlu0 %v2404_v37 }
0x1aed   : > { %2411 = vmax.xlane.f32.xlu0 %v2410_v43 }
0x1af0   : > { %2408 = vmax.xlane.f32.xlu2 %v2407_v39 }
0x1b01   : > { %2288 = vrot.lane.b32.xlu0 %v4519_v35, %s4783_s16  ;;  %s4803_s16 = smov 48  }
0x1b08   : > { %2291 = vrot.lane.b32.xlu2 %v4519_v35, %s4782_s26  ;;  %s4802_s26 = smov 40  }
0x1b09   : > { %2285 = vrot.lane.b32.xlu0 %v4519_v35, %s4781_s18  ;;  %s4801_s18 = smov 32  }
0x1b11   : > { %2282 = vrot.lane.b32.xlu0 %v4519_v35, %s4779_s27  ;;  %s4799_s27 = smov 16  }
0x1b12   : > { %v2394_v16 = vpop.xlane.xlu1 %2393 }
0x1b13   : > { %v2416_v19 = vsub.f32 %v2369_v27, %v2394_v16 }
0x1b15   : > { %v2424_v44 = vmul.f32 1.442695, %v2416_v19 }
0x1b17   : > { %3295 = vpow2.f32 %v2424_v44 }
0x1b1a   : > { %v2397_v53 = vpop.xlane.xlu0 %2396 }
0x1b1b   : > { %v2417_v55 = vsub.f32 %v2372_v60, %v2397_v53 }
0x1b1d   : > { %v4541_v45 = vpop.eup %3295  ;;  %v2426_v61 = vmul.f32 1.442695, %v2417_v55 }
0x1b1e   : > { %v2440_v48 = vsel %vm514_vm0, %v4541_v45, 0.0 }
0x1b1f   : > { %2441 = vadd.xlane.f32.xlu1 %v2440_v48 }
0x1b22   : > { %v2400_v49 = vpop.xlane.xlu2 %2399 }
0x1b23   : > { %v2418_v47 = vsub.f32 %v2375_v24, %v2400_v49 }
0x1b25   : > { %v2428_v52 = vmul.f32 1.442695, %v2418_v47 }
0x1b27   : > { %3297 = vpow2.f32 %v2428_v52 }
0x1b2a   : > { %v2403_v56 = vpop.xlane.xlu1 %2402  ;;  %v2298_v11 = vpop.permute.xlu2 %2297 }
0x1b2b   : > { %v2419_v13 = vsub.f32 %v2378_v29, %v2403_v56 }
0x1b2d   : > { %v4546_v59 = vpop.eup %3297  ;;  %v2430_v0 = vmul.f32 1.442695, %v2419_v13  ;;  %v2295_v14 = vpop.permute.xlu0 %2294 }
0x1b2e   : > { %v2446_v1 = vsel %vm514_vm0, %v4546_v59, 0.0 }
0x1b2f   : > { %3299 = vpow2.f32 %v2430_v0  ;;  %2447 = vadd.xlane.f32.xlu1 %v2446_v1 }
0x1b30   : > { %3301 = vpow2.f32 %v2426_v61 }
0x1b31   : > { %2414 = vmax.xlane.f32.xlu2 %v2413_v4 }
0x1b35   : > { %v4551_v50 = vpop.eup %3299 }
0x1b36   : > { %v2449_v5 = vsel %vm514_vm0, %v4551_v50, 0.0  ;;  %v3302_v7 = vpop.eup %3301 }
0x1b37   : > { %2450 = vadd.xlane.f32.xlu1 %v2449_v5  ;;  %v2443_v26 = vsel %vm514_vm0, %v3302_v7, 0.0  ;;  %v3088_v5 = vld [vmem:[%s4727_s4 + $0xf8] sm:$0xff] }
0x1b38   : > { %2605 = vmatpush.msrb.mxu3 %v3088_v5 }
0x1b3b   : > { %2444 = vadd.xlane.f32.xlu0 %v2443_v26  ;;  %v3086_v26 = vld [vmem:[%s4727_s4 + $0xe8] sm:$0xff] }
0x1b42   : > { %v2301_v10 = vpop.permute.xlu1 %2300 }
0x1b43   : > { %2512 = vmatpush.msra.mxu2 %v2301_v10  ;;  %v3085_v10 = vld [vmem:[%s4727_s4 + $0xe0] sm:$0xff] }
0x1b45   : > { %2513 = vmatpush.msra.mxu2 %v2298_v11  ;;  %v3084_v11 = vld [vmem:[%s4727_s4 + $0xd8] sm:$0xff] }
0x1b47   : > { %2514 = vmatpush.msra.mxu2 %v2295_v14  ;;  %v3083_v14 = vld [vmem:[%s4727_s4 + $0xd0] sm:$0xff] }
0x1b58   : > { %v2406_v8 = vpop.xlane.xlu0 %2405 }
0x1b59   : > { %v2420_v15 = vsub.f32 %v2381_v12, %v2406_v8  ;;  %v3082_v8 = vld [vmem:[%s4727_s4 + $0xc8] sm:$0xff] }
0x1b5b   : > { %v2432_v17 = vmul.f32 1.442695, %v2420_v15  ;;  %v3081_v15 = vld [vmem:[%s4727_s4 + $0xc0] sm:$0xff] }
0x1b5d   : > { %3303 = vpow2.f32 %v2432_v17 }
0x1b60   : > { %v2412_v18 = vpop.xlane.xlu0 %2411 }
0x1b61   : > { %v2422_v36 = vsub.f32 %v2387_v41, %v2412_v18 }
0x1b63   : > { %v3304_v20 = vpop.eup %3303  ;;  %v2436_v40 = vmul.f32 1.442695, %v2422_v36  ;;  %v2409_v46 = vpop.xlane.xlu2 %2408 }
0x1b64   : > { %v2421_v51 = vsub.f32 %v2384_v42, %v2409_v46  ;;  %v2452_v22 = vsel %vm514_vm0, %v3304_v20, 0.0 }
0x1b65   : > { %3305 = vpow2.f32 %v2436_v40  ;;  %2453 = vadd.xlane.f32.xlu2 %v2452_v22 }
0x1b66   : > { %v2434_v21 = vmul.f32 1.442695, %v2421_v51 }
0x1b68   : > { %3307 = vpow2.f32 %v2434_v21 }
0x1b6b   : > { %v3306_v23 = vpop.eup %3305  ;;  %v2292_v25 = vpop.permute.xlu2 %2291 }
0x1b6c   : > { %2515 = vmatpush.msra.mxu2 %v2292_v25  ;;  %v2458_v27 = vsel %vm514_vm0, %v3306_v23, 0.0 }
0x1b6d   : > { %2459 = vadd.xlane.f32.xlu2 %v2458_v27 }
0x1b6e   : > { %v3308_v57 = vpop.eup %3307 }
0x1b6f   : > { %v2455_v28 = vsel %vm514_vm0, %v3308_v57, 0.0 }
0x1b70   : > { %2456 = vadd.xlane.f32.xlu1 %v2455_v28 }
0x1b73   : > { %v2289_v60 = vpop.permute.xlu0 %2288 }
0x1b74   : > { %2516 = vmatpush.msra.mxu2 %v2289_v60  ;;  %v3178_v60 = vld [vmem:[%s4728_s5 + $0x3] ss:$0 sm:$0xff] }
0x1b7b   : > { %v2286_v63 = vpop.permute.xlu0 %2285 }
0x1b7c   : > { %2517 = vmatpush.msra.mxu2 %v2286_v63 }
0x1b83   : > { %v2283_v30 = vpop.permute.xlu0 %2282 }
0x1b84   : > { %2518 = vmatpush.msra.mxu2 %v2283_v30 }
0x1b86   : > { %2519 = vmatpush.msra.mxu2 %v4519_v35 }
0x1b92   : > { %v2442_v24 = vpop.xlane.xlu1 %2441 }
0x1b93   : > { %3309 = vrcp.f32 %v2442_v24 }
0x1b99   : > { %v3310_v34 = vpop.eup %3309 }
0x1b9a   : > { %v2472_v31 = vmul.f32 %v3310_v34, %v4541_v45 }
0x1b9c   : > { %3073 = vmatmul.msk.f32.vlgmr.msra.gmra.mxu2 %vm514_vm0, %v2472_v31 }
0x1ba2   : > { %v2448_v6 = vpop.xlane.xlu1 %2447 }
0x1ba4   : > { %v2415_v29 = vpop.xlane.xlu2 %2414 }
0x1ba5   : > { %v2423_v62 = vsub.f32 %v2390_v58, %v2415_v29 }
0x1ba7   : > { %v2438_v32 = vmul.f32 1.442695, %v2423_v62 }
0x1ba9   : > { %3311 = vpow2.f32 %v2438_v32 }
0x1baa   : > { %v2451_v38 = vpop.xlane.xlu1 %2450 }
0x1bae   : > { %v2445_v33 = vpop.xlane.xlu0 %2444 }
0x1baf   : > { %v3312_v3 = vpop.eup %3311  ;;  %3313 = vrcp.f32 %v2445_v33 }
0x1bb0   : > { %v2461_v12 = vsel %vm514_vm0, %v3312_v3, 0.0  ;;  %3315 = vrcp.f32 %v2448_v6  ;;  %v3098_v6 = vld [vmem:[%s4729_s6 + $0xe8] sm:$0xff] }
0x1bb1   : > { %2462 = vadd.xlane.f32.xlu1 %v2461_v12  ;;  %3317 = vrcp.f32 %v2451_v38  ;;  %v3097_v12 = vld [vmem:[%s4729_s6 + $0xe0] sm:$0xff]  ;;  %v3094_v38 = vld [vmem:[%s4729_s6 + $0xc8] sm:$0xff] }
0x1bb5   : > { %v3314_v37 = vpop.eup %3313 }
0x1bb6   : > { %v2473_v35 = vmul.f32 %v3314_v37, %v3302_v7  ;;  %v3316_v41 = vpop.eup %3315  ;;  %v3087_v7 = vld [vmem:[%s4727_s4 + $0xf0] sm:$0xff]  ;;  %v3096_v37 = vld [vmem:[%s4729_s6 + $0xd8] sm:$0xff] }
0x1bb7   : > { %v2474_v42 = vmul.f32 %v3316_v41, %v4546_v59  ;;  %v3318_v43 = vpop.eup %3317  ;;  %2606 = vmatpush.msrb.mxu3 %v3087_v7  ;;  %v3093_v41 = vld [vmem:[%s4729_s6 + $0xc0] sm:$0xff] }
0x1bb8   : > { %3074 = vmatmul.msk.f32.gmra.mxu2 %vm514_vm0, %v2473_v35  ;;  %v2475_v39 = vmul.f32 %v3318_v43, %v4551_v50  ;;  %v3095_v35 = vld [vmem:[%s4729_s6 + $0xd0] sm:$0xff] }
0x1bb9   : > { %2607 = vmatpush.msrb.mxu3 %v3086_v26  ;;  %v3117_v43 = vld [vmem:[%s4731_s8 + $0x1f0] sm:$0xff]  ;;  %v3180_v26 = vld [vmem:[%s4734_s11 + $0x3] ss:$0 sm:$0xff] }
0x1bbb   : > { %2608 = vmatpush.msrb.mxu3 %v3085_v10 }
0x1bbd   : > { %2609 = vmatpush.msrb.mxu3 %v3084_v11 }
0x1bbf   : > { %2610 = vmatpush.msrb.mxu3 %v3083_v14  ;;  %v3105_v14 = vld [vmem:[%s4731_s8 + $0x190] sm:$0xff] }
0x1bc0   : > { %3075 = vmatmul.msk.f32.gmra.mxu2 %vm514_vm0, %v2474_v42  ;;  %v3118_v42 = vld [vmem:[%s4731_s8 + $0x1f8] sm:$0xff] }
0x1bc1   : > { %2611 = vmatpush.msrb.mxu3 %v3082_v8  ;;  %2712 = vmatpush.msrb.mxu0 %v3118_v42  ;;  %v3104_v8 = vld [vmem:[%s4731_s8 + $0x188] sm:$0xff] }
0x1bc3   : > { %2612 = vmatpush.msrb.mxu3 %v3081_v15  ;;  %2713 = vmatpush.msrb.mxu0 %v3117_v43  ;;  %v3103_v15 = vld [vmem:[%s4731_s8 + $0x180] sm:$0xff] }
0x1bc8   : > { %3076 = vmatmul.msk.f32.gmra.mxu2 %vm514_vm0, %v2475_v39  ;;  %v3116_v39 = vld [vmem:[%s4731_s8 + $0x1e8] sm:$0xff] }
0x1bc9   : > { %2714 = vmatpush.msrb.mxu0 %v3116_v39 }
0x1bd8   : > { %v2454_v16 = vpop.xlane.xlu2 %2453 }
0x1bd9   : > { %3319 = vrcp.f32 %v2454_v16 }
0x1bdf   : > { %v3320_v19 = vpop.eup %3319 }
0x1be0   : > { %v2476_v44 = vmul.f32 %v3320_v19, %v3304_v20  ;;  %v2460_v48 = vpop.xlane.xlu2 %2459 }
0x1be2   : > { %3077 = vmatmul.msk.f32.gmra.mxu2 %vm514_vm0, %v2476_v44  ;;  %v3115_v44 = vld [vmem:[%s4731_s8 + $0x1e0] sm:$0xff] }
0x1be3   : > { %v2457_v45 = vpop.xlane.xlu1 %2456  ;;  %2715 = vmatpush.msrb.mxu0 %v3115_v44 }
0x1be4   : > { %3321 = vrcp.f32 %v2457_v45 }
0x1be5   : > { %3323 = vrcp.f32 %v2460_v48  ;;  %v3114_v48 = vld [vmem:[%s4731_s8 + $0x1d8] sm:$0xff] }
0x1be6   : > { %2716 = vmatpush.msrb.mxu0 %v3114_v48 }
0x1bea   : > { %v3322_v49 = vpop.eup %3321 }
0x1beb   : > { %v2477_v47 = vmul.f32 %v3322_v49, %v3308_v57  ;;  %v3324_v52 = vpop.eup %3323  ;;  %v3113_v49 = vld [vmem:[%s4731_s8 + $0x1d0] sm:$0xff] }
0x1bec   : > { %v2478_v53 = vmul.f32 %v3324_v52, %v3306_v23  ;;  %2717 = vmatpush.msrb.mxu0 %v3113_v49  ;;  %v3111_v52 = vld [vmem:[%s4731_s8 + $0x1c0] sm:$0xff] }
0x1bed   : > { %3078 = vmatmul.msk.f32.gmra.mxu2 %vm514_vm0, %v2477_v47  ;;  %v3112_v47 = vld [vmem:[%s4731_s8 + $0x1c8] sm:$0xff] }
0x1bee   : > { %2718 = vmatpush.msrb.mxu0 %v3112_v47 }
0x1bf0   : > { %2719 = vmatpush.msrb.mxu0 %v3111_v52 }
0x1bf5   : > { %3079 = vmatmul.msk.f32.gmra.mxu2 %vm514_vm0, %v2478_v53 }
0x1c1f   : > { %v2521_v13 = vpop.f32.mrf.mxu2 }
0x1c24   : > { %v2463_v54 = vpop.xlane.xlu1 %2462 }
0x1c25   : > { %3325 = vrcp.f32 %v2463_v54  ;;  %v3110_v54 = vld [vmem:[%s4731_s8 + $0x1b8] sm:$0xff] }
0x1c26   : > { %2720 = vmatpush.msrb.mxu0 %v3110_v54 }
0x1c2b   : > { %v3326_v55 = vpop.eup %3325 }
0x1c2c   : > { %v2479_v56 = vmul.f32 %v3326_v55, %v3312_v3  ;;  %v3100_v3 = vld [vmem:[%s4729_s6 + $0xf8] sm:$0xff] }
0x1c2d   : > { %2677 = vmatpush.msra.mxu3 %v3100_v3 }
0x1c2e   : > { %3080 = vmatmul.msk.f32.gmra.mxu2 %vm514_vm0, %v2479_v56  ;;  %v3109_v56 = vld [vmem:[%s4731_s8 + $0x1b0] sm:$0xff] }
0x1c2f   : > { %2721 = vmatpush.msrb.mxu0 %v3109_v56 }
0x1c3b   : > { %v2524_v58 = vpop.f32.mrf.mxu2 }
0x1c3c   : > { %2546 = vrot.lane.b32.xlu2 %v2524_v58, %s4785_s22  ;;  %v3108_v58 = vld [vmem:[%s4731_s8 + $0x1a8] sm:$0xff] }
0x1c3d   : > { %2722 = vmatpush.msrb.mxu0 %v3108_v58 }
0x1c43   : > { %v2527_v59 = vpop.f32.mrf.mxu2 }
0x1c44   : > { %2550 = vrot.lane.b32.xlu0 %v2527_v59, %s4799_s27 }
0x1c4b   : > { %v2530_v61 = vpop.f32.mrf.mxu2 }
0x1c4c   : > { %2554 = vrot.lane.b32.xlu1 %v2530_v61, %s4800_s28  ;;  %v3107_v61 = vld [vmem:[%s4731_s8 + $0x1a0] sm:$0xff] }
0x1c4d   : > { %2723 = vmatpush.msrb.mxu0 %v3107_v61 }
0x1c65   : > { %v2533_v0 = vpop.f32.mrf.mxu2 }
0x1c66   : > { %2558 = vrot.lane.b32.xlu0 %v2533_v0, %s4801_s18 }
0x1c70   : > { %v2536_v1 = vpop.f32.mrf.mxu2 }
0x1c71   : > { %2562 = vrot.lane.b32.xlu2 %v2536_v1, %s4802_s26  ;;  %v3106_v1 = vld [vmem:[%s4731_s8 + $0x198] sm:$0xff] }
0x1c72   : > { %2724 = vmatpush.msrb.mxu0 %v3106_v1 }
0x1c74   : > { %2725 = vmatpush.msrb.mxu0 %v3105_v14 }
0x1c76   : > { %2726 = vmatpush.msrb.mxu0 %v3104_v8 }
0x1c78   : > { %v2539_v4 = vpop.f32.mrf.mxu2  ;;  %2727 = vmatpush.msrb.mxu0 %v3103_v15 }
0x1c79   : > { %2566 = vrot.lane.b32.xlu1 %v2539_v4, %s4803_s16  ;;  %s4805_s16 = sld [smem:[#allocation3_spill]] }
0x1c7f   : > { %s4806_s0 = sshll.u32 %s4805_s16, 3 }
0x1c80   : > { %s482_s30 = scalar_lea.vmem %s4807_s21, %s4806_s0 }
0x1c96   : > { %v2547_v36 = vpop.permute.xlu2 %2546 }
0x1c97   : > { %v2573_v40 = vsel %vm611_vm1, %v2521_v13, %v2547_v36 }
0x1cb1   : > { %v2542_v50 = vpop.f32.mrf.mxu2 }
0x1cb2   : > { %2570 = vrot.lane.b32.xlu0 %v2542_v50, %s4804_s25  ;;  %v3179_v50 = vld [vmem:[%s4733_s10 + $0x3] ss:$0 sm:$0xff] }
0x1cb6   : > { %v2551_v17 = vpop.permute.xlu0 %2550 }
0x1cb7   : > { %v2574_v46 = vsel %vm867_vm2, %v2573_v40, %v2551_v17  ;;  %v3181_v17 = vld [vmem:[%s4730_s7 + $0x3] ss:$0 sm:$0xff] }
0x1cb8   : > { %v3182_v40 = vld [vmem:[%s4732_s9 + $0x3] ss:$0 sm:$0xff] }
0x1cbe   : > { %v2555_v18 = vpop.permute.xlu1 %2554 }
0x1cbf   : > { %v2575_v51 = vsel %vm869_vm3, %v2574_v46, %v2555_v18 }
0x1ccb   : > { %v2563_v23 = vpop.permute.xlu2 %2562 }
0x1cd8   : > { %v2559_v20 = vpop.permute.xlu0 %2558 }
0x1cd9   : > { %v2576_v22 = vsel %vm871_vm4, %v2575_v51, %v2559_v20 }
0x1cda   : > { %v2577_v25 = vsel %vm873_vm5, %v2576_v22, %v2563_v23 }
0x1ceb   : > { %v2567_v21 = vpop.permute.xlu1 %2566 }
0x1cec   : > { %v2578_v27 = vsel %vm875_vm6, %v2577_v25, %v2567_v21 }
0x1d24   : > { %v2571_v57 = vpop.permute.xlu0 %2570 }
0x1d25   : > { %v2579_v28 = vsel %vm877_vm7, %v2578_v27, %v2571_v57 }
0x1d26   : > { %3090 = vmatmul.msk.f32.vlgmr.msrb.gmra.mxu3 %vm514_vm0, %v2579_v28 }
0x1da9   : > { %v2614_v63 = vpop.f32.mrf.mxu3 }
0x1daa   : > { %v2615_v30 = vadd.f32 %v3178_v60, %v2614_v63 }
0x1dac   : > { %v2617_v24 = vadd.f32 %v2615_v30, %v4467_v2  ;;  %v3099_v2 = vld [vmem:[%s4729_s6 + $0xf0] sm:$0xff] }
0x1dad   : > { %2678 = vmatpush.msra.mxu3 %v3099_v2 }
0x1dae   : > { %v2622_v34 = vsel %vm514_vm0, %v2617_v24, 0.0 }
0x1daf   : > { %2623 = vadd.xlane.f32.xlu2 %v2622_v34  ;;  %2679 = vmatpush.msra.mxu3 %v3098_v6 }
0x1db1   : > { %2680 = vmatpush.msra.mxu3 %v3097_v12 }
0x1db3   : > { %2681 = vmatpush.msra.mxu3 %v3096_v37 }
0x1db5   : > { %2682 = vmatpush.msra.mxu3 %v3095_v35 }
0x1db7   : > { %2683 = vmatpush.msra.mxu3 %v3094_v38 }
0x1db9   : > { %2684 = vmatpush.msra.mxu3 %v3093_v41 }
0x1e22   : > { %v2624_v31 = vpop.xlane.xlu2 %2623 }
0x1e23   : > { %v2625_v29 = vmul.f32 %v2624_v31, %v3688_v9 }
0x1e25   : > { %v2626_v62 = vsub.f32 %v2617_v24, %v2625_v29 }
0x1e27   : > { %v2627_v32 = vmul.f32 %v2626_v62, %v2626_v62 }
0x1e29   : > { %v2628_v33 = vsel %vm514_vm0, %v2627_v32, 0.0 }
0x1e2a   : > { %2629 = vadd.xlane.f32.xlu1 %v2628_v33  ;;  %v3183_v33 = vld [vmem:[%s4735_s12 + $0x3] ss:$0 sm:$0xff] }
0x1e9d   : > { %v2630_v16 = vpop.xlane.xlu1 %2629 }
0x1e9e   : > { %v2631_v19 = vmul.f32 %v2630_v16, %v3688_v9 }
0x1ea0   : > { %v2632_v45 = vadd.f32 1e-05, %v2631_v19 }
0x1ea2   : > { %3327 = vrsqrt.f32 %v2632_v45  ;;  %vm2639_vm2 = vweird.f32 %v2632_v45 }
0x1ea8   : > { %v3328_v53 = vpop.eup %3327 }
0x1ea9   : > { %v2634_v55 = vmul.f32 %v3328_v53, %v2632_v45  ;;  %vm2640_vm1 = vweird.f32 %v3328_v53 }
0x1eaa   : > { %vm2641_vm3 = vmor %vm2639_vm2, %vm2640_vm1 }
0x1eab   : > { %v2635_v13 = vmul.f32 %v3328_v53, %v2634_v55 }
0x1ead   : > { %v2636_v59 = vmul.f32 0.5, %v2635_v13 }
0x1eaf   : > { %v2637_v0 = vsub.f32 1.5, %v2636_v59 }
0x1eb1   : > { %v2638_v4 = vmul.f32 %v3328_v53, %v2637_v0 }
0x1eb3   : > { %v2642_v5 = vsel %vm2641_vm3, %v3328_v53, %v2638_v4 }
0x1eb4   : > { %v2643_v7 = vmul.f32 %v2642_v5, %v2626_v62 }
0x1eb6   : > { %v2647_v10 = vmul.f32 %v3179_v50, %v2643_v7 }
0x1eb8   : > { %v2651_v11 = vadd.f32 %v3180_v26, %v2647_v10 }
0x1eba   : > { %3102 = vmatmul.msk.f32.vlgmr.msra.gmra.mxu3 %vm514_vm0, %v2651_v11 }
0x1f3d   : > { %v2686_v18 = vpop.f32.mrf.mxu3 }
0x1f3e   : > { %v2687_v36 = vadd.f32 %v3181_v17, %v2686_v18 }
0x1f40   : > { %v2689_v20 = vmax.f32 %v2687_v36, 0.0 }
0x1f42   : > { %2728 = vmatmul.f32.vlgmr.msrb.gmra.mxu0 %v2689_v20 }
0x1fbf   : > { %v2729_v46 = vpop.f32.mrf.mxu0 }
0x1fc0   : > { %v2730_v51 = vadd.f32 %v3182_v40, %v2729_v46 }
0x1fc2   : > { %v2732_v22 = vadd.f32 %v2730_v51, %v2651_v11 }
0x1fc4   : > { %v2737_v21 = vsel %vm514_vm0, %v2732_v22, 0.0 }
0x1fc5   : > { %2738 = vadd.xlane.f32.xlu0 %v2737_v21 }
0x2038   : > { %v2739_v23 = vpop.xlane.xlu0 %2738 }
0x2039   : > { %v2740_v25 = vmul.f32 %v2739_v23, %v3688_v9 }
0x203b   : > { %v2741_v27 = vsub.f32 %v2732_v22, %v2740_v25 }
0x203d   : > { %v2742_v57 = vmul.f32 %v2741_v27, %v2741_v27 }
0x203f   : > { %v2743_v28 = vsel %vm514_vm0, %v2742_v57, 0.0 }
0x2040   : > { %2744 = vadd.xlane.f32.xlu2 %v2743_v28 }
0x20b3   : > { %v2745_v60 = vpop.xlane.xlu2 %2744 }
0x20b4   : > { %v2746_v63 = vmul.f32 %v2745_v60, %v3688_v9  ;;  %v3184_v9 = vld [vmem:[%s4736_s13 + $0x3] ss:$0 sm:$0xff] }
0x20b6   : > { %v2747_v30 = vadd.f32 1e-05, %v2746_v63 }
0x20b8   : > { %3329 = vrsqrt.f32 %v2747_v30  ;;  %vm2754_vm5 = vweird.f32 %v2747_v30 }
0x20be   : > { %v3330_v24 = vpop.eup %3329 }
0x20bf   : > { %v2749_v34 = vmul.f32 %v3330_v24, %v2747_v30  ;;  %vm2755_vm4 = vweird.f32 %v3330_v24 }
0x20c0   : > { %vm2756_vm6 = vmor %vm2754_vm5, %vm2755_vm4 }
0x20c1   : > { %v2750_v31 = vmul.f32 %v3330_v24, %v2749_v34 }
0x20c3   : > { %v2751_v29 = vmul.f32 0.5, %v2750_v31 }
0x20c5   : > { %v2752_v62 = vsub.f32 1.5, %v2751_v29 }
0x20c7   : > { %v2753_v32 = vmul.f32 %v3330_v24, %v2752_v62 }
0x20c9   : > { %v2757_v3 = vsel %vm2756_vm6, %v3330_v24, %v2753_v32 }
0x20ca   : > { %v2758_v2 = vmul.f32 %v2757_v3, %v2741_v27 }
0x20cc   : > { %v2762_v6 = vmul.f32 %v3183_v33, %v2758_v2 }
0x20ce   : > { %v2766_v12 = vadd.f32 %v3184_v9, %v2762_v6 }
0x20d0   : > { %2767 = vst.msk [vmem:[%s482_s30] sm:$0xff] %vm514_vm0, %v2766_v12 }
0x20d1 PF: > { %s4808_s19 = sld [smem:[#allocation2_spill]] }
0x20d7   : > { %s24_s29 = sadd.s32 1, %s4808_s19  }
0x20d8   : > { %p21_p4 = scmp.ge.s32.totalorder %s24_s29, 4  }
0x20da   :  { %23 = sbr.rel (!%p21_p4) target bundleno = 4 (0x4), region = 145 }

</bundles_post_ra>
